<compile_context>
chip_gen: v6e
topology: v6e:2x2x1
jax: 0.10.0
libtpu: 0.0.40
codegen_flags: <defaults>
</compile_context>

<pallas_src>
import jax
import jax.numpy as jnp
import numpy as np
from jax.experimental import pallas as pl
from jax.experimental.pallas import tpu as pltpu

INPUT_SIZE = 16
D_MODEL = 64
NHEAD = 4
NUM_LAYERS = 3
DFF = 128
HEAD_DIM = D_MODEL // NHEAD
LN_EPS = 1e-5
OUT_PAD = 128  # lane-dense padded width for the 2-wide output


def _layer_norm(h, w, b):
    mu = jnp.mean(h, axis=-1, keepdims=True)
    var = jnp.mean((h - mu) ** 2, axis=-1, keepdims=True)
    return (h - mu) * jax.lax.rsqrt(var + LN_EPS) * w + b


def transformer_kernel(
    x_ref,        # (B, 16)            f32
    wio_ref,      # (16+64, 128)       bf16  rows 0:16 = w_in, rows 16:80 = w_out (cols 0:2 real)
    bio_ref,      # (2, 128)           f32   row 0 = b_in, row 1 = b_out
    wqkv_ref,     # (L, 12, 64, 16)    bf16  head-major q(scaled)/k/v projection weights
    bqkv_ref,     # (L, 12, 1, 16)     f32   head-major q(scaled)/k/v biases
    wout_ref,     # (L, 4, 16, 64)     bf16  head-major out-projection weights
    ffw_ref,      # (L, 192, 128)      bf16  rows 0:64 = ff1 (64,128); rows 64:192 cols 0:64 = ff2
    bln_ref,      # (L, 8, 128)        f32   out_proj_b, ln1_w, ln1_b, ln2_w, ln2_b, ff1_b, ff2_b
    o_ref,        # (B, 128)           f32   (only cols 0:2 meaningful)
):
    f32 = jnp.float32
    bf16 = jnp.bfloat16
    B = x_ref.shape[0]

    wio = wio_ref[...]
    w_in = wio[0:INPUT_SIZE, 0:D_MODEL]
    w_out = wio[INPUT_SIZE:INPUT_SIZE + D_MODEL, :]
    bio = bio_ref[...]
    b_in = bio[0:1, 0:D_MODEL]
    b_out = bio[1:2, :]

    # input linear
    h = jnp.dot(x_ref[...].astype(bf16), w_in, preferred_element_type=f32) + b_in

    for l in range(NUM_LAYERS):          # static unroll over encoder layers
        w_qkv = wqkv_ref[l]              # (12, 64, 16) bf16
        b_qkv = bqkv_ref[l]              # (12, 1, 16)  f32
        w_o3 = wout_ref[l]               # (4, 16, 64)  bf16
        ffw = ffw_ref[l]                 # (192, 128)   bf16
        ff1_w = ffw[0:D_MODEL, :]        # (64, 128)
        ff2_w = ffw[D_MODEL:, 0:D_MODEL]  # (128, 64)
        bln = bln_ref[l]                 # (8, 128) f32
        out_proj_b = bln[0:1, 0:D_MODEL]
        ln1_w = bln[1:2, 0:D_MODEL]
        ln1_b = bln[2:3, 0:D_MODEL]
        ln2_w = bln[3:4, 0:D_MODEL]
        ln2_b = bln[4:5, 0:D_MODEL]
        ff1_b = bln[5:6, :]
        ff2_b = bln[6:7, 0:D_MODEL]

        # ---- multi-head self-attention: heads as a batch dim of dot_general ----
        h16 = h.astype(bf16)
        h_b = jnp.broadcast_to(h16[None], (3 * NHEAD, B, D_MODEL))      # (12, B, 64)
        qkv = jax.lax.dot_general(h_b, w_qkv, (((2,), (1,)), ((0,), (0,))),
                                  preferred_element_type=f32) + b_qkv   # (12, B, 16)
        q3 = qkv[0:NHEAD].astype(bf16)            # (4, B, 16)  (1/sqrt(hd) pre-folded)
        k3 = qkv[NHEAD:2 * NHEAD].astype(bf16)    # (4, B, 16)
        v3 = qkv[2 * NHEAD:].astype(bf16)         # (4, B, 16)

        s = jax.lax.dot_general(q3, k3, (((2,), (2,)), ((0,), (0,))),
                                preferred_element_type=f32)             # (4, B, B)
        s = s - jnp.max(s, axis=-1, keepdims=True)
        p = jnp.exp(s)
        p = p * pl.reciprocal(jnp.sum(p, axis=-1, keepdims=True), approx=True)

        a3 = jax.lax.dot_general(p.astype(bf16), v3, (((2,), (1,)), ((0,), (0,))),
                                 preferred_element_type=f32)            # (4, B, 16)
        ah = jax.lax.dot_general(a3.astype(bf16), w_o3, (((2,), (1,)), ((0,), (0,))),
                                 preferred_element_type=f32)            # (4, B, 64)
        attn = jnp.sum(ah, axis=0) + out_proj_b                          # (B, 64)

        h = _layer_norm(h + attn, ln1_w, ln1_b)

        # ---- feed-forward (ReLU) ----
        ff = jnp.dot(h.astype(bf16), ff1_w, preferred_element_type=f32) + ff1_b
        ff = jnp.maximum(ff, 0.0)
        ff = jnp.dot(ff.astype(bf16), ff2_w, preferred_element_type=f32) + ff2_b
        h = _layer_norm(h + ff, ln2_w, ln2_b)

    # output linear into a lane-dense (B, 128) slab (cols 2:128 carry zero weights)
    o_ref[...] = jnp.dot(h.astype(bf16), w_out, preferred_element_type=f32) + b_out


def pack_params(params):
    """Host-side packing of the 16 logical parameter arrays into 7 slabs."""
    (w_in, b_in, in_proj_w, in_proj_b, out_proj_w, out_proj_b,
     ln1_w, ln1_b, ln2_w, ln2_b, ff1_w, ff1_b, ff2_w, ff2_b,
     w_out, b_out) = params
    L = NUM_LAYERS
    bf16 = jnp.bfloat16
    scale = 1.0 / (HEAD_DIM ** 0.5)
    qscale = jnp.concatenate([jnp.full((NHEAD,), scale, jnp.float32),
                              jnp.ones((2 * NHEAD,), jnp.float32)])

    # Head-major QKV weights/biases, 1/sqrt(head_dim) folded into the Q slice.
    wqkv = in_proj_w.reshape(L, D_MODEL, 3 * NHEAD, HEAD_DIM).transpose(0, 2, 1, 3)
    wqkv = wqkv * qscale[None, :, None, None]                 # (L, 12, 64, 16)
    bqkv = in_proj_b.reshape(L, 3 * NHEAD, 1, HEAD_DIM) * qscale[None, :, None, None]

    # Head-major output projection.
    wout3 = out_proj_w.reshape(L, NHEAD, HEAD_DIM, D_MODEL)   # (L, 4, 16, 64)

    # Input + (zero-padded) output linear weights in one slab.
    wio = jnp.zeros((INPUT_SIZE + D_MODEL, OUT_PAD), jnp.float32)
    wio = wio.at[0:INPUT_SIZE, 0:D_MODEL].set(w_in)
    wio = wio.at[INPUT_SIZE:, 0:2].set(w_out)
    bio = jnp.zeros((2, OUT_PAD), jnp.float32)
    bio = bio.at[0, 0:D_MODEL].set(b_in[0])
    bio = bio.at[1, 0:2].set(b_out[0])

    # Feed-forward weights stacked row-wise in natural (K, N) orientation.
    ffw = jnp.zeros((L, D_MODEL + DFF, DFF), jnp.float32)
    ffw = ffw.at[:, 0:D_MODEL, :].set(ff1_w)
    ffw = ffw.at[:, D_MODEL:, 0:D_MODEL].set(ff2_w)

    # One f32 (8,128) bias/LayerNorm tile per layer.
    bln = jnp.zeros((L, 8, 128), jnp.float32)
    bln = bln.at[:, 0, 0:D_MODEL].set(out_proj_b[:, 0])
    bln = bln.at[:, 1, 0:D_MODEL].set(ln1_w[:, 0])
    bln = bln.at[:, 2, 0:D_MODEL].set(ln1_b[:, 0])
    bln = bln.at[:, 3, 0:D_MODEL].set(ln2_w[:, 0])
    bln = bln.at[:, 4, 0:D_MODEL].set(ln2_b[:, 0])
    bln = bln.at[:, 5, :].set(ff1_b[:, 0])
    bln = bln.at[:, 6, 0:D_MODEL].set(ff2_b[:, 0])

    return (wio.astype(bf16), bio, wqkv.astype(bf16), bqkv.astype(jnp.float32),
            wout3.astype(bf16), ffw.astype(bf16), bln)


@jax.jit
def transformer_forward(x, packed):
    B = x.shape[0]
    args = (x,) + tuple(packed)
    vmem = pl.BlockSpec(memory_space=pltpu.MemorySpace.VMEM)
    out = pl.pallas_call(
        transformer_kernel,
        out_shape=jax.ShapeDtypeStruct((B, OUT_PAD), jnp.float32),
        in_specs=[vmem] * len(args),
        out_specs=vmem,
    )(*args)
    return out[:, :2]


def init_params(key):
    """Deterministic init matching the PyTorch module's parameter shapes
    (all Linear weights pre-transposed to (in, out))."""
    ks = jax.random.split(key, 12)

    def u(k, shape, fan_in):
        b = 1.0 / (fan_in ** 0.5)
        return jax.random.uniform(k, shape, jnp.float32, -b, b)

    L = NUM_LAYERS
    w_in = u(ks[0], (INPUT_SIZE, D_MODEL), INPUT_SIZE)
    b_in = u(ks[1], (1, D_MODEL), INPUT_SIZE)
    in_proj_w = u(ks[2], (L, D_MODEL, 3 * D_MODEL), D_MODEL)
    in_proj_b = u(ks[3], (L, 1, 3 * D_MODEL), D_MODEL)
    out_proj_w = u(ks[4], (L, D_MODEL, D_MODEL), D_MODEL)
    out_proj_b = u(ks[5], (L, 1, D_MODEL), D_MODEL)
    ln1_w = jnp.ones((L, 1, D_MODEL), jnp.float32)
    ln1_b = jnp.zeros((L, 1, D_MODEL), jnp.float32)
    ln2_w = jnp.ones((L, 1, D_MODEL), jnp.float32)
    ln2_b = jnp.zeros((L, 1, D_MODEL), jnp.float32)
    ff1_w = u(ks[6], (L, D_MODEL, DFF), D_MODEL)
    ff1_b = u(ks[7], (L, 1, DFF), D_MODEL)
    ff2_w = u(ks[8], (L, DFF, D_MODEL), DFF)
    ff2_b = u(ks[9], (L, 1, D_MODEL), DFF)
    w_out = u(ks[10], (D_MODEL, 2), D_MODEL)
    b_out = u(ks[11], (1, 2), D_MODEL)
    return (w_in, b_in, in_proj_w, in_proj_b, out_proj_w, out_proj_b,
            ln1_w, ln1_b, ln2_w, ln2_b, ff1_w, ff1_b, ff2_w, ff2_b,
            w_out, b_out)


def reference_forward(x, params):
    """Pure-JAX f32 reference with the PyTorch module's math."""
    (w_in, b_in, in_proj_w, in_proj_b, out_proj_w, out_proj_b,
     ln1_w, ln1_b, ln2_w, ln2_b, ff1_w, ff1_b, ff2_w, ff2_b,
     w_out, b_out) = params

    def ln(h, w, b):
        mu = jnp.mean(h, -1, keepdims=True)
        var = jnp.mean((h - mu) ** 2, -1, keepdims=True)
        return (h - mu) / jnp.sqrt(var + LN_EPS) * w + b

    B = x.shape[0]
    h = x @ w_in + b_in
    for l in range(NUM_LAYERS):
        qkv = h @ in_proj_w[l] + in_proj_b[l]
        q, k, v = jnp.split(qkv, 3, axis=-1)
        qh = q.reshape(B, NHEAD, HEAD_DIM).transpose(1, 0, 2) / (HEAD_DIM ** 0.5)
        kh = k.reshape(B, NHEAD, HEAD_DIM).transpose(1, 0, 2)
        vh = v.reshape(B, NHEAD, HEAD_DIM).transpose(1, 0, 2)
        s = jnp.einsum('hqd,hkd->hqk', qh, kh)
        p = jax.nn.softmax(s, axis=-1)
        a = jnp.einsum('hqk,hkd->hqd', p, vh).transpose(1, 0, 2).reshape(B, D_MODEL)
        a = a @ out_proj_w[l] + out_proj_b[l]
        h = ln(h + a, ln1_w[l], ln1_b[l])
        ff = jnp.maximum(h @ ff1_w[l] + ff1_b[l], 0.0)
        ff = ff @ ff2_w[l] + ff2_b[l]
        h = ln(h + ff, ln2_w[l], ln2_b[l])
    return h @ w_out + b_out


if __name__ == "__main__":
    key = jax.random.PRNGKey(0)
    pkey, xkey = jax.random.split(key)
    params = init_params(pkey)
    packed = pack_params(params)
    B = 8
    x = jax.random.normal(xkey, (B, INPUT_SIZE), jnp.float32)

    out = transformer_forward(x, packed)
    out = jax.block_until_ready(out)
    assert out.shape == (B, 2) and out.dtype == jnp.float32

    ref = reference_forward(x, params)
    # Loosened vs. pure-f32 run: bf16 MXU operands + approx reciprocal drift.
    np.testing.assert_allclose(np.asarray(out), np.asarray(ref),
                               rtol=2e-2, atol=2e-2)
    print("KERNEL_OK")
</pallas_src>

<mosaic_0001>
module attributes {stable_mosaic.version = 11 : i64} {
  func.func @transformer_kernel(%arg0: memref<8x16xf32, #tpu.memory_space<vmem>>, %arg1: memref<80x128xbf16, #tpu.memory_space<vmem>>, %arg2: memref<2x128xf32, #tpu.memory_space<vmem>>, %arg3: memref<3x12x64x16xbf16, #tpu.memory_space<vmem>>, %arg4: memref<3x12x1x16xf32, #tpu.memory_space<vmem>>, %arg5: memref<3x4x16x64xbf16, #tpu.memory_space<vmem>>, %arg6: memref<3x192x128xbf16, #tpu.memory_space<vmem>>, %arg7: memref<3x8x128xf32, #tpu.memory_space<vmem>>, %arg8: memref<8x128xf32, #tpu.memory_space<vmem>>) attributes {dimension_semantics = [], scalar_prefetch = 0 : i64, scratch_operands = 0 : i64, tpu.core_type = #tpu.core_type<tc>} {
    %c0 = arith.constant 0 : index
    %c0_0 = arith.constant 0 : index
    %0 = vector.load %arg1[%c0, %c0_0] : memref<80x128xbf16, #tpu.memory_space<vmem>>, vector<80x128xbf16>
    %1 = vector.extract_strided_slice %0 {offsets = [0, 0], sizes = [16, 64], strides = [1, 1]} : vector<80x128xbf16> to vector<16x64xbf16>
    %2 = vector.extract_strided_slice %0 {offsets = [16, 0], sizes = [64, 128], strides = [1, 1]} : vector<80x128xbf16> to vector<64x128xbf16>
    %c0_1 = arith.constant 0 : index
    %c0_2 = arith.constant 0 : index
    %3 = vector.load %arg2[%c0_1, %c0_2] : memref<2x128xf32, #tpu.memory_space<vmem>>, vector<2x128xf32>
    %4 = vector.extract_strided_slice %3 {offsets = [0, 0], sizes = [1, 64], strides = [1, 1]} : vector<2x128xf32> to vector<1x64xf32>
    %5 = vector.extract_strided_slice %3 {offsets = [1, 0], sizes = [1, 128], strides = [1, 1]} : vector<2x128xf32> to vector<1x128xf32>
    %c0_3 = arith.constant 0 : index
    %c0_4 = arith.constant 0 : index
    %6 = vector.load %arg0[%c0_3, %c0_4] : memref<8x16xf32, #tpu.memory_space<vmem>>, vector<8x16xf32>
    %7 = arith.truncf %6 : vector<8x16xf32> to vector<8x16xbf16>
    %cst = arith.constant dense<0.000000e+00> : vector<8x64xf32>
    %8 = tpu.matmul %7, %1, %cst {dimension_numbers = #tpu.dot_dimension_numbers<[1], [0], [0], [1], [0, 0, 1, 1], [], []>} : vector<8x16xbf16>, vector<16x64xbf16>, vector<8x64xf32> -> vector<8x64xf32>
    %9 = vector.broadcast %4 : vector<1x64xf32> to vector<8x64xf32>
    %10 = arith.addf %8, %9 : vector<8x64xf32>
    %c0_5 = arith.constant 0 : index
    %c0_6 = arith.constant 0 : index
    %c0_7 = arith.constant 0 : index
    %c0_8 = arith.constant 0 : index
    %11 = vector.load %arg3[%c0_5, %c0_6, %c0_7, %c0_8] : memref<3x12x64x16xbf16, #tpu.memory_space<vmem>>, vector<1x12x64x16xbf16>
    %12 = vector.shape_cast %11 : vector<1x12x64x16xbf16> to vector<12x64x16xbf16>
    %c0_9 = arith.constant 0 : index
    %c0_10 = arith.constant 0 : index
    %c0_11 = arith.constant 0 : index
    %c0_12 = arith.constant 0 : index
    %13 = vector.load %arg4[%c0_9, %c0_10, %c0_11, %c0_12] : memref<3x12x1x16xf32, #tpu.memory_space<vmem>>, vector<1x12x1x16xf32>
    %14 = vector.shape_cast %13 : vector<1x12x1x16xf32> to vector<12x1x16xf32>
    %c0_13 = arith.constant 0 : index
    %c0_14 = arith.constant 0 : index
    %c0_15 = arith.constant 0 : index
    %c0_16 = arith.constant 0 : index
    %15 = vector.load %arg5[%c0_13, %c0_14, %c0_15, %c0_16] : memref<3x4x16x64xbf16, #tpu.memory_space<vmem>>, vector<1x4x16x64xbf16>
    %16 = vector.shape_cast %15 : vector<1x4x16x64xbf16> to vector<4x16x64xbf16>
    %c0_17 = arith.constant 0 : index
    %c0_18 = arith.constant 0 : index
    %c0_19 = arith.constant 0 : index
    %17 = vector.load %arg6[%c0_17, %c0_18, %c0_19] : memref<3x192x128xbf16, #tpu.memory_space<vmem>>, vector<1x192x128xbf16>
    %18 = vector.shape_cast %17 : vector<1x192x128xbf16> to vector<192x128xbf16>
    %19 = vector.extract_strided_slice %18 {offsets = [0, 0], sizes = [64, 128], strides = [1, 1]} : vector<192x128xbf16> to vector<64x128xbf16>
    %20 = vector.extract_strided_slice %18 {offsets = [64, 0], sizes = [128, 64], strides = [1, 1]} : vector<192x128xbf16> to vector<128x64xbf16>
    %c0_20 = arith.constant 0 : index
    %c0_21 = arith.constant 0 : index
    %c0_22 = arith.constant 0 : index
    %21 = vector.load %arg7[%c0_20, %c0_21, %c0_22] : memref<3x8x128xf32, #tpu.memory_space<vmem>>, vector<1x8x128xf32>
    %22 = vector.shape_cast %21 : vector<1x8x128xf32> to vector<8x128xf32>
    %23 = vector.extract_strided_slice %22 {offsets = [0, 0], sizes = [1, 64], strides = [1, 1]} : vector<8x128xf32> to vector<1x64xf32>
    %24 = vector.extract_strided_slice %22 {offsets = [1, 0], sizes = [1, 64], strides = [1, 1]} : vector<8x128xf32> to vector<1x64xf32>
    %25 = vector.extract_strided_slice %22 {offsets = [2, 0], sizes = [1, 64], strides = [1, 1]} : vector<8x128xf32> to vector<1x64xf32>
    %26 = vector.extract_strided_slice %22 {offsets = [3, 0], sizes = [1, 64], strides = [1, 1]} : vector<8x128xf32> to vector<1x64xf32>
    %27 = vector.extract_strided_slice %22 {offsets = [4, 0], sizes = [1, 64], strides = [1, 1]} : vector<8x128xf32> to vector<1x64xf32>
    %28 = vector.extract_strided_slice %22 {offsets = [5, 0], sizes = [1, 128], strides = [1, 1]} : vector<8x128xf32> to vector<1x128xf32>
    %29 = vector.extract_strided_slice %22 {offsets = [6, 0], sizes = [1, 64], strides = [1, 1]} : vector<8x128xf32> to vector<1x64xf32>
    %30 = arith.truncf %10 : vector<8x64xf32> to vector<8x64xbf16>
    %31 = vector.shape_cast %30 : vector<8x64xbf16> to vector<1x8x64xbf16>
    %32 = vector.shape_cast %31 : vector<1x8x64xbf16> to vector<1x8x64xbf16>
    %33 = vector.broadcast %32 : vector<1x8x64xbf16> to vector<12x8x64xbf16>
    %cst_23 = arith.constant dense<0.000000e+00> : vector<12x8x16xf32>
    %34 = tpu.matmul %33, %12, %cst_23 {dimension_numbers = #tpu.dot_dimension_numbers<[2], [1], [1], [2], [0, 0, 0, 1, 1, 2], [0], [0]>} : vector<12x8x64xbf16>, vector<12x64x16xbf16>, vector<12x8x16xf32> -> vector<12x8x16xf32>
    %35 = vector.broadcast %14 : vector<12x1x16xf32> to vector<12x8x16xf32>
    %36 = arith.addf %34, %35 : vector<12x8x16xf32>
    %37 = vector.extract_strided_slice %36 {offsets = [0, 0, 0], sizes = [4, 8, 16], strides = [1, 1, 1]} : vector<12x8x16xf32> to vector<4x8x16xf32>
    %38 = arith.truncf %37 : vector<4x8x16xf32> to vector<4x8x16xbf16>
    %39 = vector.extract_strided_slice %36 {offsets = [4, 0, 0], sizes = [4, 8, 16], strides = [1, 1, 1]} : vector<12x8x16xf32> to vector<4x8x16xf32>
    %40 = arith.truncf %39 : vector<4x8x16xf32> to vector<4x8x16xbf16>
    %41 = vector.extract_strided_slice %36 {offsets = [8, 0, 0], sizes = [4, 8, 16], strides = [1, 1, 1]} : vector<12x8x16xf32> to vector<4x8x16xf32>
    %42 = arith.truncf %41 : vector<4x8x16xf32> to vector<4x8x16xbf16>
    %cst_24 = arith.constant dense<0.000000e+00> : vector<4x8x8xf32>
    %43 = tpu.matmul %38, %40, %cst_24 {dimension_numbers = #tpu.dot_dimension_numbers<[2], [2], [1], [1], [0, 0, 0, 1, 1, 1], [0], [0]>} : vector<4x8x16xbf16>, vector<4x8x16xbf16>, vector<4x8x8xf32> -> vector<4x8x8xf32>
    %cst_25 = arith.constant dense<0xFF800000> : vector<4x8xf32>
    %44 = vector.multi_reduction <maximumf>, %43, %cst_25 [2] : vector<4x8x8xf32> to vector<4x8xf32>
    %45 = vector.shape_cast %44 : vector<4x8xf32> to vector<4x8x1xf32>
    %46 = vector.broadcast %45 : vector<4x8x1xf32> to vector<4x8x8xf32>
    %47 = arith.subf %43, %46 : vector<4x8x8xf32>
    %48 = math.exp %47 : vector<4x8x8xf32>
    %cst_26 = arith.constant dense<0.000000e+00> : vector<4x8xf32>
    %49 = vector.multi_reduction <add>, %48, %cst_26 [2] : vector<4x8x8xf32> to vector<4x8xf32>
    %50 = vector.shape_cast %49 : vector<4x8xf32> to vector<4x8x1xf32>
    %51 = tpu.reciprocal %50 {approx = true} : vector<4x8x1xf32> -> vector<4x8x1xf32>
    %52 = vector.broadcast %51 : vector<4x8x1xf32> to vector<4x8x8xf32>
    %53 = arith.mulf %48, %52 : vector<4x8x8xf32>
    %54 = arith.truncf %53 : vector<4x8x8xf32> to vector<4x8x8xbf16>
    %cst_27 = arith.constant dense<0.000000e+00> : vector<4x8x16xf32>
    %55 = tpu.matmul %54, %42, %cst_27 {dimension_numbers = #tpu.dot_dimension_numbers<[2], [1], [1], [2], [0, 0, 0, 1, 1, 2], [0], [0]>} : vector<4x8x8xbf16>, vector<4x8x16xbf16>, vector<4x8x16xf32> -> vector<4x8x16xf32>
    %56 = arith.truncf %55 : vector<4x8x16xf32> to vector<4x8x16xbf16>
    %cst_28 = arith.constant dense<0.000000e+00> : vector<4x8x64xf32>
    %57 = tpu.matmul %56, %16, %cst_28 {dimension_numbers = #tpu.dot_dimension_numbers<[2], [1], [1], [2], [0, 0, 0, 1, 1, 2], [0], [0]>} : vector<4x8x16xbf16>, vector<4x16x64xbf16>, vector<4x8x64xf32> -> vector<4x8x64xf32>
    %cst_29 = arith.constant dense<0.000000e+00> : vector<8x64xf32>
    %58 = vector.multi_reduction <add>, %57, %cst_29 [0] : vector<4x8x64xf32> to vector<8x64xf32>
    %59 = vector.broadcast %23 : vector<1x64xf32> to vector<8x64xf32>
    %60 = arith.addf %58, %59 : vector<8x64xf32>
    %61 = arith.addf %10, %60 : vector<8x64xf32>
    %cst_30 = arith.constant dense<0.000000e+00> : vector<8xf32>
    %62 = vector.multi_reduction <add>, %61, %cst_30 [1] : vector<8x64xf32> to vector<8xf32>
    %63 = vector.shape_cast %62 : vector<8xf32> to vector<8x1xf32>
    %cst_31 = arith.constant 6.400000e+01 : f32
    %64 = vector.broadcast %cst_31 : f32 to vector<8x1xf32>
    %65 = arith.divf %63, %64 : vector<8x1xf32>
    %66 = vector.broadcast %65 : vector<8x1xf32> to vector<8x64xf32>
    %67 = arith.subf %61, %66 : vector<8x64xf32>
    %68 = arith.mulf %67, %67 : vector<8x64xf32>
    %cst_32 = arith.constant dense<0.000000e+00> : vector<8xf32>
    %69 = vector.multi_reduction <add>, %68, %cst_32 [1] : vector<8x64xf32> to vector<8xf32>
    %70 = vector.shape_cast %69 : vector<8xf32> to vector<8x1xf32>
    %cst_33 = arith.constant 6.400000e+01 : f32
    %71 = vector.broadcast %cst_33 : f32 to vector<8x1xf32>
    %72 = arith.divf %70, %71 : vector<8x1xf32>
    %73 = vector.broadcast %65 : vector<8x1xf32> to vector<8x64xf32>
    %74 = arith.subf %61, %73 : vector<8x64xf32>
    %cst_34 = arith.constant 9.99999974E-6 : f32
    %75 = vector.broadcast %cst_34 : f32 to vector<8x1xf32>
    %76 = arith.addf %72, %75 : vector<8x1xf32>
    %77 = math.rsqrt %76 : vector<8x1xf32>
    %78 = vector.broadcast %77 : vector<8x1xf32> to vector<8x64xf32>
    %79 = arith.mulf %74, %78 : vector<8x64xf32>
    %80 = vector.broadcast %24 : vector<1x64xf32> to vector<8x64xf32>
    %81 = arith.mulf %79, %80 : vector<8x64xf32>
    %82 = vector.broadcast %25 : vector<1x64xf32> to vector<8x64xf32>
    %83 = arith.addf %81, %82 : vector<8x64xf32>
    %84 = arith.truncf %83 : vector<8x64xf32> to vector<8x64xbf16>
    %cst_35 = arith.constant dense<0.000000e+00> : vector<8x128xf32>
    %85 = tpu.matmul %84, %19, %cst_35 {dimension_numbers = #tpu.dot_dimension_numbers<[1], [0], [0], [1], [0, 0, 1, 1], [], []>} : vector<8x64xbf16>, vector<64x128xbf16>, vector<8x128xf32> -> vector<8x128xf32>
    %86 = vector.broadcast %28 : vector<1x128xf32> to vector<8x128xf32>
    %87 = arith.addf %85, %86 : vector<8x128xf32>
    %cst_36 = arith.constant 0.000000e+00 : f32
    %88 = vector.broadcast %cst_36 : f32 to vector<8x128xf32>
    %89 = arith.maximumf %87, %88 : vector<8x128xf32>
    %90 = arith.truncf %89 : vector<8x128xf32> to vector<8x128xbf16>
    %cst_37 = arith.constant dense<0.000000e+00> : vector<8x64xf32>
    %91 = tpu.matmul %90, %20, %cst_37 {dimension_numbers = #tpu.dot_dimension_numbers<[1], [0], [0], [1], [0, 0, 1, 1], [], []>} : vector<8x128xbf16>, vector<128x64xbf16>, vector<8x64xf32> -> vector<8x64xf32>
    %92 = vector.broadcast %29 : vector<1x64xf32> to vector<8x64xf32>
    %93 = arith.addf %91, %92 : vector<8x64xf32>
    %94 = arith.addf %83, %93 : vector<8x64xf32>
    %cst_38 = arith.constant dense<0.000000e+00> : vector<8xf32>
    %95 = vector.multi_reduction <add>, %94, %cst_38 [1] : vector<8x64xf32> to vector<8xf32>
    %96 = vector.shape_cast %95 : vector<8xf32> to vector<8x1xf32>
    %cst_39 = arith.constant 6.400000e+01 : f32
    %97 = vector.broadcast %cst_39 : f32 to vector<8x1xf32>
    %98 = arith.divf %96, %97 : vector<8x1xf32>
    %99 = vector.broadcast %98 : vector<8x1xf32> to vector<8x64xf32>
    %100 = arith.subf %94, %99 : vector<8x64xf32>
    %101 = arith.mulf %100, %100 : vector<8x64xf32>
    %cst_40 = arith.constant dense<0.000000e+00> : vector<8xf32>
    %102 = vector.multi_reduction <add>, %101, %cst_40 [1] : vector<8x64xf32> to vector<8xf32>
    %103 = vector.shape_cast %102 : vector<8xf32> to vector<8x1xf32>
    %cst_41 = arith.constant 6.400000e+01 : f32
    %104 = vector.broadcast %cst_41 : f32 to vector<8x1xf32>
    %105 = arith.divf %103, %104 : vector<8x1xf32>
    %106 = vector.broadcast %98 : vector<8x1xf32> to vector<8x64xf32>
    %107 = arith.subf %94, %106 : vector<8x64xf32>
    %cst_42 = arith.constant 9.99999974E-6 : f32
    %108 = vector.broadcast %cst_42 : f32 to vector<8x1xf32>
    %109 = arith.addf %105, %108 : vector<8x1xf32>
    %110 = math.rsqrt %109 : vector<8x1xf32>
    %111 = vector.broadcast %110 : vector<8x1xf32> to vector<8x64xf32>
    %112 = arith.mulf %107, %111 : vector<8x64xf32>
    %113 = vector.broadcast %26 : vector<1x64xf32> to vector<8x64xf32>
    %114 = arith.mulf %112, %113 : vector<8x64xf32>
    %115 = vector.broadcast %27 : vector<1x64xf32> to vector<8x64xf32>
    %116 = arith.addf %114, %115 : vector<8x64xf32>
    %c1 = arith.constant 1 : index
    %c0_43 = arith.constant 0 : index
    %c0_44 = arith.constant 0 : index
    %c0_45 = arith.constant 0 : index
    %117 = vector.load %arg3[%c1, %c0_43, %c0_44, %c0_45] : memref<3x12x64x16xbf16, #tpu.memory_space<vmem>>, vector<1x12x64x16xbf16>
    %118 = vector.shape_cast %117 : vector<1x12x64x16xbf16> to vector<12x64x16xbf16>
    %c1_46 = arith.constant 1 : index
    %c0_47 = arith.constant 0 : index
    %c0_48 = arith.constant 0 : index
    %c0_49 = arith.constant 0 : index
    %119 = vector.load %arg4[%c1_46, %c0_47, %c0_48, %c0_49] : memref<3x12x1x16xf32, #tpu.memory_space<vmem>>, vector<1x12x1x16xf32>
    %120 = vector.shape_cast %119 : vector<1x12x1x16xf32> to vector<12x1x16xf32>
    %c1_50 = arith.constant 1 : index
    %c0_51 = arith.constant 0 : index
    %c0_52 = arith.constant 0 : index
    %c0_53 = arith.constant 0 : index
    %121 = vector.load %arg5[%c1_50, %c0_51, %c0_52, %c0_53] : memref<3x4x16x64xbf16, #tpu.memory_space<vmem>>, vector<1x4x16x64xbf16>
    %122 = vector.shape_cast %121 : vector<1x4x16x64xbf16> to vector<4x16x64xbf16>
    %c1_54 = arith.constant 1 : index
    %c0_55 = arith.constant 0 : index
    %c0_56 = arith.constant 0 : index
    %123 = vector.load %arg6[%c1_54, %c0_55, %c0_56] : memref<3x192x128xbf16, #tpu.memory_space<vmem>>, vector<1x192x128xbf16>
    %124 = vector.shape_cast %123 : vector<1x192x128xbf16> to vector<192x128xbf16>
    %125 = vector.extract_strided_slice %124 {offsets = [0, 0], sizes = [64, 128], strides = [1, 1]} : vector<192x128xbf16> to vector<64x128xbf16>
    %126 = vector.extract_strided_slice %124 {offsets = [64, 0], sizes = [128, 64], strides = [1, 1]} : vector<192x128xbf16> to vector<128x64xbf16>
    %c1_57 = arith.constant 1 : index
    %c0_58 = arith.constant 0 : index
    %c0_59 = arith.constant 0 : index
    %127 = vector.load %arg7[%c1_57, %c0_58, %c0_59] : memref<3x8x128xf32, #tpu.memory_space<vmem>>, vector<1x8x128xf32>
    %128 = vector.shape_cast %127 : vector<1x8x128xf32> to vector<8x128xf32>
    %129 = vector.extract_strided_slice %128 {offsets = [0, 0], sizes = [1, 64], strides = [1, 1]} : vector<8x128xf32> to vector<1x64xf32>
    %130 = vector.extract_strided_slice %128 {offsets = [1, 0], sizes = [1, 64], strides = [1, 1]} : vector<8x128xf32> to vector<1x64xf32>
    %131 = vector.extract_strided_slice %128 {offsets = [2, 0], sizes = [1, 64], strides = [1, 1]} : vector<8x128xf32> to vector<1x64xf32>
    %132 = vector.extract_strided_slice %128 {offsets = [3, 0], sizes = [1, 64], strides = [1, 1]} : vector<8x128xf32> to vector<1x64xf32>
    %133 = vector.extract_strided_slice %128 {offsets = [4, 0], sizes = [1, 64], strides = [1, 1]} : vector<8x128xf32> to vector<1x64xf32>
    %134 = vector.extract_strided_slice %128 {offsets = [5, 0], sizes = [1, 128], strides = [1, 1]} : vector<8x128xf32> to vector<1x128xf32>
    %135 = vector.extract_strided_slice %128 {offsets = [6, 0], sizes = [1, 64], strides = [1, 1]} : vector<8x128xf32> to vector<1x64xf32>
    %136 = arith.truncf %116 : vector<8x64xf32> to vector<8x64xbf16>
    %137 = vector.shape_cast %136 : vector<8x64xbf16> to vector<1x8x64xbf16>
    %138 = vector.shape_cast %137 : vector<1x8x64xbf16> to vector<1x8x64xbf16>
    %139 = vector.broadcast %138 : vector<1x8x64xbf16> to vector<12x8x64xbf16>
    %cst_60 = arith.constant dense<0.000000e+00> : vector<12x8x16xf32>
    %140 = tpu.matmul %139, %118, %cst_60 {dimension_numbers = #tpu.dot_dimension_numbers<[2], [1], [1], [2], [0, 0, 0, 1, 1, 2], [0], [0]>} : vector<12x8x64xbf16>, vector<12x64x16xbf16>, vector<12x8x16xf32> -> vector<12x8x16xf32>
    %141 = vector.broadcast %120 : vector<12x1x16xf32> to vector<12x8x16xf32>
    %142 = arith.addf %140, %141 : vector<12x8x16xf32>
    %143 = vector.extract_strided_slice %142 {offsets = [0, 0, 0], sizes = [4, 8, 16], strides = [1, 1, 1]} : vector<12x8x16xf32> to vector<4x8x16xf32>
    %144 = arith.truncf %143 : vector<4x8x16xf32> to vector<4x8x16xbf16>
    %145 = vector.extract_strided_slice %142 {offsets = [4, 0, 0], sizes = [4, 8, 16], strides = [1, 1, 1]} : vector<12x8x16xf32> to vector<4x8x16xf32>
    %146 = arith.truncf %145 : vector<4x8x16xf32> to vector<4x8x16xbf16>
    %147 = vector.extract_strided_slice %142 {offsets = [8, 0, 0], sizes = [4, 8, 16], strides = [1, 1, 1]} : vector<12x8x16xf32> to vector<4x8x16xf32>
    %148 = arith.truncf %147 : vector<4x8x16xf32> to vector<4x8x16xbf16>
    %cst_61 = arith.constant dense<0.000000e+00> : vector<4x8x8xf32>
    %149 = tpu.matmul %144, %146, %cst_61 {dimension_numbers = #tpu.dot_dimension_numbers<[2], [2], [1], [1], [0, 0, 0, 1, 1, 1], [0], [0]>} : vector<4x8x16xbf16>, vector<4x8x16xbf16>, vector<4x8x8xf32> -> vector<4x8x8xf32>
    %cst_62 = arith.constant dense<0xFF800000> : vector<4x8xf32>
    %150 = vector.multi_reduction <maximumf>, %149, %cst_62 [2] : vector<4x8x8xf32> to vector<4x8xf32>
    %151 = vector.shape_cast %150 : vector<4x8xf32> to vector<4x8x1xf32>
    %152 = vector.broadcast %151 : vector<4x8x1xf32> to vector<4x8x8xf32>
    %153 = arith.subf %149, %152 : vector<4x8x8xf32>
    %154 = math.exp %153 : vector<4x8x8xf32>
    %cst_63 = arith.constant dense<0.000000e+00> : vector<4x8xf32>
    %155 = vector.multi_reduction <add>, %154, %cst_63 [2] : vector<4x8x8xf32> to vector<4x8xf32>
    %156 = vector.shape_cast %155 : vector<4x8xf32> to vector<4x8x1xf32>
    %157 = tpu.reciprocal %156 {approx = true} : vector<4x8x1xf32> -> vector<4x8x1xf32>
    %158 = vector.broadcast %157 : vector<4x8x1xf32> to vector<4x8x8xf32>
    %159 = arith.mulf %154, %158 : vector<4x8x8xf32>
    %160 = arith.truncf %159 : vector<4x8x8xf32> to vector<4x8x8xbf16>
    %cst_64 = arith.constant dense<0.000000e+00> : vector<4x8x16xf32>
    %161 = tpu.matmul %160, %148, %cst_64 {dimension_numbers = #tpu.dot_dimension_numbers<[2], [1], [1], [2], [0, 0, 0, 1, 1, 2], [0], [0]>} : vector<4x8x8xbf16>, vector<4x8x16xbf16>, vector<4x8x16xf32> -> vector<4x8x16xf32>
    %162 = arith.truncf %161 : vector<4x8x16xf32> to vector<4x8x16xbf16>
    %cst_65 = arith.constant dense<0.000000e+00> : vector<4x8x64xf32>
    %163 = tpu.matmul %162, %122, %cst_65 {dimension_numbers = #tpu.dot_dimension_numbers<[2], [1], [1], [2], [0, 0, 0, 1, 1, 2], [0], [0]>} : vector<4x8x16xbf16>, vector<4x16x64xbf16>, vector<4x8x64xf32> -> vector<4x8x64xf32>
    %cst_66 = arith.constant dense<0.000000e+00> : vector<8x64xf32>
    %164 = vector.multi_reduction <add>, %163, %cst_66 [0] : vector<4x8x64xf32> to vector<8x64xf32>
    %165 = vector.broadcast %129 : vector<1x64xf32> to vector<8x64xf32>
    %166 = arith.addf %164, %165 : vector<8x64xf32>
    %167 = arith.addf %116, %166 : vector<8x64xf32>
    %cst_67 = arith.constant dense<0.000000e+00> : vector<8xf32>
    %168 = vector.multi_reduction <add>, %167, %cst_67 [1] : vector<8x64xf32> to vector<8xf32>
    %169 = vector.shape_cast %168 : vector<8xf32> to vector<8x1xf32>
    %cst_68 = arith.constant 6.400000e+01 : f32
    %170 = vector.broadcast %cst_68 : f32 to vector<8x1xf32>
    %171 = arith.divf %169, %170 : vector<8x1xf32>
    %172 = vector.broadcast %171 : vector<8x1xf32> to vector<8x64xf32>
    %173 = arith.subf %167, %172 : vector<8x64xf32>
    %174 = arith.mulf %173, %173 : vector<8x64xf32>
    %cst_69 = arith.constant dense<0.000000e+00> : vector<8xf32>
    %175 = vector.multi_reduction <add>, %174, %cst_69 [1] : vector<8x64xf32> to vector<8xf32>
    %176 = vector.shape_cast %175 : vector<8xf32> to vector<8x1xf32>
    %cst_70 = arith.constant 6.400000e+01 : f32
    %177 = vector.broadcast %cst_70 : f32 to vector<8x1xf32>
    %178 = arith.divf %176, %177 : vector<8x1xf32>
    %179 = vector.broadcast %171 : vector<8x1xf32> to vector<8x64xf32>
    %180 = arith.subf %167, %179 : vector<8x64xf32>
    %cst_71 = arith.constant 9.99999974E-6 : f32
    %181 = vector.broadcast %cst_71 : f32 to vector<8x1xf32>
    %182 = arith.addf %178, %181 : vector<8x1xf32>
    %183 = math.rsqrt %182 : vector<8x1xf32>
    %184 = vector.broadcast %183 : vector<8x1xf32> to vector<8x64xf32>
    %185 = arith.mulf %180, %184 : vector<8x64xf32>
    %186 = vector.broadcast %130 : vector<1x64xf32> to vector<8x64xf32>
    %187 = arith.mulf %185, %186 : vector<8x64xf32>
    %188 = vector.broadcast %131 : vector<1x64xf32> to vector<8x64xf32>
    %189 = arith.addf %187, %188 : vector<8x64xf32>
    %190 = arith.truncf %189 : vector<8x64xf32> to vector<8x64xbf16>
    %cst_72 = arith.constant dense<0.000000e+00> : vector<8x128xf32>
    %191 = tpu.matmul %190, %125, %cst_72 {dimension_numbers = #tpu.dot_dimension_numbers<[1], [0], [0], [1], [0, 0, 1, 1], [], []>} : vector<8x64xbf16>, vector<64x128xbf16>, vector<8x128xf32> -> vector<8x128xf32>
    %192 = vector.broadcast %134 : vector<1x128xf32> to vector<8x128xf32>
    %193 = arith.addf %191, %192 : vector<8x128xf32>
    %cst_73 = arith.constant 0.000000e+00 : f32
    %194 = vector.broadcast %cst_73 : f32 to vector<8x128xf32>
    %195 = arith.maximumf %193, %194 : vector<8x128xf32>
    %196 = arith.truncf %195 : vector<8x128xf32> to vector<8x128xbf16>
    %cst_74 = arith.constant dense<0.000000e+00> : vector<8x64xf32>
    %197 = tpu.matmul %196, %126, %cst_74 {dimension_numbers = #tpu.dot_dimension_numbers<[1], [0], [0], [1], [0, 0, 1, 1], [], []>} : vector<8x128xbf16>, vector<128x64xbf16>, vector<8x64xf32> -> vector<8x64xf32>
    %198 = vector.broadcast %135 : vector<1x64xf32> to vector<8x64xf32>
    %199 = arith.addf %197, %198 : vector<8x64xf32>
    %200 = arith.addf %189, %199 : vector<8x64xf32>
    %cst_75 = arith.constant dense<0.000000e+00> : vector<8xf32>
    %201 = vector.multi_reduction <add>, %200, %cst_75 [1] : vector<8x64xf32> to vector<8xf32>
    %202 = vector.shape_cast %201 : vector<8xf32> to vector<8x1xf32>
    %cst_76 = arith.constant 6.400000e+01 : f32
    %203 = vector.broadcast %cst_76 : f32 to vector<8x1xf32>
    %204 = arith.divf %202, %203 : vector<8x1xf32>
    %205 = vector.broadcast %204 : vector<8x1xf32> to vector<8x64xf32>
    %206 = arith.subf %200, %205 : vector<8x64xf32>
    %207 = arith.mulf %206, %206 : vector<8x64xf32>
    %cst_77 = arith.constant dense<0.000000e+00> : vector<8xf32>
    %208 = vector.multi_reduction <add>, %207, %cst_77 [1] : vector<8x64xf32> to vector<8xf32>
    %209 = vector.shape_cast %208 : vector<8xf32> to vector<8x1xf32>
    %cst_78 = arith.constant 6.400000e+01 : f32
    %210 = vector.broadcast %cst_78 : f32 to vector<8x1xf32>
    %211 = arith.divf %209, %210 : vector<8x1xf32>
    %212 = vector.broadcast %204 : vector<8x1xf32> to vector<8x64xf32>
    %213 = arith.subf %200, %212 : vector<8x64xf32>
    %cst_79 = arith.constant 9.99999974E-6 : f32
    %214 = vector.broadcast %cst_79 : f32 to vector<8x1xf32>
    %215 = arith.addf %211, %214 : vector<8x1xf32>
    %216 = math.rsqrt %215 : vector<8x1xf32>
    %217 = vector.broadcast %216 : vector<8x1xf32> to vector<8x64xf32>
    %218 = arith.mulf %213, %217 : vector<8x64xf32>
    %219 = vector.broadcast %132 : vector<1x64xf32> to vector<8x64xf32>
    %220 = arith.mulf %218, %219 : vector<8x64xf32>
    %221 = vector.broadcast %133 : vector<1x64xf32> to vector<8x64xf32>
    %222 = arith.addf %220, %221 : vector<8x64xf32>
    %c2 = arith.constant 2 : index
    %c0_80 = arith.constant 0 : index
    %c0_81 = arith.constant 0 : index
    %c0_82 = arith.constant 0 : index
    %223 = vector.load %arg3[%c2, %c0_80, %c0_81, %c0_82] : memref<3x12x64x16xbf16, #tpu.memory_space<vmem>>, vector<1x12x64x16xbf16>
    %224 = vector.shape_cast %223 : vector<1x12x64x16xbf16> to vector<12x64x16xbf16>
    %c2_83 = arith.constant 2 : index
    %c0_84 = arith.constant 0 : index
    %c0_85 = arith.constant 0 : index
    %c0_86 = arith.constant 0 : index
    %225 = vector.load %arg4[%c2_83, %c0_84, %c0_85, %c0_86] : memref<3x12x1x16xf32, #tpu.memory_space<vmem>>, vector<1x12x1x16xf32>
    %226 = vector.shape_cast %225 : vector<1x12x1x16xf32> to vector<12x1x16xf32>
    %c2_87 = arith.constant 2 : index
    %c0_88 = arith.constant 0 : index
    %c0_89 = arith.constant 0 : index
    %c0_90 = arith.constant 0 : index
    %227 = vector.load %arg5[%c2_87, %c0_88, %c0_89, %c0_90] : memref<3x4x16x64xbf16, #tpu.memory_space<vmem>>, vector<1x4x16x64xbf16>
    %228 = vector.shape_cast %227 : vector<1x4x16x64xbf16> to vector<4x16x64xbf16>
    %c2_91 = arith.constant 2 : index
    %c0_92 = arith.constant 0 : index
    %c0_93 = arith.constant 0 : index
    %229 = vector.load %arg6[%c2_91, %c0_92, %c0_93] : memref<3x192x128xbf16, #tpu.memory_space<vmem>>, vector<1x192x128xbf16>
    %230 = vector.shape_cast %229 : vector<1x192x128xbf16> to vector<192x128xbf16>
    %231 = vector.extract_strided_slice %230 {offsets = [0, 0], sizes = [64, 128], strides = [1, 1]} : vector<192x128xbf16> to vector<64x128xbf16>
    %232 = vector.extract_strided_slice %230 {offsets = [64, 0], sizes = [128, 64], strides = [1, 1]} : vector<192x128xbf16> to vector<128x64xbf16>
    %c2_94 = arith.constant 2 : index
    %c0_95 = arith.constant 0 : index
    %c0_96 = arith.constant 0 : index
    %233 = vector.load %arg7[%c2_94, %c0_95, %c0_96] : memref<3x8x128xf32, #tpu.memory_space<vmem>>, vector<1x8x128xf32>
    %234 = vector.shape_cast %233 : vector<1x8x128xf32> to vector<8x128xf32>
    %235 = vector.extract_strided_slice %234 {offsets = [0, 0], sizes = [1, 64], strides = [1, 1]} : vector<8x128xf32> to vector<1x64xf32>
    %236 = vector.extract_strided_slice %234 {offsets = [1, 0], sizes = [1, 64], strides = [1, 1]} : vector<8x128xf32> to vector<1x64xf32>
    %237 = vector.extract_strided_slice %234 {offsets = [2, 0], sizes = [1, 64], strides = [1, 1]} : vector<8x128xf32> to vector<1x64xf32>
    %238 = vector.extract_strided_slice %234 {offsets = [3, 0], sizes = [1, 64], strides = [1, 1]} : vector<8x128xf32> to vector<1x64xf32>
    %239 = vector.extract_strided_slice %234 {offsets = [4, 0], sizes = [1, 64], strides = [1, 1]} : vector<8x128xf32> to vector<1x64xf32>
    %240 = vector.extract_strided_slice %234 {offsets = [5, 0], sizes = [1, 128], strides = [1, 1]} : vector<8x128xf32> to vector<1x128xf32>
    %241 = vector.extract_strided_slice %234 {offsets = [6, 0], sizes = [1, 64], strides = [1, 1]} : vector<8x128xf32> to vector<1x64xf32>
    %242 = arith.truncf %222 : vector<8x64xf32> to vector<8x64xbf16>
    %243 = vector.shape_cast %242 : vector<8x64xbf16> to vector<1x8x64xbf16>
    %244 = vector.shape_cast %243 : vector<1x8x64xbf16> to vector<1x8x64xbf16>
    %245 = vector.broadcast %244 : vector<1x8x64xbf16> to vector<12x8x64xbf16>
    %cst_97 = arith.constant dense<0.000000e+00> : vector<12x8x16xf32>
    %246 = tpu.matmul %245, %224, %cst_97 {dimension_numbers = #tpu.dot_dimension_numbers<[2], [1], [1], [2], [0, 0, 0, 1, 1, 2], [0], [0]>} : vector<12x8x64xbf16>, vector<12x64x16xbf16>, vector<12x8x16xf32> -> vector<12x8x16xf32>
    %247 = vector.broadcast %226 : vector<12x1x16xf32> to vector<12x8x16xf32>
    %248 = arith.addf %246, %247 : vector<12x8x16xf32>
    %249 = vector.extract_strided_slice %248 {offsets = [0, 0, 0], sizes = [4, 8, 16], strides = [1, 1, 1]} : vector<12x8x16xf32> to vector<4x8x16xf32>
    %250 = arith.truncf %249 : vector<4x8x16xf32> to vector<4x8x16xbf16>
    %251 = vector.extract_strided_slice %248 {offsets = [4, 0, 0], sizes = [4, 8, 16], strides = [1, 1, 1]} : vector<12x8x16xf32> to vector<4x8x16xf32>
    %252 = arith.truncf %251 : vector<4x8x16xf32> to vector<4x8x16xbf16>
    %253 = vector.extract_strided_slice %248 {offsets = [8, 0, 0], sizes = [4, 8, 16], strides = [1, 1, 1]} : vector<12x8x16xf32> to vector<4x8x16xf32>
    %254 = arith.truncf %253 : vector<4x8x16xf32> to vector<4x8x16xbf16>
    %cst_98 = arith.constant dense<0.000000e+00> : vector<4x8x8xf32>
    %255 = tpu.matmul %250, %252, %cst_98 {dimension_numbers = #tpu.dot_dimension_numbers<[2], [2], [1], [1], [0, 0, 0, 1, 1, 1], [0], [0]>} : vector<4x8x16xbf16>, vector<4x8x16xbf16>, vector<4x8x8xf32> -> vector<4x8x8xf32>
    %cst_99 = arith.constant dense<0xFF800000> : vector<4x8xf32>
    %256 = vector.multi_reduction <maximumf>, %255, %cst_99 [2] : vector<4x8x8xf32> to vector<4x8xf32>
    %257 = vector.shape_cast %256 : vector<4x8xf32> to vector<4x8x1xf32>
    %258 = vector.broadcast %257 : vector<4x8x1xf32> to vector<4x8x8xf32>
    %259 = arith.subf %255, %258 : vector<4x8x8xf32>
    %260 = math.exp %259 : vector<4x8x8xf32>
    %cst_100 = arith.constant dense<0.000000e+00> : vector<4x8xf32>
    %261 = vector.multi_reduction <add>, %260, %cst_100 [2] : vector<4x8x8xf32> to vector<4x8xf32>
    %262 = vector.shape_cast %261 : vector<4x8xf32> to vector<4x8x1xf32>
    %263 = tpu.reciprocal %262 {approx = true} : vector<4x8x1xf32> -> vector<4x8x1xf32>
    %264 = vector.broadcast %263 : vector<4x8x1xf32> to vector<4x8x8xf32>
    %265 = arith.mulf %260, %264 : vector<4x8x8xf32>
    %266 = arith.truncf %265 : vector<4x8x8xf32> to vector<4x8x8xbf16>
    %cst_101 = arith.constant dense<0.000000e+00> : vector<4x8x16xf32>
    %267 = tpu.matmul %266, %254, %cst_101 {dimension_numbers = #tpu.dot_dimension_numbers<[2], [1], [1], [2], [0, 0, 0, 1, 1, 2], [0], [0]>} : vector<4x8x8xbf16>, vector<4x8x16xbf16>, vector<4x8x16xf32> -> vector<4x8x16xf32>
    %268 = arith.truncf %267 : vector<4x8x16xf32> to vector<4x8x16xbf16>
    %cst_102 = arith.constant dense<0.000000e+00> : vector<4x8x64xf32>
    %269 = tpu.matmul %268, %228, %cst_102 {dimension_numbers = #tpu.dot_dimension_numbers<[2], [1], [1], [2], [0, 0, 0, 1, 1, 2], [0], [0]>} : vector<4x8x16xbf16>, vector<4x16x64xbf16>, vector<4x8x64xf32> -> vector<4x8x64xf32>
    %cst_103 = arith.constant dense<0.000000e+00> : vector<8x64xf32>
    %270 = vector.multi_reduction <add>, %269, %cst_103 [0] : vector<4x8x64xf32> to vector<8x64xf32>
    %271 = vector.broadcast %235 : vector<1x64xf32> to vector<8x64xf32>
    %272 = arith.addf %270, %271 : vector<8x64xf32>
    %273 = arith.addf %222, %272 : vector<8x64xf32>
    %cst_104 = arith.constant dense<0.000000e+00> : vector<8xf32>
    %274 = vector.multi_reduction <add>, %273, %cst_104 [1] : vector<8x64xf32> to vector<8xf32>
    %275 = vector.shape_cast %274 : vector<8xf32> to vector<8x1xf32>
    %cst_105 = arith.constant 6.400000e+01 : f32
    %276 = vector.broadcast %cst_105 : f32 to vector<8x1xf32>
    %277 = arith.divf %275, %276 : vector<8x1xf32>
    %278 = vector.broadcast %277 : vector<8x1xf32> to vector<8x64xf32>
    %279 = arith.subf %273, %278 : vector<8x64xf32>
    %280 = arith.mulf %279, %279 : vector<8x64xf32>
    %cst_106 = arith.constant dense<0.000000e+00> : vector<8xf32>
    %281 = vector.multi_reduction <add>, %280, %cst_106 [1] : vector<8x64xf32> to vector<8xf32>
    %282 = vector.shape_cast %281 : vector<8xf32> to vector<8x1xf32>
    %cst_107 = arith.constant 6.400000e+01 : f32
    %283 = vector.broadcast %cst_107 : f32 to vector<8x1xf32>
    %284 = arith.divf %282, %283 : vector<8x1xf32>
    %285 = vector.broadcast %277 : vector<8x1xf32> to vector<8x64xf32>
    %286 = arith.subf %273, %285 : vector<8x64xf32>
    %cst_108 = arith.constant 9.99999974E-6 : f32
    %287 = vector.broadcast %cst_108 : f32 to vector<8x1xf32>
    %288 = arith.addf %284, %287 : vector<8x1xf32>
    %289 = math.rsqrt %288 : vector<8x1xf32>
    %290 = vector.broadcast %289 : vector<8x1xf32> to vector<8x64xf32>
    %291 = arith.mulf %286, %290 : vector<8x64xf32>
    %292 = vector.broadcast %236 : vector<1x64xf32> to vector<8x64xf32>
    %293 = arith.mulf %291, %292 : vector<8x64xf32>
    %294 = vector.broadcast %237 : vector<1x64xf32> to vector<8x64xf32>
    %295 = arith.addf %293, %294 : vector<8x64xf32>
    %296 = arith.truncf %295 : vector<8x64xf32> to vector<8x64xbf16>
    %cst_109 = arith.constant dense<0.000000e+00> : vector<8x128xf32>
    %297 = tpu.matmul %296, %231, %cst_109 {dimension_numbers = #tpu.dot_dimension_numbers<[1], [0], [0], [1], [0, 0, 1, 1], [], []>} : vector<8x64xbf16>, vector<64x128xbf16>, vector<8x128xf32> -> vector<8x128xf32>
    %298 = vector.broadcast %240 : vector<1x128xf32> to vector<8x128xf32>
    %299 = arith.addf %297, %298 : vector<8x128xf32>
    %cst_110 = arith.constant 0.000000e+00 : f32
    %300 = vector.broadcast %cst_110 : f32 to vector<8x128xf32>
    %301 = arith.maximumf %299, %300 : vector<8x128xf32>
    %302 = arith.truncf %301 : vector<8x128xf32> to vector<8x128xbf16>
    %cst_111 = arith.constant dense<0.000000e+00> : vector<8x64xf32>
    %303 = tpu.matmul %302, %232, %cst_111 {dimension_numbers = #tpu.dot_dimension_numbers<[1], [0], [0], [1], [0, 0, 1, 1], [], []>} : vector<8x128xbf16>, vector<128x64xbf16>, vector<8x64xf32> -> vector<8x64xf32>
    %304 = vector.broadcast %241 : vector<1x64xf32> to vector<8x64xf32>
    %305 = arith.addf %303, %304 : vector<8x64xf32>
    %306 = arith.addf %295, %305 : vector<8x64xf32>
    %cst_112 = arith.constant dense<0.000000e+00> : vector<8xf32>
    %307 = vector.multi_reduction <add>, %306, %cst_112 [1] : vector<8x64xf32> to vector<8xf32>
    %308 = vector.shape_cast %307 : vector<8xf32> to vector<8x1xf32>
    %cst_113 = arith.constant 6.400000e+01 : f32
    %309 = vector.broadcast %cst_113 : f32 to vector<8x1xf32>
    %310 = arith.divf %308, %309 : vector<8x1xf32>
    %311 = vector.broadcast %310 : vector<8x1xf32> to vector<8x64xf32>
    %312 = arith.subf %306, %311 : vector<8x64xf32>
    %313 = arith.mulf %312, %312 : vector<8x64xf32>
    %cst_114 = arith.constant dense<0.000000e+00> : vector<8xf32>
    %314 = vector.multi_reduction <add>, %313, %cst_114 [1] : vector<8x64xf32> to vector<8xf32>
    %315 = vector.shape_cast %314 : vector<8xf32> to vector<8x1xf32>
    %cst_115 = arith.constant 6.400000e+01 : f32
    %316 = vector.broadcast %cst_115 : f32 to vector<8x1xf32>
    %317 = arith.divf %315, %316 : vector<8x1xf32>
    %318 = vector.broadcast %310 : vector<8x1xf32> to vector<8x64xf32>
    %319 = arith.subf %306, %318 : vector<8x64xf32>
    %cst_116 = arith.constant 9.99999974E-6 : f32
    %320 = vector.broadcast %cst_116 : f32 to vector<8x1xf32>
    %321 = arith.addf %317, %320 : vector<8x1xf32>
    %322 = math.rsqrt %321 : vector<8x1xf32>
    %323 = vector.broadcast %322 : vector<8x1xf32> to vector<8x64xf32>
    %324 = arith.mulf %319, %323 : vector<8x64xf32>
    %325 = vector.broadcast %238 : vector<1x64xf32> to vector<8x64xf32>
    %326 = arith.mulf %324, %325 : vector<8x64xf32>
    %327 = vector.broadcast %239 : vector<1x64xf32> to vector<8x64xf32>
    %328 = arith.addf %326, %327 : vector<8x64xf32>
    %329 = arith.truncf %328 : vector<8x64xf32> to vector<8x64xbf16>
    %cst_117 = arith.constant dense<0.000000e+00> : vector<8x128xf32>
    %330 = tpu.matmul %329, %2, %cst_117 {dimension_numbers = #tpu.dot_dimension_numbers<[1], [0], [0], [1], [0, 0, 1, 1], [], []>} : vector<8x64xbf16>, vector<64x128xbf16>, vector<8x128xf32> -> vector<8x128xf32>
    %331 = vector.broadcast %5 : vector<1x128xf32> to vector<8x128xf32>
    %332 = arith.addf %330, %331 : vector<8x128xf32>
    %c0_118 = arith.constant 0 : index
    %c0_119 = arith.constant 0 : index
    %333 = vector.load %arg8[%c0_118, %c0_119] : memref<8x128xf32, #tpu.memory_space<vmem>>, vector<8x128xf32>
    tpu.vector_store %arg8[%c0_118, %c0_119], %332 {strides = array<i32>} : memref<8x128xf32, #tpu.memory_space<vmem>>, vector<8x128xf32>,
    return
  }
}

</mosaic_0001>

<bundles_post_ra>
// kernel: transformer_forward.1
= control target key start
LH: loop header
LB: loop body
LE: loop exit
PB: predicated region body
PF: predicated region fallthrough
CT: control target
= control target key end

     0   :  { %v7620_v0 = vmov 0.0   ;;  %vm7621_vm0 = vmmov 0   ;;  %vm53_vm1 = vcmask 130048   ;;  %v43_v12 = vlaneseq  ;;  %s9065_s1 = inlined_call_operand.vmem [shape: bf16[80,128], index: 1, kind: input, shape index: {}]   ;;  %s9066_s0 = inlined_call_operand.vmem [shape: f32[8,16], index: 0, kind: input, shape index: {}]   ;;  %s9067_s3 = inlined_call_operand.vmem [shape: bf16[3,12,64,16], index: 3, kind: input, shape index: {}]   ;;  %s9068_s2 = inlined_call_operand.vmem [shape: f32[2,128], index: 2, kind: input, shape index: {}]   ;;  %s9069_s4 = inlined_call_operand.vmem [shape: f32[3,12,1,16], index: 4, kind: input, shape index: {}]   ;;  %s9070_s5 = inlined_call_operand.vmem [shape: bf16[3,4,16,64], index: 5, kind: input, shape index: {}]   ;;  %s9071_s7 = inlined_call_operand.vmem [shape: f32[3,8,128], index: 7, kind: input, shape index: {}]   ;;  %s9072_s6 = inlined_call_operand.vmem [shape: bf16[3,192,128], index: 6, kind: input, shape index: {}]   ;;  %s9073_s8 = inlined_call_operand.vmem [shape: f32[8,128], index: 8, kind: output, shape index: {}]  }
   0x1   :  { %6598 = vmatprep.subr.bf16.mxu0 %v7620_v0  ;;  %v7362_v1 = vld [vmem:[%s9065_s1] sm:$0xff]   ;;  %6600 = vmatprep.mubr.msk.bf16.mxu0 %vm7621_vm0, %v7620_v0  ;;  %v7363_v4 = vld [vmem:[%s9067_s3 + $0x18] sm:$0xff]   ;;  %v7365_v6 = vld [vmem:[%s9067_s3 + $0x10] sm:$0xff]   ;;  %vm335_vm2 = vcmask 523264   ;;  %vm1331_vm3 = vcmask 1043456   ;;  %vm1279_vm4 = vcmask 64512  }
   0x2   :  { %v41_v2 = vld [vmem:[%s9066_s0] sm:$0xff]  ;;  %6604 = vmatprep.subr.bf16.mxu1 %v7620_v0  ;;  %6612 = vmatprep.mubr.msk.bf16.mxu1 %vm7621_vm0, %v7620_v0  ;;  %v7364_v5 = vld [vmem:[%s9067_s3 + $0x38] sm:$0xff]   ;;  %v7366_v7 = vld [vmem:[%s9067_s3 + $0x30] sm:$0xff]   ;;  %v7715_v13 = vshrl.u32 %v43_v12, 7 }
   0x3   :  { %6599 = vmatpush3.bf16.msra.mxu0 %v7362_v1  ;;  %v42_v3 = vpack.c.bf16 %v41_v2, %v41_v2  ;;  %6605 = vmatpush3.bf16.msra.mxu1 %v7363_v4  ;;  %v7367_v8 = vld [vmem:[%s9067_s3 + $0x8] sm:$0xff]   ;;  %v7369_v10 = vld [vmem:[%s9067_s3] sm:$0xff]   ;;  %v7371_v20 = vld [vmem:[%s9067_s3 + $0x58] sm:$0xff]  }
   0x4   :  { %6616 = vmatprep.subr.bf16.mxu0 %v7620_v0  ;;  %6606 = vmatprep.subr.bf16.mxu1 %v7620_v0  ;;  %v7368_v9 = vld [vmem:[%s9067_s3 + $0x28] sm:$0xff]   ;;  %v7370_v11 = vld [vmem:[%s9067_s3 + $0x20] sm:$0xff]   ;;  %v7718_v14 = vsub.s32 0, %v7715_v13  ;;  %v7372_v21 = vld [vmem:[%s9067_s3 + $0x78] sm:$0xff]  }
   0x5   :  { %v40_v15 = vld [vmem:[%s9068_s2] sm:$0x3]  ;;  %v7373_v25 = vld [vmem:[%s9067_s3 + $0x50] sm:$0xff]   ;;  %v7375_v27 = vld [vmem:[%s9067_s3 + $0x48] sm:$0xff]  }
   0x6   :  { %6601 = vmatmul.mubr.msk.bf16.vlgmr.msra.gmra.mxu0 %vm53_vm1, %v42_v3  ;;  %v46_v16 = vrot.slane %v40_v15, %v7718_v14  ;;  %v7374_v26 = vld [vmem:[%s9067_s3 + $0x70] sm:$0xff]   ;;  %v7376_v28 = vld [vmem:[%s9067_s3 + $0x68] sm:$0xff]   ;;  %v7377_v29 = vld [vmem:[%s9067_s3 + $0x40] sm:$0xff]  }
   0x7   :  { %6617 = vmatpush3.bf16.msra.mxu0 %v7364_v5  ;;  %6624 = vmatprep.mubr.msk.bf16.mxu0 %vm7621_vm0, %v7620_v0  ;;  %v7378_v30 = vld [vmem:[%s9067_s3 + $0x60] sm:$0xff]   ;;  %v7379_v31 = vld [vmem:[%s9067_s3 + $0x98] sm:$0xff]   ;;  %v7381_v33 = vld [vmem:[%s9067_s3 + $0x90] sm:$0xff]  }
   0x8   :  { %6618 = vmatprep.subr.bf16.mxu0 %v7620_v0  ;;  %6607 = vmatpush3.bf16.msra.mxu1 %v7365_v6  ;;  %v7380_v32 = vld [vmem:[%s9067_s3 + $0xb8] sm:$0xff]   ;;  %v7382_v34 = vld [vmem:[%s9067_s3 + $0xb0] sm:$0xff]   ;;  %v7383_v35 = vld [vmem:[%s9067_s3 + $0x88] sm:$0xff]  }
   0x9   :  { %6608 = vmatprep.subr.bf16.mxu1 %v7620_v0  ;;  %v7384_v36 = vld [vmem:[%s9067_s3 + $0xa8] sm:$0xff]   ;;  %v7385_v37 = vld [vmem:[%s9067_s3 + $0x80] sm:$0xff]   ;;  %v7387_v39 = vld [vmem:[%s9067_s3 + $0xd8] sm:$0xff]  }
   0xa   :  { %v7386_v38 = vld [vmem:[%s9067_s3 + $0xa0] sm:$0xff]   ;;  %v7388_v40 = vld [vmem:[%s9067_s3 + $0xf8] sm:$0xff]   ;;  %v7389_v41 = vld [vmem:[%s9067_s3 + $0xd0] sm:$0xff]  }
   0xb   :  { %6619 = vmatpush3.bf16.msra.mxu0 %v7366_v7  ;;  %v7390_v42 = vld [vmem:[%s9067_s3 + $0xf0] sm:$0xff]   ;;  %v7391_v43 = vld [vmem:[%s9067_s3 + $0xc8] sm:$0xff]   ;;  %v7393_v45 = vld [vmem:[%s9067_s3 + $0xc0] sm:$0xff]  }
   0xc   :  { %6620 = vmatprep.subr.bf16.mxu0 %v7620_v0  ;;  %6609 = vmatpush3.bf16.msra.mxu1 %v7367_v8  ;;  %v7392_v44 = vld [vmem:[%s9067_s3 + $0xe8] sm:$0xff]   ;;  %v7394_v46 = vld [vmem:[%s9067_s3 + $0xe0] sm:$0xff]   ;;  %v7395_v47 = vld [vmem:[%s9067_s3 + $0x118] sm:$0xff]  }
   0xd   :  { %6610 = vmatprep.subr.bf16.mxu1 %v7620_v0  ;;  %v7396_v48 = vld [vmem:[%s9067_s3 + $0x138] sm:$0xff]   ;;  %v7397_v49 = vld [vmem:[%s9067_s3 + $0x110] sm:$0xff]   ;;  %v7399_v51 = vld [vmem:[%s9067_s3 + $0x108] sm:$0xff]  }
   0xe   :  { %v7398_v50 = vld [vmem:[%s9067_s3 + $0x130] sm:$0xff]   ;;  %v7400_v52 = vld [vmem:[%s9067_s3 + $0x128] sm:$0xff]   ;;  %v7401_v53 = vld [vmem:[%s9067_s3 + $0x100] sm:$0xff]  }
   0xf   :  { %6621 = vmatpush3.bf16.msra.mxu0 %v7368_v9  ;;  %v7402_v54 = vld [vmem:[%s9067_s3 + $0x120] sm:$0xff]   ;;  %v7403_v55 = vld [vmem:[%s9067_s3 + $0x158] sm:$0xff]   ;;  %v7405_v57 = vld [vmem:[%s9067_s3 + $0x150] sm:$0xff]  }
  0x10   :  { %6622 = vmatprep.subr.bf16.mxu0 %v7620_v0  ;;  %6611 = vmatpush3.bf16.msra.mxu1 %v7369_v10  ;;  %v7404_v56 = vld [vmem:[%s9067_s3 + $0x178] sm:$0xff]   ;;  %v7406_v58 = vld [vmem:[%s9067_s3 + $0x170] sm:$0xff]   ;;  %v7407_v59 = vld [vmem:[%s9067_s3 + $0x148] sm:$0xff]  }
  0x11   :  { %6628 = vmatprep.subr.bf16.mxu1 %v7620_v0  ;;  %v7408_v60 = vld [vmem:[%s9067_s3 + $0x168] sm:$0xff]   ;;  %v7409_v61 = vld [vmem:[%s9067_s3 + $0x140] sm:$0xff]  }
  0x12   :  { %v7410_v62 = vld [vmem:[%s9067_s3 + $0x160] sm:$0xff]  }
  0x13   :  { %6623 = vmatpush3.bf16.msra.mxu0 %v7370_v11 }
  0x14   :  { %6640 = vmatprep.subr.bf16.mxu0 %v7620_v0 }
  0xc6   :  { %v91_v17 = vpop.f32.mrf.mxu0 }
  0xc7   :  { %v7724_v18 = vadd.f32 %v91_v17, %v46_v16 }
  0xc8   :  { %v6602_v19 = vpop.f32.mrf.mxu0 }
  0xc9   :  { %v7734_v22 = vpack.c.bf16 %v7724_v18, %v7724_v18  ;;  %v5711_v19 = vld [vmem:[%s9069_s4 + $0x4] ss:$0 sm:$0xff] }
  0xca   :  { %v94_v23 = vpop.f32.mrf.mxu0 }
  0xcb   :  { %6613 = vmatmul.mubr.msk.bf16.vlgmr.msra.gmra.mxu1 %vm335_vm2, %v7734_v22  ;;  %6625 = vmatmul.mubr.msk.bf16.vlgmr.msra.gmra.mxu0 %vm335_vm2, %v7734_v22 }
  0xcc   :  { %6629 = vmatpush3.bf16.msra.mxu1 %v7371_v20  ;;  %6641 = vmatpush3.bf16.msra.mxu0 %v7372_v21  ;;  %v6603_v24 = vpop.f32.mrf.mxu0  ;;  %v5712_v20 = vld [vmem:[%s9069_s4 + $0x5] ss:$0 sm:$0xff] }
  0xcd   :  { %6630 = vmatprep.subr.bf16.mxu1 %v7620_v0  ;;  %6642 = vmatprep.subr.bf16.mxu0 %v7620_v0 }
  0xce   :  { %6636 = vmatprep.mubr.msk.bf16.mxu1 %vm7621_vm0, %v7620_v0  ;;  %6648 = vmatprep.mubr.msk.bf16.mxu0 %vm7621_vm0, %v7620_v0 }
  0xd0   :  { %6631 = vmatpush3.bf16.msra.mxu1 %v7373_v25  ;;  %6643 = vmatpush3.bf16.msra.mxu0 %v7374_v26 }
  0xd1   :  { %6632 = vmatprep.subr.bf16.mxu1 %v7620_v0  ;;  %6644 = vmatprep.subr.bf16.mxu0 %v7620_v0 }
  0xd4   :  { %6633 = vmatpush3.bf16.msra.mxu1 %v7375_v27  ;;  %6645 = vmatpush3.bf16.msra.mxu0 %v7376_v28 }
  0xd5   :  { %6634 = vmatprep.subr.bf16.mxu1 %v7620_v0  ;;  %6646 = vmatprep.subr.bf16.mxu0 %v7620_v0 }
  0xd8   :  { %6635 = vmatpush3.bf16.msra.mxu1 %v7377_v29  ;;  %6647 = vmatpush3.bf16.msra.mxu0 %v7378_v30  ;;  %v5707_v29 = vld [vmem:[%s9069_s4] ss:$0 sm:$0xff]  ;;  %v5708_v30 = vld [vmem:[%s9069_s4 + $0x1] ss:$0 sm:$0xff] }
  0xd9   :  { %6652 = vmatprep.subr.bf16.mxu1 %v7620_v0  ;;  %6664 = vmatprep.subr.bf16.mxu0 %v7620_v0 }
  0xdb   :  { %6637 = vmatmul.mubr.msk.bf16.vlgmr.msra.gmra.mxu1 %vm335_vm2, %v7734_v22  ;;  %6649 = vmatmul.mubr.msk.bf16.vlgmr.msra.gmra.mxu0 %vm335_vm2, %v7734_v22 }
  0xdc   :  { %6653 = vmatpush3.bf16.msra.mxu1 %v7379_v31  ;;  %6665 = vmatpush3.bf16.msra.mxu0 %v7380_v32 }
  0xdd   :  { %6654 = vmatprep.subr.bf16.mxu1 %v7620_v0  ;;  %6666 = vmatprep.subr.bf16.mxu0 %v7620_v0 }
  0xde   :  { %6660 = vmatprep.mubr.msk.bf16.mxu1 %vm7621_vm0, %v7620_v0  ;;  %6672 = vmatprep.mubr.msk.bf16.mxu0 %vm7621_vm0, %v7620_v0 }
  0xe0   :  { %6655 = vmatpush3.bf16.msra.mxu1 %v7381_v33  ;;  %6667 = vmatpush3.bf16.msra.mxu0 %v7382_v34 }
  0xe1   :  { %6656 = vmatprep.subr.bf16.mxu1 %v7620_v0  ;;  %6668 = vmatprep.subr.bf16.mxu0 %v7620_v0 }
  0xe4   :  { %6657 = vmatpush3.bf16.msra.mxu1 %v7383_v35  ;;  %6669 = vmatpush3.bf16.msra.mxu0 %v7384_v36 }
  0xe5   :  { %6658 = vmatprep.subr.bf16.mxu1 %v7620_v0  ;;  %6670 = vmatprep.subr.bf16.mxu0 %v7620_v0 }
  0xe8   :  { %6659 = vmatpush3.bf16.msra.mxu1 %v7385_v37  ;;  %6671 = vmatpush3.bf16.msra.mxu0 %v7386_v38 }
  0xe9   :  { %6676 = vmatprep.subr.bf16.mxu1 %v7620_v0  ;;  %6688 = vmatprep.subr.bf16.mxu0 %v7620_v0 }
  0xeb   :  { %6661 = vmatmul.mubr.msk.bf16.vlgmr.msra.gmra.mxu1 %vm335_vm2, %v7734_v22  ;;  %6673 = vmatmul.mubr.msk.bf16.vlgmr.msra.gmra.mxu0 %vm335_vm2, %v7734_v22 }
  0xec   :  { %6677 = vmatpush3.bf16.msra.mxu1 %v7387_v39  ;;  %6689 = vmatpush3.bf16.msra.mxu0 %v7388_v40 }
  0xed   :  { %6678 = vmatprep.subr.bf16.mxu1 %v7620_v0  ;;  %6690 = vmatprep.subr.bf16.mxu0 %v7620_v0 }
  0xee   :  { %6684 = vmatprep.mubr.msk.bf16.mxu1 %vm7621_vm0, %v7620_v0  ;;  %6696 = vmatprep.mubr.msk.bf16.mxu0 %vm7621_vm0, %v7620_v0 }
  0xf0   :  { %6679 = vmatpush3.bf16.msra.mxu1 %v7389_v41  ;;  %6691 = vmatpush3.bf16.msra.mxu0 %v7390_v42  ;;  %v5713_v41 = vld [vmem:[%s9069_s4 + $0x6] ss:$0 sm:$0xff]  ;;  %v5714_v42 = vld [vmem:[%s9069_s4 + $0x7] ss:$0 sm:$0xff] }
  0xf1   :  { %6680 = vmatprep.subr.bf16.mxu1 %v7620_v0  ;;  %6692 = vmatprep.subr.bf16.mxu0 %v7620_v0 }
  0xf4   :  { %6681 = vmatpush3.bf16.msra.mxu1 %v7391_v43  ;;  %6693 = vmatpush3.bf16.msra.mxu0 %v7392_v44 }
  0xf5   :  { %6682 = vmatprep.subr.bf16.mxu1 %v7620_v0  ;;  %6694 = vmatprep.subr.bf16.mxu0 %v7620_v0 }
  0xf8   :  { %6683 = vmatpush3.bf16.msra.mxu1 %v7393_v45  ;;  %6695 = vmatpush3.bf16.msra.mxu0 %v7394_v46 }
  0xf9   :  { %6700 = vmatprep.subr.bf16.mxu1 %v7620_v0  ;;  %6712 = vmatprep.subr.bf16.mxu0 %v7620_v0 }
  0xfb   :  { %6685 = vmatmul.mubr.msk.bf16.vlgmr.msra.gmra.mxu1 %vm335_vm2, %v7734_v22  ;;  %6697 = vmatmul.mubr.msk.bf16.vlgmr.msra.gmra.mxu0 %vm335_vm2, %v7734_v22 }
  0xfc   :  { %6701 = vmatpush3.bf16.msra.mxu1 %v7395_v47  ;;  %6713 = vmatpush3.bf16.msra.mxu0 %v7396_v48 }
  0xfd   :  { %6702 = vmatprep.subr.bf16.mxu1 %v7620_v0  ;;  %6714 = vmatprep.subr.bf16.mxu0 %v7620_v0 }
  0xfe   :  { %6708 = vmatprep.mubr.msk.bf16.mxu1 %vm7621_vm0, %v7620_v0  ;;  %6720 = vmatprep.mubr.msk.bf16.mxu0 %vm7621_vm0, %v7620_v0 }
 0x100   :  { %6703 = vmatpush3.bf16.msra.mxu1 %v7397_v49  ;;  %6715 = vmatpush3.bf16.msra.mxu0 %v7398_v50 }
 0x101   :  { %6704 = vmatprep.subr.bf16.mxu1 %v7620_v0  ;;  %6716 = vmatprep.subr.bf16.mxu0 %v7620_v0 }
 0x104   :  { %6705 = vmatpush3.bf16.msra.mxu1 %v7399_v51  ;;  %6717 = vmatpush3.bf16.msra.mxu0 %v7400_v52  ;;  %v5709_v51 = vld [vmem:[%s9069_s4 + $0x2] ss:$0 sm:$0xff]  ;;  %v5710_v52 = vld [vmem:[%s9069_s4 + $0x3] ss:$0 sm:$0xff] }
 0x105   :  { %6706 = vmatprep.subr.bf16.mxu1 %v7620_v0  ;;  %6718 = vmatprep.subr.bf16.mxu0 %v7620_v0 }
 0x108   :  { %6707 = vmatpush3.bf16.msra.mxu1 %v7401_v53  ;;  %6719 = vmatpush3.bf16.msra.mxu0 %v7402_v54 }
 0x109   :  { %6724 = vmatprep.subr.bf16.mxu1 %v7620_v0  ;;  %6736 = vmatprep.subr.bf16.mxu0 %v7620_v0 }
 0x10b   :  { %6709 = vmatmul.mubr.msk.bf16.vlgmr.msra.gmra.mxu1 %vm335_vm2, %v7734_v22  ;;  %6721 = vmatmul.mubr.msk.bf16.vlgmr.msra.gmra.mxu0 %vm335_vm2, %v7734_v22 }
 0x10c   :  { %6725 = vmatpush3.bf16.msra.mxu1 %v7403_v55  ;;  %6737 = vmatpush3.bf16.msra.mxu0 %v7404_v56 }
 0x10d   :  { %6726 = vmatprep.subr.bf16.mxu1 %v7620_v0  ;;  %6738 = vmatprep.subr.bf16.mxu0 %v7620_v0 }
 0x10e   :  { %6732 = vmatprep.mubr.msk.bf16.mxu1 %vm7621_vm0, %v7620_v0  ;;  %6744 = vmatprep.mubr.msk.bf16.mxu0 %vm7621_vm0, %v7620_v0 }
 0x110   :  { %6727 = vmatpush3.bf16.msra.mxu1 %v7405_v57  ;;  %6739 = vmatpush3.bf16.msra.mxu0 %v7406_v58 }
 0x111   :  { %6728 = vmatprep.subr.bf16.mxu1 %v7620_v0  ;;  %6740 = vmatprep.subr.bf16.mxu0 %v7620_v0 }
 0x114   :  { %6729 = vmatpush3.bf16.msra.mxu1 %v7407_v59  ;;  %6741 = vmatpush3.bf16.msra.mxu0 %v7408_v60 }
 0x115   :  { %6730 = vmatprep.subr.bf16.mxu1 %v7620_v0  ;;  %6742 = vmatprep.subr.bf16.mxu0 %v7620_v0 }
 0x118   :  { %6731 = vmatpush3.bf16.msra.mxu1 %v7409_v61  ;;  %6743 = vmatpush3.bf16.msra.mxu0 %v7410_v62 }
 0x119   :  { %6748 = vmatprep.subr.bf16.mxu1 %v7620_v0  ;;  %6754 = vmatprep.subr.bf16.mxu0 %v7620_v0 }
 0x11b   :  { %6733 = vmatmul.mubr.msk.bf16.vlgmr.msra.gmra.mxu1 %vm335_vm2, %v7734_v22  ;;  %6745 = vmatmul.mubr.msk.bf16.vlgmr.msra.gmra.mxu0 %vm335_vm2, %v7734_v22 }
 0x11c   :  { %6750 = vmatprep.mubr.msk.bf16.mxu1 %vm7621_vm0, %v7620_v0  ;;  %6756 = vmatprep.mubr.msk.bf16.mxu0 %vm7621_vm0, %v7620_v0 }
 0x18b   :  { %v373_v63 = vpop.f32.mrf.mxu1  ;;  %v437_v1 = vpop.f32.mrf.mxu0 }
 0x18c   :  { %v374_v37 = vadd.f32 %v5707_v29, %v373_v63  ;;  %v438_v38 = vadd.f32 %v5708_v30, %v437_v1  ;;  %v5715_v63 = vld [vmem:[%s9069_s4 + $0x8] ss:$0 sm:$0xff]  ;;  %v5716_v1 = vld [vmem:[%s9069_s4 + $0x9] ss:$0 sm:$0xff] }
 0x18d   :  { %v6614_v2 = vpop.f32.mrf.mxu1  ;;  %v6626_v3 = vpop.f32.mrf.mxu0 }
 0x18e   :  { %v1083_v39 = vpack.c.bf16 %v374_v37, %v374_v37  ;;  %v1084_v40 = vpack.c.bf16 %v438_v38, %v438_v38 }
 0x18f   :  { %v376_v4 = vpop.f32.mrf.mxu1  ;;  %v440_v5 = vpop.f32.mrf.mxu0 }
 0x191   :  { %v6615_v6 = vpop.f32.mrf.mxu1  ;;  %v6627_v7 = vpop.f32.mrf.mxu0 }
 0x19b   :  { %v501_v8 = vpop.f32.mrf.mxu1  ;;  %v565_v9 = vpop.f32.mrf.mxu0 }
 0x19c   :  { %v502_v59 = vadd.f32 %v5709_v51, %v501_v8  ;;  %v566_v60 = vadd.f32 %v5710_v52, %v565_v9 }
 0x19d   :  { %v6638_v10 = vpop.f32.mrf.mxu1  ;;  %v6650_v11 = vpop.f32.mrf.mxu0 }
 0x19e   :  { %v1085_v61 = vpack.c.bf16 %v502_v59, %v502_v59  ;;  %v1086_v62 = vpack.c.bf16 %v566_v60, %v566_v60 }
 0x19f   :  { %v504_v12 = vpop.f32.mrf.mxu1  ;;  %v568_v15 = vpop.f32.mrf.mxu0 }
 0x1a1   :  { %v6639_v16 = vpop.f32.mrf.mxu1  ;;  %v6651_v17 = vpop.f32.mrf.mxu0 }
 0x1ab   :  { %v629_v21 = vpop.f32.mrf.mxu1  ;;  %v693_v22 = vpop.f32.mrf.mxu0 }
 0x1ac   :  { %v630_v23 = vadd.f32 %v5711_v19, %v629_v21  ;;  %v694_v24 = vadd.f32 %v5712_v20, %v693_v22 }
 0x1ad   :  { %v6662_v25 = vpop.f32.mrf.mxu1  ;;  %v6674_v26 = vpop.f32.mrf.mxu0 }
 0x1ae   :  { %v1087_v27 = vpack.c.bf16 %v630_v23, %v630_v23  ;;  %v1088_v28 = vpack.c.bf16 %v694_v24, %v694_v24 }
 0x1af   :  { %v632_v31 = vpop.f32.mrf.mxu1  ;;  %v696_v32 = vpop.f32.mrf.mxu0 }
 0x1b0   :  { %v1099_v33 = vsel %vm53_vm1, %v1087_v27, 0  ;;  %v1145_v34 = vsel %vm53_vm1, %v1088_v28, 0 }
 0x1b1   :  { %v6663_v35 = vpop.f32.mrf.mxu1  ;;  %v6675_v36 = vpop.f32.mrf.mxu0  ;;  %6749 = vmatpush3.bf16.xpose.msra.mxu1 %v1099_v33  ;;  %6755 = vmatpush3.bf16.xpose.msra.mxu0 %v1145_v34 }
 0x1b2   :  { %6760 = vmatprep.subr.bf16.mxu1 %v7620_v0  ;;  %6766 = vmatprep.subr.bf16.mxu0 %v7620_v0 }
 0x1b8   :  { %6751 = vmatmul.mubr.msk.bf16.vlgmr.msra.gmra.mxu1 %vm53_vm1, %v1083_v39  ;;  %6757 = vmatmul.mubr.msk.bf16.vlgmr.msra.gmra.mxu0 %vm53_vm1, %v1084_v40 }
 0x1b9   :  { %6762 = vmatprep.mubr.msk.bf16.mxu1 %vm7621_vm0, %v7620_v0  ;;  %6768 = vmatprep.mubr.msk.bf16.mxu0 %vm7621_vm0, %v7620_v0 }
 0x1bb   :  { %v757_v43 = vpop.f32.mrf.mxu1  ;;  %v821_v44 = vpop.f32.mrf.mxu0 }
 0x1bc   :  { %v758_v45 = vadd.f32 %v5713_v41, %v757_v43  ;;  %v822_v46 = vadd.f32 %v5714_v42, %v821_v44 }
 0x1bd   :  { %v6686_v47 = vpop.f32.mrf.mxu1  ;;  %v6698_v48 = vpop.f32.mrf.mxu0 }
 0x1be   :  { %v1089_v49 = vpack.c.bf16 %v758_v45, %v758_v45  ;;  %v1090_v50 = vpack.c.bf16 %v822_v46, %v822_v46 }
 0x1bf   :  { %v760_v53 = vpop.f32.mrf.mxu1  ;;  %v824_v54 = vpop.f32.mrf.mxu0 }
 0x1c0   :  { %v1191_v55 = vsel %vm53_vm1, %v1089_v49, 0  ;;  %v1237_v56 = vsel %vm53_vm1, %v1090_v50, 0 }
 0x1c1   :  { %v6687_v57 = vpop.f32.mrf.mxu1  ;;  %v6699_v58 = vpop.f32.mrf.mxu0  ;;  %6761 = vmatpush3.bf16.xpose.msra.mxu1 %v1191_v55  ;;  %6767 = vmatpush3.bf16.xpose.msra.mxu0 %v1237_v56 }
 0x1c2   :  { %6772 = vmatprep.subr.bf16.mxu1 %v7620_v0  ;;  %6778 = vmatprep.subr.bf16.mxu0 %v7620_v0 }
 0x1c8   :  { %6763 = vmatmul.mubr.msk.bf16.vlgmr.msra.gmra.mxu1 %vm53_vm1, %v1085_v61  ;;  %6769 = vmatmul.mubr.msk.bf16.vlgmr.msra.gmra.mxu0 %vm53_vm1, %v1086_v62 }
 0x1c9   :  { %6774 = vmatprep.mubr.msk.bf16.mxu1 %vm7621_vm0, %v7620_v0  ;;  %6780 = vmatprep.mubr.msk.bf16.mxu0 %vm7621_vm0, %v7620_v0 }
 0x1cb   :  { %v885_v2 = vpop.f32.mrf.mxu1  ;;  %v949_v3 = vpop.f32.mrf.mxu0 }
 0x1cc   :  { %v886_v4 = vadd.f32 %v5715_v63, %v885_v2  ;;  %v950_v5 = vadd.f32 %v5716_v1, %v949_v3 }
 0x1cd   :  { %v6710_v6 = vpop.f32.mrf.mxu1  ;;  %v6722_v7 = vpop.f32.mrf.mxu0 }
 0x1ce   :  { %v1091_v8 = vpack.c.bf16 %v886_v4, %v886_v4  ;;  %v1092_v9 = vpack.c.bf16 %v950_v5, %v950_v5  ;;  %v5717_v6 = vld [vmem:[%s9069_s4 + $0xa] ss:$0 sm:$0xff] }
 0x1cf   :  { %v888_v10 = vpop.f32.mrf.mxu1  ;;  %v952_v11 = vpop.f32.mrf.mxu0 }
 0x1d0   :  { %v1333_v12 = vsel %vm1331_vm3, %v1091_v8, 0  ;;  %v1379_v15 = vsel %vm1331_vm3, %v1092_v9, 0  ;;  %v5718_v8 = vld [vmem:[%s9069_s4 + $0xb] ss:$0 sm:$0xff] }
 0x1d1   :  { %v6711_v16 = vpop.f32.mrf.mxu1  ;;  %v6723_v17 = vpop.f32.mrf.mxu0  ;;  %6773 = vmatpush3.bf16.msra.mxu1 %v1333_v12  ;;  %6779 = vmatpush3.bf16.msra.mxu0 %v1379_v15 }
 0x1d2   :  { %6784 = vmatprep.subr.bf16.mxu1 %v7620_v0  ;;  %6790 = vmatprep.subr.bf16.mxu0 %v7620_v0 }
 0x1db   :  { %v7992_v19 = vpop.f32.mrf.mxu1  ;;  %v7994_v20 = vpop.f32.mrf.mxu0 }
 0x1dc   :  { %v1014_v7 = vadd.f32 %v5717_v6, %v7992_v19  ;;  %v1078_v11 = vadd.f32 %v5718_v8, %v7994_v20 }
 0x1dd   :  { %v6734_v21 = vpop.f32.mrf.mxu1  ;;  %v6746_v22 = vpop.f32.mrf.mxu0 }
 0x1de   :  { %v1093_v10 = vpack.c.bf16 %v1014_v7, %v1014_v7  ;;  %v1094_v22 = vpack.c.bf16 %v1078_v11, %v1078_v11 }
 0x1df   :  { %v1016_v23 = vpop.f32.mrf.mxu1  ;;  %v1080_v24 = vpop.f32.mrf.mxu0 }
 0x1e0   :  { %v1425_v21 = vsel %vm1331_vm3, %v1093_v10, 0  ;;  %v1471_v20 = vsel %vm1331_vm3, %v1094_v22, 0 }
 0x1e1   :  { %v6735_v25 = vpop.f32.mrf.mxu1  ;;  %v6747_v26 = vpop.f32.mrf.mxu0 }
 0x278   :  { %v1135_v27 = vpop.f32.mrf.mxu1  ;;  %v1181_v28 = vpop.f32.mrf.mxu0 }
 0x279   :  { %v1280_v29 = vsel %vm1279_vm4, %v1135_v27, -inf  ;;  %v1283_v34 = vsel %vm1279_vm4, %v1181_v28, -inf }
 0x27a   :  { %1281 = vmax.xlane.f32.xlu0 %v1280_v29  ;;  %v6752_v30 = vpop.f32.mrf.mxu1  ;;  %v6758_v31 = vpop.f32.mrf.mxu0 }
 0x27b   :  { %v7411_v31 = vld [vmem:[%s9070_s5] sm:$0xff]  }
 0x27c   :  { %v1138_v32 = vpop.f32.mrf.mxu1  ;;  %v1184_v33 = vpop.f32.mrf.mxu0 }
 0x27d   :  { %v7412_v32 = vld [vmem:[%s9070_s5 + $0x8] sm:$0xff]  }
 0x27e   :  { %v6753_v35 = vpop.f32.mrf.mxu1  ;;  %1284 = vmax.xlane.f32.xlu0 %v1283_v34  ;;  %v6759_v36 = vpop.f32.mrf.mxu0  ;;  %v7413_v34 = vld [vmem:[%s9070_s5 + $0x10] sm:$0xff]  }
 0x288   :  { %v1227_v37 = vpop.f32.mrf.mxu1  ;;  %v1273_v38 = vpop.f32.mrf.mxu0 }
 0x289   :  { %v1286_v39 = vsel %vm1279_vm4, %v1227_v37, -inf  ;;  %v1289_v44 = vsel %vm1279_vm4, %v1273_v38, -inf }
 0x28a   :  { %1287 = vmax.xlane.f32.xlu1 %v1286_v39  ;;  %v6764_v40 = vpop.f32.mrf.mxu1  ;;  %v6770_v41 = vpop.f32.mrf.mxu0  ;;  %v7414_v39 = vld [vmem:[%s9070_s5 + $0x18] sm:$0xff]  }
 0x28c   :  { %v1230_v42 = vpop.f32.mrf.mxu1  ;;  %v1276_v43 = vpop.f32.mrf.mxu0 }
 0x28e   :  { %v6765_v45 = vpop.f32.mrf.mxu1  ;;  %1290 = vmax.xlane.f32.xlu1 %v1289_v44  ;;  %v6771_v46 = vpop.f32.mrf.mxu0 }
 0x303   :  { %v1282_v47 = vpop.xlane.xlu0 %1281 }
 0x304   :  { %v1292_v48 = vsub.f32 %v1135_v27, %v1282_v47 }
 0x306   :  { %v1296_v49 = vmul.f32 1.442695, %v1292_v48 }
 0x307   :  { %v1285_v50 = vpop.xlane.xlu0 %1284 }
 0x308   :  { %7559 = vpow2.f32 %v1296_v49  ;;  %v1293_v51 = vsub.f32 %v1181_v28, %v1285_v50 }
 0x30a   :  { %v1298_v52 = vmul.f32 1.442695, %v1293_v51 }
 0x30c   :  { %7561 = vpow2.f32 %v1298_v52 }
 0x313   :  { %v1288_v53 = vpop.xlane.xlu1 %1287 }
 0x314   :  { %v1294_v54 = vsub.f32 %v1227_v37, %v1288_v53 }
 0x315   :  { %v7560_v55 = vpop.eup %7559 }
 0x316   :  { %v1300_v56 = vmul.f32 1.442695, %v1294_v54  ;;  %v1304_v57 = vsel %vm1279_vm4, %v7560_v55, 0.0 }
 0x317   :  { %1305 = vadd.xlane.f32.xlu0 %v1304_v57  ;;  %v1291_v58 = vpop.xlane.xlu1 %1290 }
 0x318   :  { %7563 = vpow2.f32 %v1300_v56  ;;  %v1295_v59 = vsub.f32 %v1273_v38, %v1291_v58 }
 0x319   :  { %v7562_v60 = vpop.eup %7561 }
 0x31a   :  { %v1302_v61 = vmul.f32 1.442695, %v1295_v59  ;;  %v1307_v62 = vsel %vm1279_vm4, %v7562_v60, 0.0 }
 0x31b   :  { %1308 = vadd.xlane.f32.xlu1 %v1307_v62 }
 0x31c   :  { %7565 = vpow2.f32 %v1302_v61 }
 0x325   :  { %v7564_v63 = vpop.eup %7563 }
 0x326   :  { %v1310_v1 = vsel %vm1279_vm4, %v7564_v63, 0.0 }
 0x327   :  { %1311 = vadd.xlane.f32.xlu0 %v1310_v1 }
 0x329   :  { %v7566_v2 = vpop.eup %7565 }
 0x32a   :  { %v1313_v3 = vsel %vm1279_vm4, %v7566_v2, 0.0 }
 0x32b   :  { %1314 = vadd.xlane.f32.xlu1 %v1313_v3 }
 0x3a0   :  { %v1306_v4 = vpop.xlane.xlu0 %1305 }
 0x3a1   :  { %7567 = vrcp.f32 %v1306_v4  ;;  %v8062_v4 = vld [vmem:[%s9071_s7] sm:$0xff] }
 0x3a2   :  { %v1723_v10 = vrot.slane %v8062_v4, %v7718_v14 }
 0x3a4   :  { %v1309_v5 = vpop.xlane.xlu1 %1308 }
 0x3a5   :  { %7569 = vrcp.f32 %v1309_v5 }
 0x3ae   :  { %v7568_v9 = vpop.eup %7567 }
 0x3af   :  { %v1320_v12 = vmul.f32 %v7568_v9, %v7560_v55 }
 0x3b0   :  { %v1312_v15 = vpop.xlane.xlu0 %1311 }
 0x3b1   :  { %7571 = vrcp.f32 %v1312_v15  ;;  %v1324_v16 = vpack.c.bf16 %v1320_v12, %v1320_v12 }
 0x3b2   :  { %v7570_v17 = vpop.eup %7569 }
 0x3b3   :  { %6775 = vmatmul.mubr.msk.bf16.vlgmr.msra.gmra.mxu1 %vm1279_vm4, %v1324_v16  ;;  %v1321_v23 = vmul.f32 %v7570_v17, %v7562_v60 }
 0x3b4   :  { %6785 = vmatpush3.bf16.msra.mxu1 %v1425_v21  ;;  %v1315_v19 = vpop.xlane.xlu1 %1314  ;;  %6786 = vmatprep.mubr.msk.bf16.mxu1 %vm7621_vm0, %v7620_v0 }
 0x3b5   :  { %7573 = vrcp.f32 %v1315_v19  ;;  %v1325_v24 = vpack.c.bf16 %v1321_v23, %v1321_v23  ;;  %6796 = vmatprep.subr.bf16.mxu1 %v7620_v0 }
 0x3b7   :  { %6781 = vmatmul.mubr.msk.bf16.vlgmr.msra.gmra.mxu0 %vm1279_vm4, %v1325_v24 }
 0x3b8   :  { %6791 = vmatpush3.bf16.msra.mxu0 %v1471_v20  ;;  %6792 = vmatprep.mubr.msk.bf16.mxu0 %vm7621_vm0, %v7620_v0 }
 0x3b9   :  { %6802 = vmatprep.subr.bf16.mxu0 %v7620_v0 }
 0x3be   :  { %v7572_v25 = vpop.eup %7571 }
 0x3bf   :  { %v1322_v26 = vmul.f32 %v7572_v25, %v7564_v63 }
 0x3c1   :  { %v1326_v27 = vpack.c.bf16 %v1322_v26, %v1322_v26 }
 0x3c2   :  { %v7574_v28 = vpop.eup %7573 }
 0x3c3   :  { %6787 = vmatmul.mubr.msk.bf16.vlgmr.msra.gmra.mxu1 %vm1279_vm4, %v1326_v27  ;;  %v1323_v29 = vmul.f32 %v7574_v28, %v7566_v2  ;;  %v7415_v28 = vld [vmem:[%s9072_s6 + $0x18] sm:$0xff]  }
 0x3c4   :  { %6798 = vmatprep.mubr.msk.bf16.mxu1 %vm7621_vm0, %v7620_v0  ;;  %6797 = vmatpush3.bf16.msra.mxu1 %v7411_v31  ;;  %v7419_v31 = vld [vmem:[%s9072_s6 + $0x58] sm:$0xff]  }
 0x3c5   :  { %v1327_v30 = vpack.c.bf16 %v1323_v29, %v1323_v29  ;;  %6808 = vmatprep.subr.bf16.mxu1 %v7620_v0  ;;  %v7417_v29 = vld [vmem:[%s9072_s6 + $0x8] sm:$0xff]  }
 0x3c7   :  { %6793 = vmatmul.mubr.msk.bf16.vlgmr.msra.gmra.mxu0 %vm1279_vm4, %v1327_v30  ;;  %v7418_v30 = vld [vmem:[%s9072_s6] sm:$0xff]  }
 0x3c8   :  { %6804 = vmatprep.mubr.msk.bf16.mxu0 %vm7621_vm0, %v7620_v0  ;;  %6803 = vmatpush3.bf16.msra.mxu0 %v7412_v32  ;;  %v7420_v32 = vld [vmem:[%s9072_s6 + $0x50] sm:$0xff]  }
 0x3c9   :  { %6814 = vmatprep.subr.bf16.mxu0 %v7620_v0 }
 0x473   :  { %v1369_v33 = vpop.f32.mrf.mxu1 }
 0x474   :  { %v1513_v35 = vpack.c.bf16 %v1369_v33, %v1369_v33  ;;  %v7421_v33 = vld [vmem:[%s9072_s6 + $0x48] sm:$0xff]  }
 0x475   :  { %v6776_v36 = vpop.f32.mrf.mxu1 }
 0x476   :  { %6799 = vmatmul.mubr.msk.bf16.vlgmr.msra.gmra.mxu1 %vm53_vm1, %v1513_v35  ;;  %v7423_v35 = vld [vmem:[%s9072_s6 + $0x38] sm:$0xff]   ;;  %v7424_v36 = vld [vmem:[%s9072_s6 + $0x30] sm:$0xff]  }
 0x477   :  { %v1372_v37 = vpop.f32.mrf.mxu1  ;;  %v1415_v38 = vpop.f32.mrf.mxu0  ;;  %6809 = vmatpush3.bf16.msra.mxu1 %v7413_v34  ;;  %6810 = vmatprep.mubr.msk.bf16.mxu1 %vm7621_vm0, %v7620_v0  ;;  %v7422_v34 = vld [vmem:[%s9072_s6 + $0x40] sm:$0xff]  }
 0x478   :  { %v1514_v40 = vpack.c.bf16 %v1415_v38, %v1415_v38  ;;  %6820 = vmatprep.subr.bf16.mxu1 %v7620_v0 }
 0x479   :  { %v6777_v41 = vpop.f32.mrf.mxu1  ;;  %v6782_v42 = vpop.f32.mrf.mxu0 }
 0x47a   :  { %6805 = vmatmul.mubr.msk.bf16.vlgmr.msra.gmra.mxu0 %vm53_vm1, %v1514_v40  ;;  %v8111_v40 = vsub.s32 1, %v7715_v13  ;;  %v8114_v41 = vsub.s32 2, %v7715_v13 }
 0x47b   :  { %v1418_v43 = vpop.f32.mrf.mxu0  ;;  %6815 = vmatpush3.bf16.msra.mxu0 %v7414_v39  ;;  %6816 = vmatprep.mubr.msk.bf16.mxu0 %vm7621_vm0, %v7620_v0 }
 0x47c   :  { %6832 = vmatprep.subr.bf16.mxu0 %v7620_v0  ;;  %v1743_v42 = vrot.slane %v8062_v4, %v8111_v40 }
 0x47d   :  { %v6783_v44 = vpop.f32.mrf.mxu0 }
 0x483   :  { %v1461_v45 = vpop.f32.mrf.mxu1 }
 0x484   :  { %v1515_v46 = vpack.c.bf16 %v1461_v45, %v1461_v45  ;;  %v1748_v45 = vrot.slane %v8062_v4, %v8114_v41 }
 0x485   :  { %v6788_v47 = vpop.f32.mrf.mxu1 }
 0x486   :  { %6811 = vmatmul.mubr.msk.bf16.vlgmr.msra.gmra.mxu1 %vm53_vm1, %v1515_v46 }
 0x487   :  { %v1464_v48 = vpop.f32.mrf.mxu1  ;;  %v1507_v49 = vpop.f32.mrf.mxu0  ;;  %6828 = vmatprep.mubr.msk.bf16.mxu1 %vm7621_vm0, %v7620_v0  ;;  %6821 = vmatpush3.bf16.msra.mxu1 %v7415_v28 }
 0x488   :  { %v1516_v50 = vpack.c.bf16 %v1507_v49, %v1507_v49  ;;  %6822 = vmatprep.subr.bf16.mxu1 %v7620_v0  ;;  %v7425_v49 = vld [vmem:[%s9072_s6 + $0x28] sm:$0xff]  }
 0x489   :  { %v6789_v51 = vpop.f32.mrf.mxu1  ;;  %v6794_v52 = vpop.f32.mrf.mxu0 }
 0x48a   :  { %6817 = vmatmul.mubr.msk.bf16.vlgmr.msra.gmra.mxu0 %vm53_vm1, %v1516_v50  ;;  %v7426_v50 = vld [vmem:[%s9072_s6 + $0x20] sm:$0xff]   ;;  %v8132_v51 = vsub.s32 5, %v7715_v13 }
 0x48b   :  { %v1510_v53 = vpop.f32.mrf.mxu0  ;;  %6848 = vmatprep.mubr.msk.bf16.mxu0 %vm7621_vm0, %v7620_v0  ;;  %6833 = vmatpush3.bf16.msra.mxu0 %v7419_v31 }
 0x48c   :  { %6834 = vmatprep.subr.bf16.mxu0 %v7620_v0  ;;  %v1754_v52 = vrot.slane %v8062_v4, %v8132_v51 }
 0x48d   :  { %v6795_v54 = vpop.f32.mrf.mxu0 }
 0x48f   :  { %6835 = vmatpush3.bf16.msra.mxu0 %v7420_v32 }
 0x490   :  { %6836 = vmatprep.subr.bf16.mxu0 %v7620_v0 }
 0x493   :  { %6837 = vmatpush3.bf16.msra.mxu0 %v7421_v33  ;;  %v7435_v33 = vld [vmem:[%s9067_s3 + $0x1b8] sm:$0xff]  }
 0x494   :  { %6838 = vmatprep.subr.bf16.mxu0 %v7620_v0 }
 0x497   :  { %6839 = vmatpush3.bf16.msra.mxu0 %v7422_v34 }
 0x498   :  { %6840 = vmatprep.subr.bf16.mxu0 %v7620_v0 }
 0x49b   :  { %6841 = vmatpush3.bf16.msra.mxu0 %v7423_v35  ;;  %v7438_v35 = vld [vmem:[%s9067_s3 + $0x210] sm:$0xff]  }
 0x49c   :  { %6842 = vmatprep.subr.bf16.mxu0 %v7620_v0 }
 0x49f   :  { %6843 = vmatpush3.bf16.msra.mxu0 %v7424_v36  ;;  %v7439_v36 = vld [vmem:[%s9067_s3 + $0x1a8] sm:$0xff]  }
 0x4a0   :  { %6844 = vmatprep.subr.bf16.mxu0 %v7620_v0 }
 0x4a3   :  { %6845 = vmatpush3.bf16.msra.mxu0 %v7425_v49  ;;  %v7450_v49 = vld [vmem:[%s9067_s3 + $0x240] sm:$0xff]  }
 0x4a4   :  { %6846 = vmatprep.subr.bf16.mxu0 %v7620_v0 }
 0x4a7   :  { %6847 = vmatpush3.bf16.msra.mxu0 %v7426_v50  ;;  %v7451_v50 = vld [vmem:[%s9067_s3 + $0x238] sm:$0xff]  }
 0x4a8   :  { %6876 = vmatprep.subr.bf16.mxu0 %v7620_v0 }
 0x536   :  { %v1560_v55 = vpop.f32.mrf.mxu1 }
 0x537   :  { %v1713_v2 = vsel %vm335_vm2, %v1560_v55, 0.0 }
 0x538   :  { %v6800_v56 = vpop.f32.mrf.mxu1 }
 0x53a   :  { %v1563_v57 = vpop.f32.mrf.mxu1  ;;  %v1609_v58 = vpop.f32.mrf.mxu0 }
 0x53b   :  { %v1714_v63 = vsel %vm335_vm2, %v1609_v58, 0.0 }
 0x53c   :  { %v6801_v59 = vpop.f32.mrf.mxu1  ;;  %v6806_v60 = vpop.f32.mrf.mxu0  ;;  %v1715_v5 = vadd.f32 %v1714_v63, %v1713_v2 }
 0x53d   :  { %v8139_v60 = vsub.s32 6, %v7715_v13 }
 0x53e   :  { %v1612_v61 = vpop.f32.mrf.mxu0 }
 0x53f   :  { %v1827_v61 = vrot.slane %v8062_v4, %v8139_v60 }
 0x540   :  { %v6807_v62 = vpop.f32.mrf.mxu0 }
 0x546   :  { %v1658_v1 = vpop.f32.mrf.mxu1 }
 0x547   :  { %v1716_v3 = vsel %vm335_vm2, %v1658_v1, 0.0 }
 0x548   :  { %v6812_v6 = vpop.f32.mrf.mxu1  ;;  %v1717_v7 = vadd.f32 %v1716_v3, %v1715_v5 }
 0x54a   :  { %v1661_v8 = vpop.f32.mrf.mxu1  ;;  %v1707_v9 = vpop.f32.mrf.mxu0 }
 0x54b   :  { %v1718_v11 = vsel %vm335_vm2, %v1707_v9, 0.0 }
 0x54c   :  { %v1719_v12 = vadd.f32 %v1718_v11, %v1717_v7  ;;  %v6813_v15 = vpop.f32.mrf.mxu1  ;;  %v6818_v16 = vpop.f32.mrf.mxu0 }
 0x54d   :  { %v7428_v15 = vld [vmem:[%s9067_s3 + $0x1d8] sm:$0xff]   ;;  %v7429_v16 = vld [vmem:[%s9067_s3 + $0x190] sm:$0xff]  }
 0x54e   :  { %v1724_v17 = vadd.f32 %v1723_v10, %v1719_v12  ;;  %v1710_v21 = vpop.f32.mrf.mxu0  ;;  %v7427_v12 = vld [vmem:[%s9067_s3 + $0x198] sm:$0xff]  }
 0x54f   :  { %v7431_v21 = vld [vmem:[%s9067_s3 + $0x188] sm:$0xff]  }
 0x550   :  { %v6819_v22 = vpop.f32.mrf.mxu0  ;;  %v1725_v23 = vadd.f32 %v1724_v17, %v7724_v18  ;;  %v7416_v18 = vld [vmem:[%s9072_s6 + $0x10] sm:$0xff]  }
 0x551   :  { %6823 = vmatpush3.bf16.msra.mxu1 %v7416_v18  ;;  %v7430_v17 = vld [vmem:[%s9067_s3 + $0x1d0] sm:$0xff]   ;;  %v7432_v22 = vld [vmem:[%s9067_s3 + $0x1c8] sm:$0xff]  }
 0x552   :  { %v1726_v19 = vsel %vm335_vm2, %v1725_v23, 0.0  ;;  %6824 = vmatprep.subr.bf16.mxu1 %v7620_v0 }
 0x553   :  { %1727 = vadd.xlane.f32.xlu0 %v1726_v19  ;;  %v7434_v19 = vld [vmem:[%s9067_s3 + $0x1c0] sm:$0xff]  }
 0x555   :  { %6825 = vmatpush3.bf16.msra.mxu1 %v7417_v29 }
 0x556   :  { %6826 = vmatprep.subr.bf16.mxu1 %v7620_v0 }
 0x559   :  { %6827 = vmatpush3.bf16.msra.mxu1 %v7418_v30 }
 0x55a   :  { %6852 = vmatprep.subr.bf16.mxu1 %v7620_v0 }
 0x5dc   :  { %v1728_v24 = vpop.xlane.xlu0 %1727 }
 0x5dd   :  { %v1730_v20 = vmul.f32 0.015625, %v1728_v24 }
 0x5df   :  { %v1731_v25 = vsub.f32 %v1725_v23, %v1730_v20  ;;  %v7433_v23 = vld [vmem:[%s9067_s3 + $0x180] sm:$0xff]  }
 0x5e1   :  { %v1732_v26 = vmul.f32 %v1731_v25, %v1731_v25 }
 0x5e3   :  { %v1733_v27 = vsel %vm335_vm2, %v1732_v26, 0.0  ;;  %v8178_v26 = vsub.s32 3, %v7715_v13 }
 0x5e4   :  { %1734 = vadd.xlane.f32.xlu1 %v1733_v27  ;;  %v8181_v27 = vsub.s32 4, %v7715_v13  ;;  %v7436_v13 = vld [vmem:[%s9067_s3 + $0x218] sm:$0xff]  }
 0x5e5   :  { %v1933_v28 = vrot.slane %v8062_v4, %v8178_v26 }
 0x5e6   :  { %v1938_v29 = vrot.slane %v8062_v4, %v8181_v27  ;;  %v7437_v4 = vld [vmem:[%s9067_s3 + $0x1b0] sm:$0xff]  }
 0x66d   :  { %v1735_v37 = vpop.xlane.xlu1 %1734 }
 0x66e   :  { %v1736_v38 = vmul.f32 0.015625, %v1735_v37  ;;  %v7440_v37 = vld [vmem:[%s9067_s3 + $0x208] sm:$0xff]  }
 0x670   :  { %v1737_v39 = vadd.f32 1e-05, %v1736_v38  ;;  %v7441_v38 = vld [vmem:[%s9067_s3 + $0x1a0] sm:$0xff]  }
 0x672   :  { %7575 = vrsqrt.f32 %v1737_v39  ;;  %v7442_v39 = vld [vmem:[%s9067_s3 + $0x200] sm:$0xff]  }
 0x67f   :  { %v7576_v43 = vpop.eup %7575 }
 0x680   :  { %v1739_v44 = vmul.f32 %v7576_v43, %v1731_v25  ;;  %v7444_v43 = vld [vmem:[%s9067_s3 + $0x258] sm:$0xff]  }
 0x682   :  { %v1744_v46 = vmul.f32 %v1743_v42, %v1739_v44  ;;  %v7443_v42 = vld [vmem:[%s9067_s3 + $0x1f8] sm:$0xff]   ;;  %v7445_v44 = vld [vmem:[%s9067_s3 + $0x1f0] sm:$0xff]  }
 0x684   :  { %v1749_v47 = vadd.f32 %v1748_v45, %v1744_v46  ;;  %v7446_v45 = vld [vmem:[%s9067_s3 + $0x250] sm:$0xff]   ;;  %v7447_v46 = vld [vmem:[%s9067_s3 + $0x1e8] sm:$0xff]  }
 0x686   :  { %v1750_v48 = vpack.c.bf16 %v1749_v47, %v1749_v47 }
 0x688   :  { %6829 = vmatmul.mubr.msk.bf16.vlgmr.msra.gmra.mxu1 %vm335_vm2, %v1750_v48  ;;  %v7449_v48 = vld [vmem:[%s9067_s3 + $0x1e0] sm:$0xff]  }
 0x689   :  { %6860 = vmatprep.mubr.msk.bf16.mxu1 %vm7621_vm0, %v7620_v0  ;;  %6853 = vmatpush3.bf16.msra.mxu1 %v7427_v12  ;;  %v7473_v12 = vld [vmem:[%s9067_s3 + $0x2e8] sm:$0xff]  }
 0x68a   :  { %6854 = vmatprep.subr.bf16.mxu1 %v7620_v0 }
 0x68d   :  { %6855 = vmatpush3.bf16.msra.mxu1 %v7429_v16 }
 0x68e   :  { %6856 = vmatprep.subr.bf16.mxu1 %v7620_v0 }
 0x691   :  { %6857 = vmatpush3.bf16.msra.mxu1 %v7431_v21 }
 0x692   :  { %6858 = vmatprep.subr.bf16.mxu1 %v7620_v0 }
 0x695   :  { %6859 = vmatpush3.bf16.msra.mxu1 %v7433_v23 }
 0x696   :  { %6864 = vmatprep.subr.bf16.mxu1 %v7620_v0 }
 0x748   :  { %v1816_v53 = vpop.f32.mrf.mxu1 }
 0x749   :  { %v1817_v54 = vadd.f32 %v1816_v53, %v1754_v52  ;;  %v7452_v52 = vld [vmem:[%s9067_s3 + $0x298] sm:$0xff]   ;;  %v7453_v53 = vld [vmem:[%s9067_s3 + $0x230] sm:$0xff]  }
 0x74a   :  { %v6830_v55 = vpop.f32.mrf.mxu1 }
 0x74b   :  { %v1822_v56 = vmax.f32 %v1817_v54, 0.0  ;;  %v7454_v54 = vld [vmem:[%s9067_s3 + $0x290] sm:$0xff]   ;;  %v7455_v55 = vld [vmem:[%s9067_s3 + $0x228] sm:$0xff]  }
 0x74c   :  { %v1819_v57 = vpop.f32.mrf.mxu1 }
 0x74d   :  { %v1823_v58 = vpack.c.bf16 %v1822_v56, %v1822_v56  ;;  %v7456_v56 = vld [vmem:[%s9067_s3 + $0x288] sm:$0xff]   ;;  %v7457_v57 = vld [vmem:[%s9067_s3 + $0x220] sm:$0xff]  }
 0x74e   :  { %v6831_v59 = vpop.f32.mrf.mxu1 }
 0x74f   :  { %6849 = vmatmul.mubr.bf16.vlgmr.msra.gmra.mxu0 %v1823_v58  ;;  %v7458_v58 = vld [vmem:[%s9067_s3 + $0x280] sm:$0xff]   ;;  %v7459_v59 = vld [vmem:[%s9067_s3 + $0x278] sm:$0xff]  }
 0x750   :  { %6884 = vmatprep.mubr.msk.bf16.mxu0 %vm7621_vm0, %v7620_v0  ;;  %6877 = vmatpush3.bf16.msra.mxu0 %v7428_v15  ;;  %v7474_v15 = vld [vmem:[%s9067_s3 + $0x2e0] sm:$0xff]  }
 0x751   :  { %6878 = vmatprep.subr.bf16.mxu0 %v7620_v0 }
 0x754   :  { %6879 = vmatpush3.bf16.msra.mxu0 %v7430_v17 }
 0x755   :  { %6880 = vmatprep.subr.bf16.mxu0 %v7620_v0 }
 0x758   :  { %6881 = vmatpush3.bf16.msra.mxu0 %v7432_v22 }
 0x759   :  { %6882 = vmatprep.subr.bf16.mxu0 %v7620_v0 }
 0x75c   :  { %6883 = vmatpush3.bf16.msra.mxu0 %v7434_v19 }
 0x75d   :  { %6900 = vmatprep.subr.bf16.mxu0 %v7620_v0 }
 0x80f   :  { %v1910_v62 = vpop.f32.mrf.mxu0 }
 0x810   :  { %v1911_v63 = vadd.f32 %v1910_v62, %v1827_v61  ;;  %v7460_v61 = vld [vmem:[%s9067_s3 + $0x2d8] sm:$0xff]   ;;  %v7461_v62 = vld [vmem:[%s9067_s3 + $0x270] sm:$0xff]  }
 0x811   :  { %v6850_v1 = vpop.f32.mrf.mxu0 }
 0x812   :  { %v1916_v2 = vadd.f32 %v1911_v63, %v1749_v47  ;;  %v7448_v47 = vld [vmem:[%s9067_s3 + $0x248] sm:$0xff]   ;;  %v7462_v63 = vld [vmem:[%s9067_s3 + $0x2d0] sm:$0xff]  }
 0x813   :  { %v1913_v3 = vpop.f32.mrf.mxu0  ;;  %v7463_v1 = vld [vmem:[%s9067_s3 + $0x268] sm:$0xff]  }
 0x814   :  { %v1917_v5 = vsel %vm335_vm2, %v1916_v2, 0.0  ;;  %v7465_v3 = vld [vmem:[%s9067_s3 + $0x260] sm:$0xff]  }
 0x815   :  { %1918 = vadd.xlane.f32.xlu0 %v1917_v5  ;;  %v6851_v6 = vpop.f32.mrf.mxu0  ;;  %v7466_v5 = vld [vmem:[%s9067_s3 + $0x2c0] sm:$0xff]  }
 0x816   :  { %v7467_v6 = vld [vmem:[%s9067_s3 + $0x2b8] sm:$0xff]  }
 0x89e   :  { %v1919_v7 = vpop.xlane.xlu0 %1918 }
 0x89f   :  { %v1920_v8 = vmul.f32 0.015625, %v1919_v7  ;;  %v7468_v7 = vld [vmem:[%s9067_s3 + $0x2b0] sm:$0xff]  }
 0x8a1   :  { %v1921_v9 = vsub.f32 %v1916_v2, %v1920_v8  ;;  %v7464_v2 = vld [vmem:[%s9067_s3 + $0x2c8] sm:$0xff]  }
 0x8a2   :  { %v7469_v8 = vld [vmem:[%s9067_s3 + $0x2a8] sm:$0xff]  }
 0x8a3   :  { %v1922_v10 = vmul.f32 %v1921_v9, %v1921_v9 }
 0x8a5   :  { %v1923_v11 = vsel %vm335_vm2, %v1922_v10, 0.0  ;;  %v7471_v10 = vld [vmem:[%s9067_s3 + $0x2f8] sm:$0xff]  }
 0x8a6   :  { %1924 = vadd.xlane.f32.xlu1 %v1923_v11  ;;  %v7472_v11 = vld [vmem:[%s9067_s3 + $0x2f0] sm:$0xff]  }
 0x92f   :  { %v1925_v24 = vpop.xlane.xlu1 %1924 }
 0x930   :  { %v1926_v20 = vmul.f32 0.015625, %v1925_v24 }
 0x932   :  { %v1927_v25 = vadd.f32 1e-05, %v1926_v20 }
 0x934   :  { %7577 = vrsqrt.f32 %v1927_v25  ;;  %v5953_v25 = vld [vmem:[%s9069_s4 + $0x10] ss:$0 sm:$0xff] }
 0x941   :  { %v7578_v18 = vpop.eup %7577 }
 0x942   :  { %v1929_v30 = vmul.f32 %v7578_v18, %v1921_v9  ;;  %v7470_v9 = vld [vmem:[%s9067_s3 + $0x2a0] sm:$0xff]  }
 0x944   :  { %v1934_v31 = vmul.f32 %v1933_v28, %v1929_v30 }
 0x946   :  { %v8187_v32 = vadd.f32 %v1938_v29, %v1934_v31 }
 0x948   :  { %v8197_v34 = vpack.c.bf16 %v8187_v32, %v8187_v32 }
 0x94a   :  { %6861 = vmatmul.mubr.msk.bf16.vlgmr.msra.gmra.mxu1 %vm335_vm2, %v8197_v34  ;;  %6885 = vmatmul.mubr.msk.bf16.vlgmr.msra.gmra.mxu0 %vm335_vm2, %v8197_v34 }
 0x94b   :  { %6865 = vmatpush3.bf16.msra.mxu1 %v7435_v33  ;;  %6901 = vmatpush3.bf16.msra.mxu0 %v7436_v13  ;;  %v5949_v13 = vld [vmem:[%s9069_s4 + $0xc] ss:$0 sm:$0xff] }
 0x94c   :  { %6866 = vmatprep.subr.bf16.mxu1 %v7620_v0  ;;  %6902 = vmatprep.subr.bf16.mxu0 %v7620_v0 }
 0x94d   :  { %6872 = vmatprep.mubr.msk.bf16.mxu1 %vm7621_vm0, %v7620_v0  ;;  %6908 = vmatprep.mubr.msk.bf16.mxu0 %vm7621_vm0, %v7620_v0 }
 0x94f   :  { %6867 = vmatpush3.bf16.msra.mxu1 %v7437_v4  ;;  %6903 = vmatpush3.bf16.msra.mxu0 %v7438_v35 }
 0x950   :  { %6868 = vmatprep.subr.bf16.mxu1 %v7620_v0  ;;  %6904 = vmatprep.subr.bf16.mxu0 %v7620_v0 }
 0x953   :  { %6869 = vmatpush3.bf16.msra.mxu1 %v7439_v36  ;;  %6905 = vmatpush3.bf16.msra.mxu0 %v7440_v37 }
 0x954   :  { %6870 = vmatprep.subr.bf16.mxu1 %v7620_v0  ;;  %6906 = vmatprep.subr.bf16.mxu0 %v7620_v0 }
 0x957   :  { %6871 = vmatpush3.bf16.msra.mxu1 %v7441_v38  ;;  %6907 = vmatpush3.bf16.msra.mxu0 %v7442_v39 }
 0x958   :  { %6888 = vmatprep.subr.bf16.mxu1 %v7620_v0  ;;  %6924 = vmatprep.subr.bf16.mxu0 %v7620_v0 }
 0x95a   :  { %6873 = vmatmul.mubr.msk.bf16.vlgmr.msra.gmra.mxu1 %vm335_vm2, %v8197_v34  ;;  %6909 = vmatmul.mubr.msk.bf16.vlgmr.msra.gmra.mxu0 %vm335_vm2, %v8197_v34 }
 0x95b   :  { %6889 = vmatpush3.bf16.msra.mxu1 %v7443_v42  ;;  %6925 = vmatpush3.bf16.msra.mxu0 %v7444_v43  ;;  %v5955_v42 = vld [vmem:[%s9069_s4 + $0x12] ss:$0 sm:$0xff] }
 0x95c   :  { %6890 = vmatprep.subr.bf16.mxu1 %v7620_v0  ;;  %6926 = vmatprep.subr.bf16.mxu0 %v7620_v0 }
 0x95d   :  { %6896 = vmatprep.mubr.msk.bf16.mxu1 %vm7621_vm0, %v7620_v0  ;;  %6932 = vmatprep.mubr.msk.bf16.mxu0 %vm7621_vm0, %v7620_v0 }
 0x95f   :  { %6891 = vmatpush3.bf16.msra.mxu1 %v7445_v44  ;;  %6927 = vmatpush3.bf16.msra.mxu0 %v7446_v45 }
 0x960   :  { %6892 = vmatprep.subr.bf16.mxu1 %v7620_v0  ;;  %6928 = vmatprep.subr.bf16.mxu0 %v7620_v0 }
 0x963   :  { %6893 = vmatpush3.bf16.msra.mxu1 %v7447_v46  ;;  %6929 = vmatpush3.bf16.msra.mxu0 %v7448_v47 }
 0x964   :  { %6894 = vmatprep.subr.bf16.mxu1 %v7620_v0  ;;  %6930 = vmatprep.subr.bf16.mxu0 %v7620_v0 }
 0x967   :  { %6895 = vmatpush3.bf16.msra.mxu1 %v7449_v48  ;;  %6931 = vmatpush3.bf16.msra.mxu0 %v7450_v49  ;;  %v5951_v49 = vld [vmem:[%s9069_s4 + $0xe] ss:$0 sm:$0xff] }
 0x968   :  { %6912 = vmatprep.subr.bf16.mxu1 %v7620_v0  ;;  %6948 = vmatprep.subr.bf16.mxu0 %v7620_v0 }
 0x96a   :  { %6897 = vmatmul.mubr.msk.bf16.vlgmr.msra.gmra.mxu1 %vm335_vm2, %v8197_v34  ;;  %6933 = vmatmul.mubr.msk.bf16.vlgmr.msra.gmra.mxu0 %vm335_vm2, %v8197_v34 }
 0x96b   :  { %6913 = vmatpush3.bf16.msra.mxu1 %v7451_v50  ;;  %6949 = vmatpush3.bf16.msra.mxu0 %v7452_v52 }
 0x96c   :  { %6914 = vmatprep.subr.bf16.mxu1 %v7620_v0  ;;  %6950 = vmatprep.subr.bf16.mxu0 %v7620_v0 }
 0x96d   :  { %6920 = vmatprep.mubr.msk.bf16.mxu1 %vm7621_vm0, %v7620_v0  ;;  %6956 = vmatprep.mubr.msk.bf16.mxu0 %vm7621_vm0, %v7620_v0 }
 0x96f   :  { %6915 = vmatpush3.bf16.msra.mxu1 %v7453_v53  ;;  %6951 = vmatpush3.bf16.msra.mxu0 %v7454_v54 }
 0x970   :  { %6916 = vmatprep.subr.bf16.mxu1 %v7620_v0  ;;  %6952 = vmatprep.subr.bf16.mxu0 %v7620_v0 }
 0x973   :  { %6917 = vmatpush3.bf16.msra.mxu1 %v7455_v55  ;;  %6953 = vmatpush3.bf16.msra.mxu0 %v7456_v56 }
 0x974   :  { %6918 = vmatprep.subr.bf16.mxu1 %v7620_v0  ;;  %6954 = vmatprep.subr.bf16.mxu0 %v7620_v0 }
 0x977   :  { %6919 = vmatpush3.bf16.msra.mxu1 %v7457_v57  ;;  %6955 = vmatpush3.bf16.msra.mxu0 %v7458_v58  ;;  %v5954_v58 = vld [vmem:[%s9069_s4 + $0x11] ss:$0 sm:$0xff] }
 0x978   :  { %6936 = vmatprep.subr.bf16.mxu1 %v7620_v0  ;;  %6972 = vmatprep.subr.bf16.mxu0 %v7620_v0 }
 0x97a   :  { %6921 = vmatmul.mubr.msk.bf16.vlgmr.msra.gmra.mxu1 %vm335_vm2, %v8197_v34  ;;  %6957 = vmatmul.mubr.msk.bf16.vlgmr.msra.gmra.mxu0 %vm335_vm2, %v8197_v34 }
 0x97b   :  { %6937 = vmatpush3.bf16.msra.mxu1 %v7459_v59  ;;  %6973 = vmatpush3.bf16.msra.mxu0 %v7460_v61  ;;  %v5957_v59 = vld [vmem:[%s9069_s4 + $0x14] ss:$0 sm:$0xff] }
 0x97c   :  { %6938 = vmatprep.subr.bf16.mxu1 %v7620_v0  ;;  %6974 = vmatprep.subr.bf16.mxu0 %v7620_v0 }
 0x97d   :  { %6944 = vmatprep.mubr.msk.bf16.mxu1 %vm7621_vm0, %v7620_v0  ;;  %6980 = vmatprep.mubr.msk.bf16.mxu0 %vm7621_vm0, %v7620_v0 }
 0x97f   :  { %6939 = vmatpush3.bf16.msra.mxu1 %v7461_v62  ;;  %6975 = vmatpush3.bf16.msra.mxu0 %v7462_v63 }
 0x980   :  { %6940 = vmatprep.subr.bf16.mxu1 %v7620_v0  ;;  %6976 = vmatprep.subr.bf16.mxu0 %v7620_v0 }
 0x983   :  { %6941 = vmatpush3.bf16.msra.mxu1 %v7463_v1  ;;  %6977 = vmatpush3.bf16.msra.mxu0 %v7464_v2 }
 0x984   :  { %6942 = vmatprep.subr.bf16.mxu1 %v7620_v0  ;;  %6978 = vmatprep.subr.bf16.mxu0 %v7620_v0 }
 0x987   :  { %6943 = vmatpush3.bf16.msra.mxu1 %v7465_v3  ;;  %6979 = vmatpush3.bf16.msra.mxu0 %v7466_v5 }
 0x988   :  { %6960 = vmatprep.subr.bf16.mxu1 %v7620_v0  ;;  %6996 = vmatprep.subr.bf16.mxu0 %v7620_v0 }
 0x98a   :  { %6945 = vmatmul.mubr.msk.bf16.vlgmr.msra.gmra.mxu1 %vm335_vm2, %v8197_v34  ;;  %6981 = vmatmul.mubr.msk.bf16.vlgmr.msra.gmra.mxu0 %vm335_vm2, %v8197_v34 }
 0x98b   :  { %6961 = vmatpush3.bf16.msra.mxu1 %v7467_v6  ;;  %6968 = vmatprep.mubr.msk.bf16.mxu1 %vm7621_vm0, %v7620_v0 }
 0x98c   :  { %6962 = vmatprep.subr.bf16.mxu1 %v7620_v0  ;;  %6998 = vmatprep.mubr.msk.bf16.mxu0 %vm7621_vm0, %v7620_v0 }
 0x98f   :  { %6963 = vmatpush3.bf16.msra.mxu1 %v7468_v7  ;;  %v5950_v7 = vld [vmem:[%s9069_s4 + $0xd] ss:$0 sm:$0xff] }
 0x990   :  { %6964 = vmatprep.subr.bf16.mxu1 %v7620_v0 }
 0x993   :  { %6965 = vmatpush3.bf16.msra.mxu1 %v7469_v8 }
 0x994   :  { %6966 = vmatprep.subr.bf16.mxu1 %v7620_v0 }
 0x997   :  { %6967 = vmatpush3.bf16.msra.mxu1 %v7470_v9 }
 0x998   :  { %6984 = vmatprep.subr.bf16.mxu1 %v7620_v0 }
 0x99a   :  { %6969 = vmatmul.mubr.msk.bf16.vlgmr.msra.gmra.mxu1 %vm335_vm2, %v8197_v34 }
 0x99b   :  { %6985 = vmatpush3.bf16.msra.mxu1 %v7471_v10  ;;  %6992 = vmatprep.mubr.msk.bf16.mxu1 %vm7621_vm0, %v7620_v0 }
 0x99c   :  { %6986 = vmatprep.subr.bf16.mxu1 %v7620_v0 }
 0x99f   :  { %6987 = vmatpush3.bf16.msra.mxu1 %v7472_v11 }
 0x9a0   :  { %6988 = vmatprep.subr.bf16.mxu1 %v7620_v0 }
 0x9a3   :  { %6989 = vmatpush3.bf16.msra.mxu1 %v7473_v12 }
 0x9a4   :  { %6990 = vmatprep.subr.bf16.mxu1 %v7620_v0 }
 0x9a7   :  { %6991 = vmatpush3.bf16.msra.mxu1 %v7474_v15 }
 0x9a8   :  { %7008 = vmatprep.subr.bf16.mxu1 %v7620_v0 }
 0x9aa   :  { %6993 = vmatmul.mubr.msk.bf16.vlgmr.msra.gmra.mxu1 %vm335_vm2, %v8197_v34 }
 0x9ab   :  { %7010 = vmatprep.mubr.msk.bf16.mxu1 %vm7621_vm0, %v7620_v0 }
 0xa0a   :  { %v2220_v16 = vpop.f32.mrf.mxu1  ;;  %v2348_v17 = vpop.f32.mrf.mxu0 }
 0xa0b   :  { %v2221_v38 = vadd.f32 %v5949_v13, %v2220_v16  ;;  %v2349_v56 = vadd.f32 %v5951_v49, %v2348_v17 }
 0xa0c   :  { %v6862_v21 = vpop.f32.mrf.mxu1  ;;  %v6886_v22 = vpop.f32.mrf.mxu0 }
 0xa0d   :  { %v2930_v39 = vpack.c.bf16 %v2221_v38, %v2221_v38  ;;  %v2932_v57 = vpack.c.bf16 %v2349_v56, %v2349_v56  ;;  %v5956_v21 = vld [vmem:[%s9069_s4 + $0x13] ss:$0 sm:$0xff] }
 0xa0e   :  { %v2223_v23 = vpop.f32.mrf.mxu1  ;;  %v2351_v19 = vpop.f32.mrf.mxu0 }
 0xa10   :  { %v6863_v24 = vpop.f32.mrf.mxu1  ;;  %v6887_v20 = vpop.f32.mrf.mxu0 }
 0xa1a   :  { %v2284_v28 = vpop.f32.mrf.mxu1  ;;  %v2476_v18 = vpop.f32.mrf.mxu0 }
 0xa1b   :  { %v2477_v29 = vadd.f32 %v5953_v25, %v2476_v18  ;;  %v2285_v16 = vadd.f32 %v5950_v7, %v2284_v28  ;;  %v5952_v28 = vld [vmem:[%s9069_s4 + $0xf] ss:$0 sm:$0xff] }
 0xa1c   :  { %v6874_v30 = vpop.f32.mrf.mxu1  ;;  %v6910_v31 = vpop.f32.mrf.mxu0 }
 0xa1d   :  { %v2934_v33 = vpack.c.bf16 %v2477_v29, %v2477_v29  ;;  %v2931_v17 = vpack.c.bf16 %v2285_v16, %v2285_v16 }
 0xa1e   :  { %v2287_v34 = vpop.f32.mrf.mxu1  ;;  %v2479_v4 = vpop.f32.mrf.mxu0 }
 0xa1f   :  { %v2946_v35 = vsel %vm53_vm1, %v2934_v33, 0  ;;  %v5958_v4 = vld [vmem:[%s9069_s4 + $0x15] ss:$0 sm:$0xff] }
 0xa20   :  { %v6875_v36 = vpop.f32.mrf.mxu1  ;;  %v6911_v37 = vpop.f32.mrf.mxu0  ;;  %6997 = vmatpush3.bf16.xpose.msra.mxu0 %v2946_v35 }
 0xa21   :  { %7002 = vmatprep.subr.bf16.mxu0 %v7620_v0 }
 0xa27   :  { %6999 = vmatmul.mubr.msk.bf16.vlgmr.msra.gmra.mxu0 %vm53_vm1, %v2930_v39 }
 0xa28   :  { %7004 = vmatprep.mubr.msk.bf16.mxu0 %vm7621_vm0, %v7620_v0 }
 0xa2a   :  { %v2412_v43 = vpop.f32.mrf.mxu1  ;;  %v2604_v44 = vpop.f32.mrf.mxu0 }
 0xa2b   :  { %v2605_v45 = vadd.f32 %v5955_v42, %v2604_v44  ;;  %v2413_v13 = vadd.f32 %v5952_v28, %v2412_v43 }
 0xa2c   :  { %v6898_v46 = vpop.f32.mrf.mxu1  ;;  %v6934_v47 = vpop.f32.mrf.mxu0 }
 0xa2d   :  { %v2936_v48 = vpack.c.bf16 %v2605_v45, %v2605_v45  ;;  %v2933_v34 = vpack.c.bf16 %v2413_v13, %v2413_v13 }
 0xa2e   :  { %v2415_v50 = vpop.f32.mrf.mxu1  ;;  %v2607_v52 = vpop.f32.mrf.mxu0 }
 0xa2f   :  { %v3038_v53 = vsel %vm53_vm1, %v2936_v48, 0 }
 0xa30   :  { %v6899_v54 = vpop.f32.mrf.mxu1  ;;  %v6935_v55 = vpop.f32.mrf.mxu0  ;;  %7009 = vmatpush3.bf16.xpose.msra.mxu1 %v3038_v53 }
 0xa31   :  { %7020 = vmatprep.subr.bf16.mxu1 %v7620_v0 }
 0xa37   :  { %7011 = vmatmul.mubr.msk.bf16.vlgmr.msra.gmra.mxu1 %vm53_vm1, %v2932_v57 }
 0xa38   :  { %7022 = vmatprep.mubr.msk.bf16.mxu1 %vm7621_vm0, %v7620_v0 }
 0xa3a   :  { %v2540_v61 = vpop.f32.mrf.mxu1  ;;  %v2732_v62 = vpop.f32.mrf.mxu0 }
 0xa3b   :  { %v2541_v63 = vadd.f32 %v5954_v58, %v2540_v61  ;;  %v2733_v1 = vadd.f32 %v5957_v59, %v2732_v62 }
 0xa3c   :  { %v6922_v2 = vpop.f32.mrf.mxu1  ;;  %v6958_v3 = vpop.f32.mrf.mxu0 }
 0xa3d   :  { %v2935_v5 = vpack.c.bf16 %v2541_v63, %v2541_v63  ;;  %v2938_v6 = vpack.c.bf16 %v2733_v1, %v2733_v1 }
 0xa3e   :  { %v2543_v8 = vpop.f32.mrf.mxu1  ;;  %v2735_v9 = vpop.f32.mrf.mxu0 }
 0xa3f   :  { %v2992_v10 = vsel %vm53_vm1, %v2935_v5, 0  ;;  %v3178_v11 = vsel %vm1331_vm3, %v2938_v6, 0 }
 0xa40   :  { %v6923_v12 = vpop.f32.mrf.mxu1  ;;  %v6959_v15 = vpop.f32.mrf.mxu0  ;;  %7003 = vmatpush3.bf16.xpose.msra.mxu0 %v2992_v10  ;;  %7021 = vmatpush3.bf16.msra.mxu1 %v3178_v11 }
 0xa41   :  { %7014 = vmatprep.subr.bf16.mxu0 %v7620_v0  ;;  %7032 = vmatprep.subr.bf16.mxu1 %v7620_v0 }
 0xa47   :  { %7005 = vmatmul.mubr.msk.bf16.vlgmr.msra.gmra.mxu0 %vm53_vm1, %v2931_v17 }
 0xa48   :  { %7016 = vmatprep.mubr.msk.bf16.mxu0 %vm7621_vm0, %v7620_v0 }
 0xa4a   :  { %v2668_v22 = vpop.f32.mrf.mxu1  ;;  %v8442_v23 = vpop.f32.mrf.mxu0 }
 0xa4b   :  { %v2669_v19 = vadd.f32 %v5956_v21, %v2668_v22 }
 0xa4c   :  { %v6946_v24 = vpop.f32.mrf.mxu1  ;;  %v6982_v20 = vpop.f32.mrf.mxu0 }
 0xa4d   :  { %v2937_v25 = vpack.c.bf16 %v2669_v19, %v2669_v19 }
 0xa4e   :  { %v2671_v18 = vpop.f32.mrf.mxu1  ;;  %v2863_v29 = vpop.f32.mrf.mxu0 }
 0xa4f   :  { %v3084_v30 = vsel %vm53_vm1, %v2937_v25, 0 }
 0xa50   :  { %v6947_v31 = vpop.f32.mrf.mxu1  ;;  %v6983_v33 = vpop.f32.mrf.mxu0  ;;  %7015 = vmatpush3.bf16.xpose.msra.mxu0 %v3084_v30 }
 0xa51   :  { %7026 = vmatprep.subr.bf16.mxu0 %v7620_v0 }
 0xa57   :  { %7017 = vmatmul.mubr.msk.bf16.vlgmr.msra.gmra.mxu0 %vm53_vm1, %v2933_v34  ;;  %v5959_v34 = vld [vmem:[%s9069_s4 + $0x16] ss:$0 sm:$0xff] }
 0xa58   :  { %7028 = vmatprep.mubr.msk.bf16.mxu0 %vm7621_vm0, %v7620_v0 }
 0xa5a   :  { %v2796_v35 = vpop.f32.mrf.mxu1 }
 0xa5b   :  { %v2797_v36 = vadd.f32 %v5958_v4, %v2796_v35  ;;  %v2861_v4 = vadd.f32 %v5959_v34, %v8442_v23 }
 0xa5c   :  { %v6970_v37 = vpop.f32.mrf.mxu1 }
 0xa5d   :  { %v2939_v38 = vpack.c.bf16 %v2797_v36, %v2797_v36  ;;  %v2940_v36 = vpack.c.bf16 %v2861_v4, %v2861_v4 }
 0xa5e   :  { %v2799_v39 = vpop.f32.mrf.mxu1 }
 0xa5f   :  { %v3224_v42 = vsel %vm1331_vm3, %v2939_v38, 0 }
 0xa60   :  { %v6971_v43 = vpop.f32.mrf.mxu1  ;;  %7027 = vmatpush3.bf16.msra.mxu0 %v3224_v42  ;;  %v3270_v42 = vsel %vm1331_vm3, %v2940_v36, 0 }
 0xa61   :  { %7038 = vmatprep.subr.bf16.mxu0 %v7620_v0 }
 0xa6a   :  { %v8457_v44 = vpop.f32.mrf.mxu1 }
 0xa6c   :  { %v6994_v45 = vpop.f32.mrf.mxu1 }
 0xa6e   :  { %v2927_v46 = vpop.f32.mrf.mxu1 }
 0xa70   :  { %v6995_v47 = vpop.f32.mrf.mxu1 }
 0xa71   :  { %v5960_v47 = vld [vmem:[%s9069_s4 + $0x17] ss:$0 sm:$0xff] }
 0xae7   :  { %v2982_v48 = vpop.f32.mrf.mxu0 }
 0xae8   :  { %v3126_v49 = vsel %vm1279_vm4, %v2982_v48, -inf }
 0xae9   :  { %3127 = vmax.xlane.f32.xlu0 %v3126_v49  ;;  %v7000_v50 = vpop.f32.mrf.mxu0 }
 0xaeb   :  { %v2985_v52 = vpop.f32.mrf.mxu0 }
 0xaed   :  { %v7001_v53 = vpop.f32.mrf.mxu0 }
 0xaf7   :  { %v3074_v54 = vpop.f32.mrf.mxu1 }
 0xaf8   :  { %v3132_v55 = vsel %vm1279_vm4, %v3074_v54, -inf }
 0xaf9   :  { %v7012_v56 = vpop.f32.mrf.mxu1  ;;  %3133 = vmax.xlane.f32.xlu0 %v3132_v55 }
 0xafb   :  { %v3077_v57 = vpop.f32.mrf.mxu1 }
 0xafd   :  { %v7013_v58 = vpop.f32.mrf.mxu1 }
 0xb07   :  { %v3028_v59 = vpop.f32.mrf.mxu0 }
 0xb08   :  { %v3129_v61 = vsel %vm1279_vm4, %v3028_v59, -inf }
 0xb09   :  { %3130 = vmax.xlane.f32.xlu1 %v3129_v61  ;;  %v7006_v62 = vpop.f32.mrf.mxu0 }
 0xb0a   :  { %v7476_v62 = vld [vmem:[%s9070_s5 + $0x30] sm:$0xff]  }
 0xb0b   :  { %v3031_v63 = vpop.f32.mrf.mxu0 }
 0xb0d   :  { %v7007_v1 = vpop.f32.mrf.mxu0 }
 0xb17   :  { %v3120_v2 = vpop.f32.mrf.mxu0 }
 0xb18   :  { %v3135_v3 = vsel %vm1279_vm4, %v3120_v2, -inf }
 0xb19   :  { %3136 = vmax.xlane.f32.xlu1 %v3135_v3  ;;  %v7018_v5 = vpop.f32.mrf.mxu0 }
 0xb1b   :  { %v3123_v6 = vpop.f32.mrf.mxu0 }
 0xb1d   :  { %v7019_v7 = vpop.f32.mrf.mxu0 }
 0xb72   :  { %v3128_v8 = vpop.xlane.xlu0 %3127 }
 0xb73   :  { %v3138_v9 = vsub.f32 %v2982_v48, %v3128_v8  ;;  %v2925_v48 = vadd.f32 %v5960_v47, %v8457_v44  ;;  %v7475_v44 = vld [vmem:[%s9070_s5 + $0x20] sm:$0xff]  }
 0xb75   :  { %v3142_v10 = vmul.f32 1.442695, %v3138_v9  ;;  %v2941_v50 = vpack.c.bf16 %v2925_v48, %v2925_v48 }
 0xb77   :  { %7579 = vpow2.f32 %v3142_v10  ;;  %v3316_v55 = vsel %vm1331_vm3, %v2941_v50, 0 }
 0xb82   :  { %v3134_v11 = vpop.xlane.xlu0 %3133 }
 0xb83   :  { %v3140_v12 = vsub.f32 %v3074_v54, %v3134_v11  ;;  %v7478_v11 = vld [vmem:[%s9070_s5 + $0x38] sm:$0xff]  }
 0xb84   :  { %v7580_v15 = vpop.eup %7579 }
 0xb85   :  { %v3146_v16 = vmul.f32 1.442695, %v3140_v12  ;;  %v3150_v17 = vsel %vm1279_vm4, %v7580_v15, 0.0 }
 0xb86   :  { %3151 = vadd.xlane.f32.xlu0 %v3150_v17 }
 0xb87   :  { %7581 = vpow2.f32 %v3146_v16 }
 0xb92   :  { %v3131_v21 = vpop.xlane.xlu1 %3130 }
 0xb93   :  { %v3139_v22 = vsub.f32 %v3028_v59, %v3131_v21  ;;  %v7477_v59 = vld [vmem:[%s9070_s5 + $0x28] sm:$0xff]  }
 0xb94   :  { %v7582_v19 = vpop.eup %7581 }
 0xb95   :  { %v3144_v24 = vmul.f32 1.442695, %v3139_v22  ;;  %v3156_v20 = vsel %vm1279_vm4, %v7582_v19, 0.0 }
 0xb96   :  { %3157 = vadd.xlane.f32.xlu0 %v3156_v20 }
 0xb97   :  { %7583 = vpow2.f32 %v3144_v24 }
 0xba2   :  { %v3137_v25 = vpop.xlane.xlu1 %3136 }
 0xba3   :  { %v3141_v28 = vsub.f32 %v3120_v2, %v3137_v25 }
 0xba4   :  { %v7584_v18 = vpop.eup %7583 }
 0xba5   :  { %v3148_v29 = vmul.f32 1.442695, %v3141_v28  ;;  %v3153_v30 = vsel %vm1279_vm4, %v7584_v18, 0.0 }
 0xba6   :  { %3154 = vadd.xlane.f32.xlu1 %v3153_v30 }
 0xba7   :  { %7585 = vpow2.f32 %v3148_v29 }
 0xbb4   :  { %v7586_v31 = vpop.eup %7585 }
 0xbb5   :  { %v3159_v33 = vsel %vm1279_vm4, %v7586_v31, 0.0 }
 0xbb6   :  { %3160 = vadd.xlane.f32.xlu1 %v3159_v33 }
 0xc0f   :  { %v3152_v13 = vpop.xlane.xlu0 %3151 }
 0xc10   :  { %7587 = vrcp.f32 %v3152_v13 }
 0xc1d   :  { %v7588_v35 = vpop.eup %7587 }
 0xc1e   :  { %v3166_v37 = vmul.f32 %v7588_v35, %v7580_v15 }
 0xc1f   :  { %v3158_v38 = vpop.xlane.xlu0 %3157 }
 0xc20   :  { %7589 = vrcp.f32 %v3158_v38  ;;  %v3170_v39 = vpack.c.bf16 %v3166_v37, %v3166_v37 }
 0xc22   :  { %7023 = vmatmul.mubr.msk.bf16.vlgmr.msra.gmra.mxu1 %vm1279_vm4, %v3170_v39 }
 0xc23   :  { %7033 = vmatpush3.bf16.msra.mxu1 %v3270_v42  ;;  %7034 = vmatprep.mubr.msk.bf16.mxu1 %vm7621_vm0, %v7620_v0  ;;  %v8524_v42 = vld [vmem:[%s9071_s7 + $0x8] sm:$0xff] }
 0xc24   :  { %7044 = vmatprep.subr.bf16.mxu1 %v7620_v0 }
 0xc2d   :  { %v7590_v43 = vpop.eup %7589 }
 0xc2e   :  { %v3168_v45 = vmul.f32 %v7590_v43, %v7582_v19 }
 0xc2f   :  { %v3155_v46 = vpop.xlane.xlu1 %3154 }
 0xc30   :  { %7591 = vrcp.f32 %v3155_v46  ;;  %v3172_v23 = vpack.c.bf16 %v3168_v45, %v3168_v45 }
 0xc32   :  { %7035 = vmatmul.mubr.msk.bf16.vlgmr.msra.gmra.mxu1 %vm1279_vm4, %v3172_v23  ;;  %v3568_v23 = vrot.slane %v8524_v42, %v7718_v14 }
 0xc33   :  { %7046 = vmatprep.mubr.msk.bf16.mxu1 %vm7621_vm0, %v7620_v0  ;;  %7045 = vmatpush3.bf16.msra.mxu1 %v7475_v44 }
 0xc34   :  { %7056 = vmatprep.subr.bf16.mxu1 %v7620_v0 }
 0xc3d   :  { %v7592_v49 = vpop.eup %7591 }
 0xc3e   :  { %v3167_v52 = vmul.f32 %v7592_v49, %v7584_v18 }
 0xc3f   :  { %v3161_v53 = vpop.xlane.xlu1 %3160 }
 0xc40   :  { %7593 = vrcp.f32 %v3161_v53  ;;  %v3171_v54 = vpack.c.bf16 %v3167_v52, %v3167_v52 }
 0xc42   :  { %7029 = vmatmul.mubr.msk.bf16.vlgmr.msra.gmra.mxu0 %vm1279_vm4, %v3171_v54 }
 0xc43   :  { %7039 = vmatpush3.bf16.msra.mxu0 %v3316_v55  ;;  %7040 = vmatprep.mubr.msk.bf16.mxu0 %vm7621_vm0, %v7620_v0 }
 0xc44   :  { %7050 = vmatprep.subr.bf16.mxu0 %v7620_v0 }
 0xc4d   :  { %v7594_v56 = vpop.eup %7593 }
 0xc4e   :  { %v3169_v57 = vmul.f32 %v7594_v56, %v7586_v31 }
 0xc50   :  { %v3173_v58 = vpack.c.bf16 %v3169_v57, %v3169_v57 }
 0xc52   :  { %7041 = vmatmul.mubr.msk.bf16.vlgmr.msra.gmra.mxu0 %vm1279_vm4, %v3173_v58 }
 0xc53   :  { %7052 = vmatprep.mubr.msk.bf16.mxu0 %vm7621_vm0, %v7620_v0  ;;  %7051 = vmatpush3.bf16.msra.mxu0 %v7477_v59 }
 0xc54   :  { %7062 = vmatprep.subr.bf16.mxu0 %v7620_v0 }
 0xce2   :  { %v3214_v61 = vpop.f32.mrf.mxu1 }
 0xce3   :  { %v3358_v63 = vpack.c.bf16 %v3214_v61, %v3214_v61  ;;  %v7479_v61 = vld [vmem:[%s9072_s6 + $0x78] sm:$0xff]  }
 0xce4   :  { %v7024_v1 = vpop.f32.mrf.mxu1 }
 0xce5   :  { %7047 = vmatmul.mubr.msk.bf16.vlgmr.msra.gmra.mxu1 %vm53_vm1, %v3358_v63  ;;  %v7482_v63 = vld [vmem:[%s9072_s6 + $0x60] sm:$0xff]   ;;  %v7483_v1 = vld [vmem:[%s9072_s6 + $0xb8] sm:$0xff]  }
 0xce6   :  { %v3217_v2 = vpop.f32.mrf.mxu1  ;;  %7057 = vmatpush3.bf16.msra.mxu1 %v7476_v62  ;;  %7058 = vmatprep.mubr.msk.bf16.mxu1 %vm7621_vm0, %v7620_v0  ;;  %v7481_v62 = vld [vmem:[%s9072_s6 + $0x68] sm:$0xff]  }
 0xce7   :  { %7068 = vmatprep.subr.bf16.mxu1 %v7620_v0  ;;  %v7484_v2 = vld [vmem:[%s9072_s6 + $0xb0] sm:$0xff]  }
 0xce8   :  { %v7025_v3 = vpop.f32.mrf.mxu1 }
 0xce9   :  { %v7485_v3 = vld [vmem:[%s9072_s6 + $0xa8] sm:$0xff]  }
 0xcf2   :  { %v3306_v5 = vpop.f32.mrf.mxu1 }
 0xcf3   :  { %v3360_v6 = vpack.c.bf16 %v3306_v5, %v3306_v5  ;;  %v7486_v5 = vld [vmem:[%s9072_s6 + $0xa0] sm:$0xff]  }
 0xcf4   :  { %v7036_v7 = vpop.f32.mrf.mxu1 }
 0xcf5   :  { %7059 = vmatmul.mubr.msk.bf16.vlgmr.msra.gmra.mxu1 %vm53_vm1, %v3360_v6  ;;  %v7487_v6 = vld [vmem:[%s9072_s6 + $0x98] sm:$0xff]   ;;  %v7488_v7 = vld [vmem:[%s9072_s6 + $0x90] sm:$0xff]  }
 0xcf6   :  { %v3309_v8 = vpop.f32.mrf.mxu1  ;;  %7076 = vmatprep.mubr.msk.bf16.mxu1 %vm7621_vm0, %v7620_v0  ;;  %7069 = vmatpush3.bf16.msra.mxu1 %v7479_v61 }
 0xcf7   :  { %7070 = vmatprep.subr.bf16.mxu1 %v7620_v0 }
 0xcf8   :  { %v7037_v9 = vpop.f32.mrf.mxu1 }
 0xd02   :  { %v3260_v10 = vpop.f32.mrf.mxu0 }
 0xd03   :  { %v3359_v12 = vpack.c.bf16 %v3260_v10, %v3260_v10 }
 0xd04   :  { %v7030_v15 = vpop.f32.mrf.mxu0 }
 0xd05   :  { %7053 = vmatmul.mubr.msk.bf16.vlgmr.msra.gmra.mxu0 %vm53_vm1, %v3359_v12 }
 0xd06   :  { %v3263_v16 = vpop.f32.mrf.mxu0  ;;  %7063 = vmatpush3.bf16.msra.mxu0 %v7478_v11  ;;  %7064 = vmatprep.mubr.msk.bf16.mxu0 %vm7621_vm0, %v7620_v0  ;;  %v3587_v11 = vrot.slane %v8524_v42, %v8111_v40 }
 0xd07   :  { %7080 = vmatprep.subr.bf16.mxu0 %v7620_v0  ;;  %v3592_v16 = vrot.slane %v8524_v42, %v8114_v41 }
 0xd08   :  { %v7031_v17 = vpop.f32.mrf.mxu0 }
 0xd12   :  { %v3352_v21 = vpop.f32.mrf.mxu0 }
 0xd13   :  { %v3361_v22 = vpack.c.bf16 %v3352_v21, %v3352_v21 }
 0xd14   :  { %v7042_v19 = vpop.f32.mrf.mxu0 }
 0xd15   :  { %7065 = vmatmul.mubr.msk.bf16.vlgmr.msra.gmra.mxu0 %vm53_vm1, %v3361_v22  ;;  %v7489_v19 = vld [vmem:[%s9072_s6 + $0x88] sm:$0xff]  }
 0xd16   :  { %v3355_v24 = vpop.f32.mrf.mxu0  ;;  %7096 = vmatprep.mubr.msk.bf16.mxu0 %vm7621_vm0, %v7620_v0  ;;  %7081 = vmatpush3.bf16.msra.mxu0 %v7483_v1 }
 0xd17   :  { %7082 = vmatprep.subr.bf16.mxu0 %v7620_v0  ;;  %v7490_v24 = vld [vmem:[%s9072_s6 + $0x80] sm:$0xff]  }
 0xd18   :  { %v7043_v20 = vpop.f32.mrf.mxu0 }
 0xd19   :  { %v3598_v20 = vrot.slane %v8524_v42, %v8132_v51 }
 0xd1a   :  { %7083 = vmatpush3.bf16.msra.mxu0 %v7484_v2  ;;  %v7499_v2 = vld [vmem:[%s9067_s3 + $0x338] sm:$0xff]  }
 0xd1b   :  { %7084 = vmatprep.subr.bf16.mxu0 %v7620_v0 }
 0xd1e   :  { %7085 = vmatpush3.bf16.msra.mxu0 %v7485_v3  ;;  %v7500_v3 = vld [vmem:[%s9067_s3 + $0x398] sm:$0xff]  }
 0xd1f   :  { %7086 = vmatprep.subr.bf16.mxu0 %v7620_v0 }
 0xd22   :  { %7087 = vmatpush3.bf16.msra.mxu0 %v7486_v5 }
 0xd23   :  { %7088 = vmatprep.subr.bf16.mxu0 %v7620_v0 }
 0xd26   :  { %7089 = vmatpush3.bf16.msra.mxu0 %v7487_v6  ;;  %v7502_v6 = vld [vmem:[%s9067_s3 + $0x390] sm:$0xff]  }
 0xd27   :  { %7090 = vmatprep.subr.bf16.mxu0 %v7620_v0 }
 0xd2a   :  { %7091 = vmatpush3.bf16.msra.mxu0 %v7488_v7  ;;  %v7503_v7 = vld [vmem:[%s9067_s3 + $0x328] sm:$0xff]  }
 0xd2b   :  { %7092 = vmatprep.subr.bf16.mxu0 %v7620_v0 }
 0xd2e   :  { %7093 = vmatpush3.bf16.msra.mxu0 %v7489_v19  ;;  %v7514_v19 = vld [vmem:[%s9067_s3 + $0x3c0] sm:$0xff]  }
 0xd2f   :  { %7094 = vmatprep.subr.bf16.mxu0 %v7620_v0 }
 0xd32   :  { %7095 = vmatpush3.bf16.msra.mxu0 %v7490_v24  ;;  %v7515_v24 = vld [vmem:[%s9067_s3 + $0x3b8] sm:$0xff]  }
 0xd33   :  { %7124 = vmatprep.subr.bf16.mxu0 %v7620_v0 }
 0xda5   :  { %v3405_v25 = vpop.f32.mrf.mxu1 }
 0xda6   :  { %v3558_v38 = vsel %vm335_vm2, %v3405_v25, 0.0 }
 0xda7   :  { %v7048_v28 = vpop.f32.mrf.mxu1 }
 0xda9   :  { %v3408_v18 = vpop.f32.mrf.mxu1 }
 0xdab   :  { %v7049_v29 = vpop.f32.mrf.mxu1 }
 0xdb5   :  { %v3503_v30 = vpop.f32.mrf.mxu1 }
 0xdb6   :  { %v3561_v43 = vsel %vm335_vm2, %v3503_v30, 0.0 }
 0xdb7   :  { %v7060_v31 = vpop.f32.mrf.mxu1 }
 0xdb9   :  { %v3506_v33 = vpop.f32.mrf.mxu1 }
 0xdbb   :  { %v7061_v13 = vpop.f32.mrf.mxu1 }
 0xdbc   :  { %v3671_v13 = vrot.slane %v8524_v42, %v8139_v60 }
 0xdc5   :  { %v3454_v34 = vpop.f32.mrf.mxu0 }
 0xdc6   :  { %v3559_v37 = vsel %vm335_vm2, %v3454_v34, 0.0 }
 0xdc7   :  { %v7054_v4 = vpop.f32.mrf.mxu0  ;;  %v3560_v39 = vadd.f32 %v3559_v37, %v3558_v38 }
 0xdc9   :  { %v3457_v35 = vpop.f32.mrf.mxu0  ;;  %v3562_v46 = vadd.f32 %v3561_v43, %v3560_v39 }
 0xdcb   :  { %v7055_v36 = vpop.f32.mrf.mxu0 }
 0xdd5   :  { %v3552_v45 = vpop.f32.mrf.mxu0 }
 0xdd6   :  { %v3563_v47 = vsel %vm335_vm2, %v3552_v45, 0.0 }
 0xdd7   :  { %v3564_v48 = vadd.f32 %v3563_v47, %v3562_v46  ;;  %v7066_v49 = vpop.f32.mrf.mxu0 }
 0xdd8   :  { %v7492_v49 = vld [vmem:[%s9067_s3 + $0x358] sm:$0xff]  }
 0xdd9   :  { %v3569_v50 = vadd.f32 %v3568_v23, %v3564_v48  ;;  %v3555_v52 = vpop.f32.mrf.mxu0  ;;  %v7491_v48 = vld [vmem:[%s9067_s3 + $0x318] sm:$0xff]  }
 0xdda   :  { %v7494_v52 = vld [vmem:[%s9067_s3 + $0x350] sm:$0xff]  }
 0xddb   :  { %v7067_v53 = vpop.f32.mrf.mxu0  ;;  %v3570_v54 = vadd.f32 %v3569_v50, %v8187_v32  ;;  %v7480_v32 = vld [vmem:[%s9072_s6 + $0x70] sm:$0xff]  }
 0xddc   :  { %7071 = vmatpush3.bf16.msra.mxu1 %v7480_v32  ;;  %v7493_v50 = vld [vmem:[%s9067_s3 + $0x310] sm:$0xff]   ;;  %v7495_v53 = vld [vmem:[%s9067_s3 + $0x308] sm:$0xff]   ;;  %v3782_v32 = vrot.slane %v8524_v42, %v8181_v27 }
 0xddd   :  { %v3571_v55 = vsel %vm335_vm2, %v3570_v54, 0.0  ;;  %7072 = vmatprep.subr.bf16.mxu1 %v7620_v0 }
 0xdde   :  { %3572 = vadd.xlane.f32.xlu0 %v3571_v55  ;;  %v7497_v55 = vld [vmem:[%s9067_s3 + $0x300] sm:$0xff]  }
 0xde0   :  { %7073 = vmatpush3.bf16.msra.mxu1 %v7481_v62 }
 0xde1   :  { %7074 = vmatprep.subr.bf16.mxu1 %v7620_v0 }
 0xde4   :  { %7075 = vmatpush3.bf16.msra.mxu1 %v7482_v63 }
 0xde5   :  { %7100 = vmatprep.subr.bf16.mxu1 %v7620_v0 }
 0xe67   :  { %v3573_v56 = vpop.xlane.xlu0 %3572 }
 0xe68   :  { %v3574_v57 = vmul.f32 0.015625, %v3573_v56  ;;  %v7498_v56 = vld [vmem:[%s9067_s3 + $0x340] sm:$0xff]  }
 0xe6a   :  { %v3575_v58 = vsub.f32 %v3570_v54, %v3574_v57  ;;  %v7496_v54 = vld [vmem:[%s9067_s3 + $0x348] sm:$0xff]  }
 0xe6c   :  { %v3576_v44 = vmul.f32 %v3575_v58, %v3575_v58 }
 0xe6e   :  { %v3577_v59 = vsel %vm335_vm2, %v3576_v44, 0.0 }
 0xe6f   :  { %3578 = vadd.xlane.f32.xlu1 %v3577_v59  ;;  %v3777_v59 = vrot.slane %v8524_v42, %v8178_v26  ;;  %v7501_v42 = vld [vmem:[%s9067_s3 + $0x330] sm:$0xff]  }
 0xef8   :  { %v3579_v8 = vpop.xlane.xlu1 %3578 }
 0xef9   :  { %v3580_v9 = vmul.f32 0.015625, %v3579_v8  ;;  %v7504_v8 = vld [vmem:[%s9067_s3 + $0x388] sm:$0xff]  }
 0xefb   :  { %v3581_v10 = vadd.f32 1e-05, %v3580_v9  ;;  %v7505_v9 = vld [vmem:[%s9067_s3 + $0x320] sm:$0xff]  }
 0xefd   :  { %7595 = vrsqrt.f32 %v3581_v10  ;;  %v7506_v10 = vld [vmem:[%s9067_s3 + $0x380] sm:$0xff]  }
 0xf0a   :  { %v7596_v12 = vpop.eup %7595 }
 0xf0b   :  { %v3583_v15 = vmul.f32 %v7596_v12, %v3575_v58  ;;  %v7508_v12 = vld [vmem:[%s9067_s3 + $0x3d8] sm:$0xff]  }
 0xf0d   :  { %v3588_v17 = vmul.f32 %v3587_v11, %v3583_v15  ;;  %v7507_v11 = vld [vmem:[%s9067_s3 + $0x378] sm:$0xff]   ;;  %v7509_v15 = vld [vmem:[%s9067_s3 + $0x370] sm:$0xff]  }
 0xf0f   :  { %v3593_v21 = vadd.f32 %v3592_v16, %v3588_v17  ;;  %v7510_v16 = vld [vmem:[%s9067_s3 + $0x3d0] sm:$0xff]   ;;  %v7511_v17 = vld [vmem:[%s9067_s3 + $0x368] sm:$0xff]  }
 0xf11   :  { %v3594_v22 = vpack.c.bf16 %v3593_v21, %v3593_v21 }
 0xf13   :  { %7077 = vmatmul.mubr.msk.bf16.vlgmr.msra.gmra.mxu1 %vm335_vm2, %v3594_v22  ;;  %v7513_v22 = vld [vmem:[%s9067_s3 + $0x360] sm:$0xff]  }
 0xf14   :  { %7108 = vmatprep.mubr.msk.bf16.mxu1 %vm7621_vm0, %v7620_v0  ;;  %7101 = vmatpush3.bf16.msra.mxu1 %v7491_v48  ;;  %v7537_v48 = vld [vmem:[%s9067_s3 + $0x468] sm:$0xff]  }
 0xf15   :  { %7102 = vmatprep.subr.bf16.mxu1 %v7620_v0 }
 0xf18   :  { %7103 = vmatpush3.bf16.msra.mxu1 %v7493_v50 }
 0xf19   :  { %7104 = vmatprep.subr.bf16.mxu1 %v7620_v0 }
 0xf1c   :  { %7105 = vmatpush3.bf16.msra.mxu1 %v7495_v53 }
 0xf1d   :  { %7106 = vmatprep.subr.bf16.mxu1 %v7620_v0 }
 0xf20   :  { %7107 = vmatpush3.bf16.msra.mxu1 %v7497_v55 }
 0xf21   :  { %7112 = vmatprep.subr.bf16.mxu1 %v7620_v0 }
 0xfd3   :  { %v3660_v25 = vpop.f32.mrf.mxu1 }
 0xfd4   :  { %v3661_v28 = vadd.f32 %v3660_v25, %v3598_v20  ;;  %v7516_v20 = vld [vmem:[%s9067_s3 + $0x418] sm:$0xff]   ;;  %v7517_v25 = vld [vmem:[%s9067_s3 + $0x3b0] sm:$0xff]  }
 0xfd5   :  { %v7078_v18 = vpop.f32.mrf.mxu1 }
 0xfd6   :  { %v3666_v29 = vmax.f32 %v3661_v28, 0.0  ;;  %v7518_v28 = vld [vmem:[%s9067_s3 + $0x410] sm:$0xff]   ;;  %v7519_v18 = vld [vmem:[%s9067_s3 + $0x3a8] sm:$0xff]  }
 0xfd7   :  { %v3663_v30 = vpop.f32.mrf.mxu1 }
 0xfd8   :  { %v3667_v31 = vpack.c.bf16 %v3666_v29, %v3666_v29  ;;  %v7520_v29 = vld [vmem:[%s9067_s3 + $0x408] sm:$0xff]   ;;  %v7521_v30 = vld [vmem:[%s9067_s3 + $0x3a0] sm:$0xff]  }
 0xfd9   :  { %v7079_v33 = vpop.f32.mrf.mxu1 }
 0xfda   :  { %7097 = vmatmul.mubr.bf16.vlgmr.msra.gmra.mxu0 %v3667_v31  ;;  %v7522_v31 = vld [vmem:[%s9067_s3 + $0x400] sm:$0xff]   ;;  %v7523_v33 = vld [vmem:[%s9067_s3 + $0x3f8] sm:$0xff]  }
 0xfdb   :  { %7132 = vmatprep.mubr.msk.bf16.mxu0 %vm7621_vm0, %v7620_v0  ;;  %7125 = vmatpush3.bf16.msra.mxu0 %v7492_v49  ;;  %v7538_v49 = vld [vmem:[%s9067_s3 + $0x460] sm:$0xff]  }
 0xfdc   :  { %7126 = vmatprep.subr.bf16.mxu0 %v7620_v0 }
 0xfdf   :  { %7127 = vmatpush3.bf16.msra.mxu0 %v7494_v52 }
 0xfe0   :  { %7128 = vmatprep.subr.bf16.mxu0 %v7620_v0 }
 0xfe3   :  { %7129 = vmatpush3.bf16.msra.mxu0 %v7496_v54 }
 0xfe4   :  { %7130 = vmatprep.subr.bf16.mxu0 %v7620_v0 }
 0xfe7   :  { %7131 = vmatpush3.bf16.msra.mxu0 %v7498_v56 }
 0xfe8   :  { %7148 = vmatprep.subr.bf16.mxu0 %v7620_v0 }
0x109a   :  { %v3754_v34 = vpop.f32.mrf.mxu0 }
0x109b   :  { %v3755_v4 = vadd.f32 %v3754_v34, %v3671_v13  ;;  %v7524_v13 = vld [vmem:[%s9067_s3 + $0x458] sm:$0xff]   ;;  %v7525_v34 = vld [vmem:[%s9067_s3 + $0x3f0] sm:$0xff]  }
0x109c   :  { %v7098_v35 = vpop.f32.mrf.mxu0 }
0x109d   :  { %v3760_v36 = vadd.f32 %v3755_v4, %v3593_v21  ;;  %v7512_v21 = vld [vmem:[%s9067_s3 + $0x3c8] sm:$0xff]   ;;  %v7526_v4 = vld [vmem:[%s9067_s3 + $0x450] sm:$0xff]  }
0x109e   :  { %v3757_v37 = vpop.f32.mrf.mxu0  ;;  %v7527_v35 = vld [vmem:[%s9067_s3 + $0x3e8] sm:$0xff]  }
0x109f   :  { %v3761_v38 = vsel %vm335_vm2, %v3760_v36, 0.0  ;;  %v7529_v37 = vld [vmem:[%s9067_s3 + $0x3e0] sm:$0xff]  }
0x10a0   :  { %3762 = vadd.xlane.f32.xlu0 %v3761_v38  ;;  %v7099_v39 = vpop.f32.mrf.mxu0  ;;  %v7530_v38 = vld [vmem:[%s9067_s3 + $0x440] sm:$0xff]  }
0x10a1   :  { %v7531_v39 = vld [vmem:[%s9067_s3 + $0x438] sm:$0xff]  }
0x1129   :  { %v3763_v43 = vpop.xlane.xlu0 %3762 }
0x112a   :  { %v3764_v45 = vmul.f32 0.015625, %v3763_v43  ;;  %v7532_v43 = vld [vmem:[%s9067_s3 + $0x430] sm:$0xff]  }
0x112c   :  { %v3765_v46 = vsub.f32 %v3760_v36, %v3764_v45  ;;  %v7528_v36 = vld [vmem:[%s9067_s3 + $0x448] sm:$0xff]  }
0x112d   :  { %v7533_v45 = vld [vmem:[%s9067_s3 + $0x428] sm:$0xff]  }
0x112e   :  { %v3766_v23 = vmul.f32 %v3765_v46, %v3765_v46 }
0x1130   :  { %v3767_v47 = vsel %vm335_vm2, %v3766_v23, 0.0  ;;  %v7535_v23 = vld [vmem:[%s9067_s3 + $0x478] sm:$0xff]  }
0x1131   :  { %3768 = vadd.xlane.f32.xlu1 %v3767_v47  ;;  %v7536_v47 = vld [vmem:[%s9067_s3 + $0x470] sm:$0xff]  }
0x11ba   :  { %v3769_v57 = vpop.xlane.xlu1 %3768 }
0x11bb   :  { %v3770_v58 = vmul.f32 0.015625, %v3769_v57 }
0x11bd   :  { %v3771_v44 = vadd.f32 1e-05, %v3770_v58 }
0x11bf   :  { %7597 = vrsqrt.f32 %v3771_v44  ;;  %v6195_v44 = vld [vmem:[%s9069_s4 + $0x1c] ss:$0 sm:$0xff] }
0x11cc   :  { %v7598_v61 = vpop.eup %7597 }
0x11cd   :  { %v3773_v62 = vmul.f32 %v7598_v61, %v3765_v46  ;;  %v7534_v46 = vld [vmem:[%s9067_s3 + $0x420] sm:$0xff]  }
0x11cf   :  { %v3778_v63 = vmul.f32 %v3777_v59, %v3773_v62 }
0x11d1   :  { %v8632_v1 = vadd.f32 %v3782_v32, %v3778_v63 }
0x11d3   :  { %v8642_v5 = vpack.c.bf16 %v8632_v1, %v8632_v1 }
0x11d5   :  { %7109 = vmatmul.mubr.msk.bf16.vlgmr.msra.gmra.mxu1 %vm335_vm2, %v8642_v5  ;;  %7133 = vmatmul.mubr.msk.bf16.vlgmr.msra.gmra.mxu0 %vm335_vm2, %v8642_v5 }
0x11d6   :  { %7113 = vmatpush3.bf16.msra.mxu1 %v7499_v2  ;;  %7149 = vmatpush3.bf16.msra.mxu0 %v7500_v3  ;;  %v6191_v3 = vld [vmem:[%s9069_s4 + $0x18] ss:$0 sm:$0xff] }
0x11d7   :  { %7114 = vmatprep.subr.bf16.mxu1 %v7620_v0  ;;  %7150 = vmatprep.subr.bf16.mxu0 %v7620_v0 }
0x11d8   :  { %7120 = vmatprep.mubr.msk.bf16.mxu1 %vm7621_vm0, %v7620_v0  ;;  %7156 = vmatprep.mubr.msk.bf16.mxu0 %vm7621_vm0, %v7620_v0 }
0x11da   :  { %7115 = vmatpush3.bf16.msra.mxu1 %v7501_v42  ;;  %7151 = vmatpush3.bf16.msra.mxu0 %v7502_v6 }
0x11db   :  { %7116 = vmatprep.subr.bf16.mxu1 %v7620_v0  ;;  %7152 = vmatprep.subr.bf16.mxu0 %v7620_v0 }
0x11de   :  { %7117 = vmatpush3.bf16.msra.mxu1 %v7503_v7  ;;  %7153 = vmatpush3.bf16.msra.mxu0 %v7504_v8 }
0x11df   :  { %7118 = vmatprep.subr.bf16.mxu1 %v7620_v0  ;;  %7154 = vmatprep.subr.bf16.mxu0 %v7620_v0 }
0x11e2   :  { %7119 = vmatpush3.bf16.msra.mxu1 %v7505_v9  ;;  %7155 = vmatpush3.bf16.msra.mxu0 %v7506_v10 }
0x11e3   :  { %7136 = vmatprep.subr.bf16.mxu1 %v7620_v0  ;;  %7172 = vmatprep.subr.bf16.mxu0 %v7620_v0 }
0x11e5   :  { %7121 = vmatmul.mubr.msk.bf16.vlgmr.msra.gmra.mxu1 %vm335_vm2, %v8642_v5  ;;  %7157 = vmatmul.mubr.msk.bf16.vlgmr.msra.gmra.mxu0 %vm335_vm2, %v8642_v5 }
0x11e6   :  { %7137 = vmatpush3.bf16.msra.mxu1 %v7507_v11  ;;  %7173 = vmatpush3.bf16.msra.mxu0 %v7508_v12  ;;  %v6197_v11 = vld [vmem:[%s9069_s4 + $0x1e] ss:$0 sm:$0xff] }
0x11e7   :  { %7138 = vmatprep.subr.bf16.mxu1 %v7620_v0  ;;  %7174 = vmatprep.subr.bf16.mxu0 %v7620_v0 }
0x11e8   :  { %7144 = vmatprep.mubr.msk.bf16.mxu1 %vm7621_vm0, %v7620_v0  ;;  %7180 = vmatprep.mubr.msk.bf16.mxu0 %vm7621_vm0, %v7620_v0 }
0x11ea   :  { %7139 = vmatpush3.bf16.msra.mxu1 %v7509_v15  ;;  %7175 = vmatpush3.bf16.msra.mxu0 %v7510_v16 }
0x11eb   :  { %7140 = vmatprep.subr.bf16.mxu1 %v7620_v0  ;;  %7176 = vmatprep.subr.bf16.mxu0 %v7620_v0 }
0x11ee   :  { %7141 = vmatpush3.bf16.msra.mxu1 %v7511_v17  ;;  %7177 = vmatpush3.bf16.msra.mxu0 %v7512_v21 }
0x11ef   :  { %7142 = vmatprep.subr.bf16.mxu1 %v7620_v0  ;;  %7178 = vmatprep.subr.bf16.mxu0 %v7620_v0 }
0x11f2   :  { %7143 = vmatpush3.bf16.msra.mxu1 %v7513_v22  ;;  %7179 = vmatpush3.bf16.msra.mxu0 %v7514_v19  ;;  %v6193_v19 = vld [vmem:[%s9069_s4 + $0x1a] ss:$0 sm:$0xff] }
0x11f3   :  { %7160 = vmatprep.subr.bf16.mxu1 %v7620_v0  ;;  %7196 = vmatprep.subr.bf16.mxu0 %v7620_v0 }
0x11f5   :  { %7145 = vmatmul.mubr.msk.bf16.vlgmr.msra.gmra.mxu1 %vm335_vm2, %v8642_v5  ;;  %7181 = vmatmul.mubr.msk.bf16.vlgmr.msra.gmra.mxu0 %vm335_vm2, %v8642_v5 }
0x11f6   :  { %7161 = vmatpush3.bf16.msra.mxu1 %v7515_v24  ;;  %7197 = vmatpush3.bf16.msra.mxu0 %v7516_v20 }
0x11f7   :  { %7162 = vmatprep.subr.bf16.mxu1 %v7620_v0  ;;  %7198 = vmatprep.subr.bf16.mxu0 %v7620_v0 }
0x11f8   :  { %7168 = vmatprep.mubr.msk.bf16.mxu1 %vm7621_vm0, %v7620_v0  ;;  %7204 = vmatprep.mubr.msk.bf16.mxu0 %vm7621_vm0, %v7620_v0 }
0x11fa   :  { %7163 = vmatpush3.bf16.msra.mxu1 %v7517_v25  ;;  %7199 = vmatpush3.bf16.msra.mxu0 %v7518_v28 }
0x11fb   :  { %7164 = vmatprep.subr.bf16.mxu1 %v7620_v0  ;;  %7200 = vmatprep.subr.bf16.mxu0 %v7620_v0 }
0x11fe   :  { %7165 = vmatpush3.bf16.msra.mxu1 %v7519_v18  ;;  %7201 = vmatpush3.bf16.msra.mxu0 %v7520_v29 }
0x11ff   :  { %7166 = vmatprep.subr.bf16.mxu1 %v7620_v0  ;;  %7202 = vmatprep.subr.bf16.mxu0 %v7620_v0 }
0x1202   :  { %7167 = vmatpush3.bf16.msra.mxu1 %v7521_v30  ;;  %7203 = vmatpush3.bf16.msra.mxu0 %v7522_v31  ;;  %v6196_v31 = vld [vmem:[%s9069_s4 + $0x1d] ss:$0 sm:$0xff] }
0x1203   :  { %7184 = vmatprep.subr.bf16.mxu1 %v7620_v0  ;;  %7220 = vmatprep.subr.bf16.mxu0 %v7620_v0 }
0x1205   :  { %7169 = vmatmul.mubr.msk.bf16.vlgmr.msra.gmra.mxu1 %vm335_vm2, %v8642_v5  ;;  %7205 = vmatmul.mubr.msk.bf16.vlgmr.msra.gmra.mxu0 %vm335_vm2, %v8642_v5 }
0x1206   :  { %7185 = vmatpush3.bf16.msra.mxu1 %v7523_v33  ;;  %7221 = vmatpush3.bf16.msra.mxu0 %v7524_v13  ;;  %v6199_v33 = vld [vmem:[%s9069_s4 + $0x20] ss:$0 sm:$0xff] }
0x1207   :  { %7186 = vmatprep.subr.bf16.mxu1 %v7620_v0  ;;  %7222 = vmatprep.subr.bf16.mxu0 %v7620_v0 }
0x1208   :  { %7192 = vmatprep.mubr.msk.bf16.mxu1 %vm7621_vm0, %v7620_v0  ;;  %7228 = vmatprep.mubr.msk.bf16.mxu0 %vm7621_vm0, %v7620_v0 }
0x120a   :  { %7187 = vmatpush3.bf16.msra.mxu1 %v7525_v34  ;;  %7223 = vmatpush3.bf16.msra.mxu0 %v7526_v4 }
0x120b   :  { %7188 = vmatprep.subr.bf16.mxu1 %v7620_v0  ;;  %7224 = vmatprep.subr.bf16.mxu0 %v7620_v0 }
0x120e   :  { %7189 = vmatpush3.bf16.msra.mxu1 %v7527_v35  ;;  %7225 = vmatpush3.bf16.msra.mxu0 %v7528_v36 }
0x120f   :  { %7190 = vmatprep.subr.bf16.mxu1 %v7620_v0  ;;  %7226 = vmatprep.subr.bf16.mxu0 %v7620_v0 }
0x1212   :  { %7191 = vmatpush3.bf16.msra.mxu1 %v7529_v37  ;;  %7227 = vmatpush3.bf16.msra.mxu0 %v7530_v38 }
0x1213   :  { %7208 = vmatprep.subr.bf16.mxu1 %v7620_v0  ;;  %7244 = vmatprep.subr.bf16.mxu0 %v7620_v0 }
0x1215   :  { %7193 = vmatmul.mubr.msk.bf16.vlgmr.msra.gmra.mxu1 %vm335_vm2, %v8642_v5  ;;  %7229 = vmatmul.mubr.msk.bf16.vlgmr.msra.gmra.mxu0 %vm335_vm2, %v8642_v5 }
0x1216   :  { %7209 = vmatpush3.bf16.msra.mxu1 %v7531_v39  ;;  %7216 = vmatprep.mubr.msk.bf16.mxu1 %vm7621_vm0, %v7620_v0 }
0x1217   :  { %7210 = vmatprep.subr.bf16.mxu1 %v7620_v0  ;;  %7246 = vmatprep.mubr.msk.bf16.mxu0 %vm7621_vm0, %v7620_v0 }
0x121a   :  { %7211 = vmatpush3.bf16.msra.mxu1 %v7532_v43  ;;  %v6192_v43 = vld [vmem:[%s9069_s4 + $0x19] ss:$0 sm:$0xff] }
0x121b   :  { %7212 = vmatprep.subr.bf16.mxu1 %v7620_v0 }
0x121e   :  { %7213 = vmatpush3.bf16.msra.mxu1 %v7533_v45 }
0x121f   :  { %7214 = vmatprep.subr.bf16.mxu1 %v7620_v0 }
0x1222   :  { %7215 = vmatpush3.bf16.msra.mxu1 %v7534_v46 }
0x1223   :  { %7232 = vmatprep.subr.bf16.mxu1 %v7620_v0 }
0x1225   :  { %7217 = vmatmul.mubr.msk.bf16.vlgmr.msra.gmra.mxu1 %vm335_vm2, %v8642_v5 }
0x1226   :  { %7233 = vmatpush3.bf16.msra.mxu1 %v7535_v23  ;;  %7240 = vmatprep.mubr.msk.bf16.mxu1 %vm7621_vm0, %v7620_v0 }
0x1227   :  { %7234 = vmatprep.subr.bf16.mxu1 %v7620_v0 }
0x122a   :  { %7235 = vmatpush3.bf16.msra.mxu1 %v7536_v47 }
0x122b   :  { %7236 = vmatprep.subr.bf16.mxu1 %v7620_v0 }
0x122e   :  { %7237 = vmatpush3.bf16.msra.mxu1 %v7537_v48 }
0x122f   :  { %7238 = vmatprep.subr.bf16.mxu1 %v7620_v0 }
0x1232   :  { %7239 = vmatpush3.bf16.msra.mxu1 %v7538_v49 }
0x1233   :  { %7256 = vmatprep.subr.bf16.mxu1 %v7620_v0 }
0x1235   :  { %7241 = vmatmul.mubr.msk.bf16.vlgmr.msra.gmra.mxu1 %vm335_vm2, %v8642_v5 }
0x1236   :  { %7258 = vmatprep.mubr.msk.bf16.mxu1 %vm7621_vm0, %v7620_v0 }
0x1295   :  { %v4064_v50 = vpop.f32.mrf.mxu1  ;;  %v4192_v52 = vpop.f32.mrf.mxu0 }
0x1296   :  { %v4065_v9 = vadd.f32 %v6191_v3, %v4064_v50  ;;  %v4193_v29 = vadd.f32 %v6193_v19, %v4192_v52 }
0x1297   :  { %v7110_v53 = vpop.f32.mrf.mxu1  ;;  %v7134_v54 = vpop.f32.mrf.mxu0 }
0x1298   :  { %v4774_v10 = vpack.c.bf16 %v4065_v9, %v4065_v9  ;;  %v4776_v30 = vpack.c.bf16 %v4193_v29, %v4193_v29  ;;  %v6198_v53 = vld [vmem:[%s9069_s4 + $0x1f] ss:$0 sm:$0xff] }
0x1299   :  { %v4067_v55 = vpop.f32.mrf.mxu1  ;;  %v4195_v56 = vpop.f32.mrf.mxu0 }
0x129b   :  { %v7111_v57 = vpop.f32.mrf.mxu1  ;;  %v7135_v58 = vpop.f32.mrf.mxu0 }
0x12a5   :  { %v4128_v59 = vpop.f32.mrf.mxu1  ;;  %v4320_v61 = vpop.f32.mrf.mxu0 }
0x12a6   :  { %v4321_v32 = vadd.f32 %v6195_v44, %v4320_v61  ;;  %v4129_v50 = vadd.f32 %v6192_v43, %v4128_v59  ;;  %v6194_v59 = vld [vmem:[%s9069_s4 + $0x1b] ss:$0 sm:$0xff] }
0x12a7   :  { %v7122_v62 = vpop.f32.mrf.mxu1  ;;  %v7158_v63 = vpop.f32.mrf.mxu0 }
0x12a8   :  { %v4778_v2 = vpack.c.bf16 %v4321_v32, %v4321_v32  ;;  %v4775_v52 = vpack.c.bf16 %v4129_v50, %v4129_v50 }
0x12a9   :  { %v4131_v5 = vpop.f32.mrf.mxu1  ;;  %v4323_v42 = vpop.f32.mrf.mxu0 }
0x12aa   :  { %v4790_v6 = vsel %vm53_vm1, %v4778_v2, 0  ;;  %v6200_v42 = vld [vmem:[%s9069_s4 + $0x21] ss:$0 sm:$0xff] }
0x12ab   :  { %v7123_v7 = vpop.f32.mrf.mxu1  ;;  %v7159_v8 = vpop.f32.mrf.mxu0  ;;  %7245 = vmatpush3.bf16.xpose.msra.mxu0 %v4790_v6 }
0x12ac   :  { %7250 = vmatprep.subr.bf16.mxu0 %v7620_v0 }
0x12b2   :  { %7247 = vmatmul.mubr.msk.bf16.vlgmr.msra.gmra.mxu0 %vm53_vm1, %v4774_v10 }
0x12b3   :  { %7252 = vmatprep.mubr.msk.bf16.mxu0 %vm7621_vm0, %v7620_v0 }
0x12b5   :  { %v4256_v12 = vpop.f32.mrf.mxu1  ;;  %v4448_v15 = vpop.f32.mrf.mxu0 }
0x12b6   :  { %v4449_v16 = vadd.f32 %v6197_v11, %v4448_v15  ;;  %v4257_v3 = vadd.f32 %v6194_v59, %v4256_v12 }
0x12b7   :  { %v7146_v17 = vpop.f32.mrf.mxu1  ;;  %v7182_v21 = vpop.f32.mrf.mxu0 }
0x12b8   :  { %v4780_v22 = vpack.c.bf16 %v4449_v16, %v4449_v16  ;;  %v4777_v5 = vpack.c.bf16 %v4257_v3, %v4257_v3 }
0x12b9   :  { %v4259_v24 = vpop.f32.mrf.mxu1  ;;  %v4451_v20 = vpop.f32.mrf.mxu0 }
0x12ba   :  { %v4882_v25 = vsel %vm53_vm1, %v4780_v22, 0 }
0x12bb   :  { %v7147_v28 = vpop.f32.mrf.mxu1  ;;  %v7183_v18 = vpop.f32.mrf.mxu0  ;;  %7257 = vmatpush3.bf16.xpose.msra.mxu1 %v4882_v25 }
0x12bc   :  { %7268 = vmatprep.subr.bf16.mxu1 %v7620_v0 }
0x12c2   :  { %7259 = vmatmul.mubr.msk.bf16.vlgmr.msra.gmra.mxu1 %vm53_vm1, %v4776_v30 }
0x12c3   :  { %7270 = vmatprep.mubr.msk.bf16.mxu1 %vm7621_vm0, %v7620_v0 }
0x12c5   :  { %v4384_v13 = vpop.f32.mrf.mxu1  ;;  %v4576_v34 = vpop.f32.mrf.mxu0 }
0x12c6   :  { %v4385_v4 = vadd.f32 %v6196_v31, %v4384_v13  ;;  %v4577_v35 = vadd.f32 %v6199_v33, %v4576_v34 }
0x12c7   :  { %v7170_v36 = vpop.f32.mrf.mxu1  ;;  %v7206_v37 = vpop.f32.mrf.mxu0 }
0x12c8   :  { %v4779_v38 = vpack.c.bf16 %v4385_v4, %v4385_v4  ;;  %v4782_v39 = vpack.c.bf16 %v4577_v35, %v4577_v35 }
0x12c9   :  { %v4387_v45 = vpop.f32.mrf.mxu1  ;;  %v4579_v46 = vpop.f32.mrf.mxu0 }
0x12ca   :  { %v4836_v23 = vsel %vm53_vm1, %v4779_v38, 0  ;;  %v5022_v47 = vsel %vm1331_vm3, %v4782_v39, 0 }
0x12cb   :  { %v7171_v48 = vpop.f32.mrf.mxu1  ;;  %v7207_v49 = vpop.f32.mrf.mxu0  ;;  %7251 = vmatpush3.bf16.xpose.msra.mxu0 %v4836_v23  ;;  %7269 = vmatpush3.bf16.msra.mxu1 %v5022_v47 }
0x12cc   :  { %7262 = vmatprep.subr.bf16.mxu0 %v7620_v0  ;;  %7280 = vmatprep.subr.bf16.mxu1 %v7620_v0 }
0x12d2   :  { %7253 = vmatmul.mubr.msk.bf16.vlgmr.msra.gmra.mxu0 %vm53_vm1, %v4775_v52 }
0x12d3   :  { %7264 = vmatprep.mubr.msk.bf16.mxu0 %vm7621_vm0, %v7620_v0 }
0x12d5   :  { %v4512_v54 = vpop.f32.mrf.mxu1  ;;  %v8887_v55 = vpop.f32.mrf.mxu0 }
0x12d6   :  { %v4513_v56 = vadd.f32 %v6198_v53, %v4512_v54 }
0x12d7   :  { %v7194_v57 = vpop.f32.mrf.mxu1  ;;  %v7230_v58 = vpop.f32.mrf.mxu0 }
0x12d8   :  { %v4781_v44 = vpack.c.bf16 %v4513_v56, %v4513_v56 }
0x12d9   :  { %v4515_v61 = vpop.f32.mrf.mxu1  ;;  %v4707_v32 = vpop.f32.mrf.mxu0 }
0x12da   :  { %v4928_v62 = vsel %vm53_vm1, %v4781_v44, 0 }
0x12db   :  { %v7195_v63 = vpop.f32.mrf.mxu1  ;;  %v7231_v2 = vpop.f32.mrf.mxu0  ;;  %7263 = vmatpush3.bf16.xpose.msra.mxu0 %v4928_v62 }
0x12dc   :  { %7274 = vmatprep.subr.bf16.mxu0 %v7620_v0 }
0x12e2   :  { %7265 = vmatmul.mubr.msk.bf16.vlgmr.msra.gmra.mxu0 %vm53_vm1, %v4777_v5  ;;  %v6201_v5 = vld [vmem:[%s9069_s4 + $0x22] ss:$0 sm:$0xff] }
0x12e3   :  { %7276 = vmatprep.mubr.msk.bf16.mxu0 %vm7621_vm0, %v7620_v0 }
0x12e5   :  { %v4640_v6 = vpop.f32.mrf.mxu1 }
0x12e6   :  { %v4641_v7 = vadd.f32 %v6200_v42, %v4640_v6  ;;  %v4705_v42 = vadd.f32 %v6201_v5, %v8887_v55 }
0x12e7   :  { %v7218_v8 = vpop.f32.mrf.mxu1 }
0x12e8   :  { %v4783_v9 = vpack.c.bf16 %v4641_v7, %v4641_v7  ;;  %v4784_v7 = vpack.c.bf16 %v4705_v42, %v4705_v42 }
0x12e9   :  { %v4643_v10 = vpop.f32.mrf.mxu1 }
0x12ea   :  { %v5068_v11 = vsel %vm1331_vm3, %v4783_v9, 0 }
0x12eb   :  { %v7219_v12 = vpop.f32.mrf.mxu1  ;;  %7275 = vmatpush3.bf16.msra.mxu0 %v5068_v11  ;;  %v5114_v11 = vsel %vm1331_vm3, %v4784_v7, 0 }
0x12ec   :  { %7286 = vmatprep.subr.bf16.mxu0 %v7620_v0 }
0x12f5   :  { %v8902_v15 = vpop.f32.mrf.mxu1 }
0x12f7   :  { %v7242_v16 = vpop.f32.mrf.mxu1 }
0x12f9   :  { %v4771_v17 = vpop.f32.mrf.mxu1 }
0x12fb   :  { %v7243_v21 = vpop.f32.mrf.mxu1 }
0x12fc   :  { %v6202_v21 = vld [vmem:[%s9069_s4 + $0x23] ss:$0 sm:$0xff] }
0x1372   :  { %v4826_v22 = vpop.f32.mrf.mxu0 }
0x1373   :  { %v4970_v19 = vsel %vm1279_vm4, %v4826_v22, -inf }
0x1374   :  { %4971 = vmax.xlane.f32.xlu0 %v4970_v19  ;;  %v7248_v24 = vpop.f32.mrf.mxu0 }
0x1376   :  { %v4829_v20 = vpop.f32.mrf.mxu0 }
0x1378   :  { %v7249_v25 = vpop.f32.mrf.mxu0 }
0x1382   :  { %v4918_v28 = vpop.f32.mrf.mxu1 }
0x1383   :  { %v4976_v18 = vsel %vm1279_vm4, %v4918_v28, -inf }
0x1384   :  { %v7260_v29 = vpop.f32.mrf.mxu1  ;;  %4977 = vmax.xlane.f32.xlu0 %v4976_v18 }
0x1386   :  { %v4921_v30 = vpop.f32.mrf.mxu1 }
0x1388   :  { %v7261_v31 = vpop.f32.mrf.mxu1 }
0x1392   :  { %v4872_v33 = vpop.f32.mrf.mxu0 }
0x1393   :  { %v4973_v13 = vsel %vm1279_vm4, %v4872_v33, -inf }
0x1394   :  { %4974 = vmax.xlane.f32.xlu1 %v4973_v13  ;;  %v7254_v34 = vpop.f32.mrf.mxu0 }
0x1395   :  { %v7540_v34 = vld [vmem:[%s9070_s5 + $0x50] sm:$0xff]  }
0x1396   :  { %v4875_v4 = vpop.f32.mrf.mxu0 }
0x1398   :  { %v7255_v35 = vpop.f32.mrf.mxu0 }
0x13a2   :  { %v4964_v36 = vpop.f32.mrf.mxu0 }
0x13a3   :  { %v4979_v37 = vsel %vm1279_vm4, %v4964_v36, -inf }
0x13a4   :  { %4980 = vmax.xlane.f32.xlu1 %v4979_v37  ;;  %v7266_v38 = vpop.f32.mrf.mxu0 }
0x13a6   :  { %v4967_v39 = vpop.f32.mrf.mxu0 }
0x13a8   :  { %v7267_v43 = vpop.f32.mrf.mxu0 }
0x13fd   :  { %v4972_v45 = vpop.xlane.xlu0 %4971 }
0x13fe   :  { %v4982_v46 = vsub.f32 %v4826_v22, %v4972_v45  ;;  %v4769_v22 = vadd.f32 %v6202_v21, %v8902_v15  ;;  %v7539_v15 = vld [vmem:[%s9070_s5 + $0x40] sm:$0xff]  }
0x1400   :  { %v4986_v23 = vmul.f32 1.442695, %v4982_v46  ;;  %v4785_v24 = vpack.c.bf16 %v4769_v22, %v4769_v22 }
0x1402   :  { %7599 = vpow2.f32 %v4986_v23  ;;  %v5160_v18 = vsel %vm1331_vm3, %v4785_v24, 0 }
0x140d   :  { %v4978_v47 = vpop.xlane.xlu0 %4977 }
0x140e   :  { %v4984_v48 = vsub.f32 %v4918_v28, %v4978_v47  ;;  %v7542_v47 = vld [vmem:[%s9070_s5 + $0x58] sm:$0xff]  }
0x140f   :  { %v7600_v49 = vpop.eup %7599 }
0x1410   :  { %v4990_v50 = vmul.f32 1.442695, %v4984_v48  ;;  %v4994_v52 = vsel %vm1279_vm4, %v7600_v49, 0.0 }
0x1411   :  { %4995 = vadd.xlane.f32.xlu0 %v4994_v52 }
0x1412   :  { %7601 = vpow2.f32 %v4990_v50 }
0x141d   :  { %v4975_v53 = vpop.xlane.xlu1 %4974 }
0x141e   :  { %v4983_v54 = vsub.f32 %v4872_v33, %v4975_v53  ;;  %v7541_v33 = vld [vmem:[%s9070_s5 + $0x48] sm:$0xff]  }
0x141f   :  { %v7602_v56 = vpop.eup %7601 }
0x1420   :  { %v4988_v57 = vmul.f32 1.442695, %v4983_v54  ;;  %v5000_v58 = vsel %vm1279_vm4, %v7602_v56, 0.0 }
0x1421   :  { %5001 = vadd.xlane.f32.xlu0 %v5000_v58 }
0x1422   :  { %7603 = vpow2.f32 %v4988_v57 }
0x142d   :  { %v4981_v44 = vpop.xlane.xlu1 %4980 }
0x142e   :  { %v4985_v59 = vsub.f32 %v4964_v36, %v4981_v44 }
0x142f   :  { %v7604_v61 = vpop.eup %7603 }
0x1430   :  { %v4992_v32 = vmul.f32 1.442695, %v4985_v59  ;;  %v4997_v62 = vsel %vm1279_vm4, %v7604_v61, 0.0 }
0x1431   :  { %4998 = vadd.xlane.f32.xlu1 %v4997_v62 }
0x1432   :  { %7605 = vpow2.f32 %v4992_v32 }
0x143f   :  { %v7606_v63 = vpop.eup %7605 }
0x1440   :  { %v5003_v2 = vsel %vm1279_vm4, %v7606_v63, 0.0 }
0x1441   :  { %5004 = vadd.xlane.f32.xlu1 %v5003_v2 }
0x149a   :  { %v4996_v3 = vpop.xlane.xlu0 %4995 }
0x149b   :  { %7607 = vrcp.f32 %v4996_v3 }
0x14a8   :  { %v7608_v6 = vpop.eup %7607 }
0x14a9   :  { %v5010_v8 = vmul.f32 %v7608_v6, %v7600_v49 }
0x14aa   :  { %v5002_v9 = vpop.xlane.xlu0 %5001 }
0x14ab   :  { %v5014_v10 = vpack.c.bf16 %v5010_v8, %v5010_v8  ;;  %7609 = vrcp.f32 %v5002_v9 }
0x14ad   :  { %7271 = vmatmul.mubr.msk.bf16.vlgmr.msra.gmra.mxu1 %vm1279_vm4, %v5014_v10 }
0x14ae   :  { %7281 = vmatpush3.bf16.msra.mxu1 %v5114_v11  ;;  %7282 = vmatprep.mubr.msk.bf16.mxu1 %vm7621_vm0, %v7620_v0  ;;  %v8969_v11 = vld [vmem:[%s9071_s7 + $0x10] sm:$0xff] }
0x14af   :  { %7292 = vmatprep.subr.bf16.mxu1 %v7620_v0 }
0x14b8   :  { %v7610_v12 = vpop.eup %7609 }
0x14b9   :  { %v5012_v16 = vmul.f32 %v7610_v12, %v7602_v56 }
0x14ba   :  { %v4999_v17 = vpop.xlane.xlu1 %4998 }
0x14bb   :  { %v5016_v55 = vpack.c.bf16 %v5012_v16, %v5012_v16  ;;  %7611 = vrcp.f32 %v4999_v17 }
0x14bd   :  { %7283 = vmatmul.mubr.msk.bf16.vlgmr.msra.gmra.mxu1 %vm1279_vm4, %v5016_v55  ;;  %v5412_v55 = vrot.slane %v8969_v11, %v7718_v14  ;;  %v7543_v14 = vld [vmem:[%s9072_s6 + $0xd8] sm:$0xff]  }
0x14be   :  { %7294 = vmatprep.mubr.msk.bf16.mxu1 %vm7621_vm0, %v7620_v0  ;;  %7293 = vmatpush3.bf16.msra.mxu1 %v7539_v15 }
0x14bf   :  { %7304 = vmatprep.subr.bf16.mxu1 %v7620_v0 }
0x14c8   :  { %v7612_v19 = vpop.eup %7611 }
0x14c9   :  { %v5011_v20 = vmul.f32 %v7612_v19, %v7604_v61 }
0x14ca   :  { %v5005_v25 = vpop.xlane.xlu1 %5004 }
0x14cb   :  { %v5015_v28 = vpack.c.bf16 %v5011_v20, %v5011_v20  ;;  %7613 = vrcp.f32 %v5005_v25 }
0x14cd   :  { %7277 = vmatmul.mubr.msk.bf16.vlgmr.msra.gmra.mxu0 %vm1279_vm4, %v5015_v28 }
0x14ce   :  { %7287 = vmatpush3.bf16.msra.mxu0 %v5160_v18  ;;  %7288 = vmatprep.mubr.msk.bf16.mxu0 %vm7621_vm0, %v7620_v0 }
0x14cf   :  { %7298 = vmatprep.subr.bf16.mxu0 %v7620_v0 }
0x14d8   :  { %v7614_v29 = vpop.eup %7613 }
0x14d9   :  { %v5013_v30 = vmul.f32 %v7614_v29, %v7606_v63 }
0x14db   :  { %v5017_v31 = vpack.c.bf16 %v5013_v30, %v5013_v30 }
0x14dd   :  { %7289 = vmatmul.mubr.msk.bf16.vlgmr.msra.gmra.mxu0 %vm1279_vm4, %v5017_v31 }
0x14de   :  { %7300 = vmatprep.mubr.msk.bf16.mxu0 %vm7621_vm0, %v7620_v0  ;;  %7299 = vmatpush3.bf16.msra.mxu0 %v7541_v33 }
0x14df   :  { %7310 = vmatprep.subr.bf16.mxu0 %v7620_v0 }
0x156d   :  { %v5058_v13 = vpop.f32.mrf.mxu1 }
0x156e   :  { %v5202_v4 = vpack.c.bf16 %v5058_v13, %v5058_v13  ;;  %v7545_v13 = vld [vmem:[%s9072_s6 + $0xc8] sm:$0xff]  }
0x156f   :  { %v7272_v35 = vpop.f32.mrf.mxu1 }
0x1570   :  { %7295 = vmatmul.mubr.msk.bf16.vlgmr.msra.gmra.mxu1 %vm53_vm1, %v5202_v4  ;;  %v7547_v4 = vld [vmem:[%s9072_s6 + $0x118] sm:$0xff]   ;;  %v7548_v35 = vld [vmem:[%s9072_s6 + $0x110] sm:$0xff]  }
0x1571   :  { %v5061_v36 = vpop.f32.mrf.mxu1  ;;  %7305 = vmatpush3.bf16.msra.mxu1 %v7540_v34  ;;  %7306 = vmatprep.mubr.msk.bf16.mxu1 %vm7621_vm0, %v7620_v0  ;;  %v7546_v34 = vld [vmem:[%s9072_s6 + $0xc0] sm:$0xff]  }
0x1572   :  { %7316 = vmatprep.subr.bf16.mxu1 %v7620_v0  ;;  %v7549_v36 = vld [vmem:[%s9072_s6 + $0x108] sm:$0xff]  }
0x1573   :  { %v7273_v37 = vpop.f32.mrf.mxu1 }
0x1574   :  { %v7550_v37 = vld [vmem:[%s9072_s6 + $0x100] sm:$0xff]  }
0x157d   :  { %v5150_v38 = vpop.f32.mrf.mxu1 }
0x157e   :  { %v5204_v39 = vpack.c.bf16 %v5150_v38, %v5150_v38  ;;  %v7551_v38 = vld [vmem:[%s9072_s6 + $0xf8] sm:$0xff]  }
0x157f   :  { %v7284_v43 = vpop.f32.mrf.mxu1 }
0x1580   :  { %7307 = vmatmul.mubr.msk.bf16.vlgmr.msra.gmra.mxu1 %vm53_vm1, %v5204_v39  ;;  %v7552_v39 = vld [vmem:[%s9072_s6 + $0xf0] sm:$0xff]  }
0x1581   :  { %v5153_v45 = vpop.f32.mrf.mxu1  ;;  %7324 = vmatprep.mubr.msk.bf16.mxu1 %vm7621_vm0, %v7620_v0  ;;  %7317 = vmatpush3.bf16.msra.mxu1 %v7543_v14 }
0x1582   :  { %7318 = vmatprep.subr.bf16.mxu1 %v7620_v0 }
0x1583   :  { %v7285_v46 = vpop.f32.mrf.mxu1 }
0x158d   :  { %v5104_v23 = vpop.f32.mrf.mxu0 }
0x158e   :  { %v5203_v48 = vpack.c.bf16 %v5104_v23, %v5104_v23  ;;  %v5431_v23 = vrot.slane %v8969_v11, %v8111_v40 }
0x158f   :  { %v7278_v49 = vpop.f32.mrf.mxu0 }
0x1590   :  { %7301 = vmatmul.mubr.msk.bf16.vlgmr.msra.gmra.mxu0 %vm53_vm1, %v5203_v48  ;;  %v5436_v49 = vrot.slane %v8969_v11, %v8114_v41  ;;  %v5442_v41 = vrot.slane %v8969_v11, %v8132_v51 }
0x1591   :  { %v5107_v50 = vpop.f32.mrf.mxu0  ;;  %7311 = vmatpush3.bf16.msra.mxu0 %v7542_v47  ;;  %7312 = vmatprep.mubr.msk.bf16.mxu0 %vm7621_vm0, %v7620_v0 }
0x1592   :  { %7328 = vmatprep.subr.bf16.mxu0 %v7620_v0 }
0x1593   :  { %v7279_v52 = vpop.f32.mrf.mxu0 }
0x159d   :  { %v5196_v53 = vpop.f32.mrf.mxu0 }
0x159e   :  { %v5205_v54 = vpack.c.bf16 %v5196_v53, %v5196_v53 }
0x159f   :  { %v7290_v56 = vpop.f32.mrf.mxu0 }
0x15a0   :  { %7313 = vmatmul.mubr.msk.bf16.vlgmr.msra.gmra.mxu0 %vm53_vm1, %v5205_v54  ;;  %v7553_v54 = vld [vmem:[%s9072_s6 + $0xe8] sm:$0xff]   ;;  %v7554_v56 = vld [vmem:[%s9072_s6 + $0xe0] sm:$0xff]  }
0x15a1   :  { %v5199_v57 = vpop.f32.mrf.mxu0  ;;  %7344 = vmatprep.mubr.msk.bf16.mxu0 %vm7621_vm0, %v7620_v0  ;;  %7329 = vmatpush3.bf16.msra.mxu0 %v7547_v4 }
0x15a2   :  { %7330 = vmatprep.subr.bf16.mxu0 %v7620_v0 }
0x15a3   :  { %v7291_v58 = vpop.f32.mrf.mxu0 }
0x15a5   :  { %7331 = vmatpush3.bf16.msra.mxu0 %v7548_v35 }
0x15a6   :  { %7332 = vmatprep.subr.bf16.mxu0 %v7620_v0 }
0x15a9   :  { %7333 = vmatpush3.bf16.msra.mxu0 %v7549_v36 }
0x15aa   :  { %7334 = vmatprep.subr.bf16.mxu0 %v7620_v0 }
0x15ad   :  { %7335 = vmatpush3.bf16.msra.mxu0 %v7550_v37 }
0x15ae   :  { %7336 = vmatprep.subr.bf16.mxu0 %v7620_v0 }
0x15b1   :  { %7337 = vmatpush3.bf16.msra.mxu0 %v7551_v38 }
0x15b2   :  { %7338 = vmatprep.subr.bf16.mxu0 %v7620_v0 }
0x15b5   :  { %7339 = vmatpush3.bf16.msra.mxu0 %v7552_v39 }
0x15b6   :  { %7340 = vmatprep.subr.bf16.mxu0 %v7620_v0 }
0x15b9   :  { %7341 = vmatpush3.bf16.msra.mxu0 %v7553_v54 }
0x15ba   :  { %7342 = vmatprep.subr.bf16.mxu0 %v7620_v0 }
0x15bd   :  { %7343 = vmatpush3.bf16.msra.mxu0 %v7554_v56 }
0x1630   :  { %v5249_v44 = vpop.f32.mrf.mxu1 }
0x1631   :  { %v5402_v9 = vsel %vm335_vm2, %v5249_v44, 0.0 }
0x1632   :  { %v7296_v59 = vpop.f32.mrf.mxu1 }
0x1634   :  { %v5252_v61 = vpop.f32.mrf.mxu1 }
0x1636   :  { %v7297_v32 = vpop.f32.mrf.mxu1 }
0x1640   :  { %v5347_v62 = vpop.f32.mrf.mxu1 }
0x1641   :  { %v5405_v12 = vsel %vm335_vm2, %v5347_v62, 0.0 }
0x1642   :  { %v7308_v63 = vpop.f32.mrf.mxu1 }
0x1643   :  { %v5515_v63 = vrot.slane %v8969_v11, %v8139_v60  ;;  %v7555_v60 = vld [vmem:[%s9065_s1 + $0x20] sm:$0xff]  }
0x1644   :  { %v5350_v2 = vpop.f32.mrf.mxu1 }
0x1646   :  { %v7309_v3 = vpop.f32.mrf.mxu1 }
0x1650   :  { %v5298_v5 = vpop.f32.mrf.mxu0 }
0x1651   :  { %v5403_v8 = vsel %vm335_vm2, %v5298_v5, 0.0 }
0x1652   :  { %v7302_v42 = vpop.f32.mrf.mxu0  ;;  %v5404_v10 = vadd.f32 %v5403_v8, %v5402_v9 }
0x1654   :  { %v5301_v6 = vpop.f32.mrf.mxu0  ;;  %v5406_v17 = vadd.f32 %v5405_v12, %v5404_v10 }
0x1656   :  { %v7303_v7 = vpop.f32.mrf.mxu0 }
0x1660   :  { %v5396_v16 = vpop.f32.mrf.mxu0 }
0x1661   :  { %v5407_v21 = vsel %vm335_vm2, %v5396_v16, 0.0 }
0x1662   :  { %v5408_v22 = vadd.f32 %v5407_v21, %v5406_v17  ;;  %v7314_v19 = vpop.f32.mrf.mxu0  ;;  %v7556_v17 = vld [vmem:[%s9065_s1 + $0x18] sm:$0xff]   ;;  %v7558_v21 = vld [vmem:[%s9065_s1 + $0x8] sm:$0xff]  }
0x1664   :  { %v5413_v24 = vadd.f32 %v5412_v55, %v5408_v22  ;;  %v5399_v20 = vpop.f32.mrf.mxu0  ;;  %v7557_v55 = vld [vmem:[%s9065_s1 + $0x10] sm:$0xff]  }
0x1665   :  { %v5621_v20 = vrot.slane %v8969_v11, %v8178_v26 }
0x1666   :  { %v7315_v25 = vpop.f32.mrf.mxu0  ;;  %v5414_v28 = vadd.f32 %v5413_v24, %v8632_v1  ;;  %v7544_v1 = vld [vmem:[%s9072_s6 + $0xd0] sm:$0xff]  }
0x1667   :  { %7319 = vmatpush3.bf16.msra.mxu1 %v7544_v1 }
0x1668   :  { %v5415_v18 = vsel %vm335_vm2, %v5414_v28, 0.0  ;;  %7320 = vmatprep.subr.bf16.mxu1 %v7620_v0 }
0x1669   :  { %5416 = vadd.xlane.f32.xlu0 %v5415_v18  ;;  %v5626_v18 = vrot.slane %v8969_v11, %v8181_v27 }
0x166b   :  { %7321 = vmatpush3.bf16.msra.mxu1 %v7545_v13 }
0x166c   :  { %7322 = vmatprep.subr.bf16.mxu1 %v7620_v0 }
0x166f   :  { %7323 = vmatpush3.bf16.msra.mxu1 %v7546_v34 }
0x1670   :  { %7348 = vmatprep.subr.bf16.mxu1 %v7620_v0 }
0x16f2   :  { %v5417_v29 = vpop.xlane.xlu0 %5416 }
0x16f3   :  { %v5418_v30 = vmul.f32 0.015625, %v5417_v29 }
0x16f5   :  { %v5419_v31 = vsub.f32 %v5414_v28, %v5418_v30 }
0x16f7   :  { %v5420_v15 = vmul.f32 %v5419_v31, %v5419_v31 }
0x16f9   :  { %v5421_v33 = vsel %vm335_vm2, %v5420_v15, 0.0 }
0x16fa   :  { %5422 = vadd.xlane.f32.xlu1 %v5421_v33 }
0x1783   :  { %v5423_v43 = vpop.xlane.xlu1 %5422 }
0x1784   :  { %v5424_v45 = vmul.f32 0.015625, %v5423_v43 }
0x1786   :  { %v5425_v46 = vadd.f32 1e-05, %v5424_v45 }
0x1788   :  { %7615 = vrsqrt.f32 %v5425_v46 }
0x1795   :  { %v7616_v47 = vpop.eup %7615 }
0x1796   :  { %v5427_v48 = vmul.f32 %v7616_v47, %v5419_v31 }
0x1798   :  { %v5432_v50 = vmul.f32 %v5431_v23, %v5427_v48 }
0x179a   :  { %v5437_v52 = vadd.f32 %v5436_v49, %v5432_v50 }
0x179c   :  { %v5438_v53 = vpack.c.bf16 %v5437_v52, %v5437_v52 }
0x179e   :  { %7325 = vmatmul.mubr.msk.bf16.vlgmr.msra.gmra.mxu1 %vm335_vm2, %v5438_v53 }
0x179f   :  { %7356 = vmatprep.mubr.msk.bf16.mxu1 %vm7621_vm0, %v7620_v0  ;;  %7349 = vmatpush3.bf16.msra.mxu1 %v7555_v60 }
0x17a0   :  { %7350 = vmatprep.subr.bf16.mxu1 %v7620_v0 }
0x17a3   :  { %7351 = vmatpush3.bf16.msra.mxu1 %v7556_v17 }
0x17a4   :  { %7352 = vmatprep.subr.bf16.mxu1 %v7620_v0 }
0x17a7   :  { %7353 = vmatpush3.bf16.msra.mxu1 %v7557_v55 }
0x17a8   :  { %7354 = vmatprep.subr.bf16.mxu1 %v7620_v0  ;;  %v7619_v0 = vld [vmem:[%s9068_s2] sm:$0x3] }
0x17a9   :  { %v5632_v15 = vrot.slane %v7619_v0, %v8111_v40 }
0x17ab   :  { %7355 = vmatpush3.bf16.msra.mxu1 %v7558_v21 }
0x185e   :  { %v5504_v57 = vpop.f32.mrf.mxu1 }
0x185f   :  { %v5505_v58 = vadd.f32 %v5504_v57, %v5442_v41 }
0x1860   :  { %v7326_v44 = vpop.f32.mrf.mxu1 }
0x1861   :  { %v5510_v59 = vmax.f32 %v5505_v58, 0.0 }
0x1862   :  { %v5507_v61 = vpop.f32.mrf.mxu1 }
0x1863   :  { %v5511_v32 = vpack.c.bf16 %v5510_v59, %v5510_v59 }
0x1864   :  { %v7327_v62 = vpop.f32.mrf.mxu1 }
0x1865   :  { %7345 = vmatmul.mubr.bf16.vlgmr.msra.gmra.mxu0 %v5511_v32 }
0x1925   :  { %v5598_v2 = vpop.f32.mrf.mxu0 }
0x1926   :  { %v5599_v3 = vadd.f32 %v5598_v2, %v5515_v63 }
0x1927   :  { %v7346_v5 = vpop.f32.mrf.mxu0 }
0x1928   :  { %v5604_v42 = vadd.f32 %v5599_v3, %v5437_v52 }
0x1929   :  { %v5601_v6 = vpop.f32.mrf.mxu0 }
0x192a   :  { %v5605_v7 = vsel %vm335_vm2, %v5604_v42, 0.0 }
0x192b   :  { %5606 = vadd.xlane.f32.xlu0 %v5605_v7  ;;  %v7347_v51 = vpop.f32.mrf.mxu0 }
0x19b4   :  { %v5607_v8 = vpop.xlane.xlu0 %5606 }
0x19b5   :  { %v5608_v9 = vmul.f32 0.015625, %v5607_v8 }
0x19b7   :  { %v5609_v10 = vsub.f32 %v5604_v42, %v5608_v9 }
0x19b9   :  { %v5610_v12 = vmul.f32 %v5609_v10, %v5609_v10 }
0x19bb   :  { %v5611_v16 = vsel %vm335_vm2, %v5610_v12, 0.0 }
0x19bc   :  { %5612 = vadd.xlane.f32.xlu1 %v5611_v16 }
0x1a45   :  { %v5613_v22 = vpop.xlane.xlu1 %5612 }
0x1a46   :  { %v5614_v19 = vmul.f32 0.015625, %v5613_v22 }
0x1a48   :  { %v5615_v24 = vadd.f32 1e-05, %v5614_v19 }
0x1a4a   :  { %7617 = vrsqrt.f32 %v5615_v24 }
0x1a57   :  { %v7618_v25 = vpop.eup %7617 }
0x1a58   :  { %v5617_v28 = vmul.f32 %v7618_v25, %v5609_v10 }
0x1a5a   :  { %v5622_v29 = vmul.f32 %v5621_v20, %v5617_v28 }
0x1a5c   :  { %v5627_v30 = vadd.f32 %v5626_v18, %v5622_v29 }
0x1a5e   :  { %v5628_v31 = vpack.c.bf16 %v5627_v30, %v5627_v30 }
0x1a60   :  { %7357 = vmatmul.mubr.msk.bf16.vlgmr.msra.gmra.mxu1 %vm335_vm2, %v5628_v31 }
0x1b20   :  { %v5694_v33 = vpop.f32.mrf.mxu1 }
0x1b21   :  { %v5695_v14 = vadd.f32 %v5694_v33, %v5632_v15 }
0x1b22   :  { %v7358_v1 = vpop.f32.mrf.mxu1 }
0x1b23   :  { %5700 = vst [vmem:[%s9073_s8] sm:$0xff] %v5695_v14 }
0x1b24   :  { %v5697_v26 = vpop.f32.mrf.mxu1 }
0x1b26   :  { %v7359_v27 = vpop.f32.mrf.mxu1 }

</bundles_post_ra>
